<compile_context>
chip_gen: v7x
topology: tpu7x:2x2x1
jax: 0.10.0
libtpu: 0.0.40
codegen_flags: <defaults>
</compile_context>

<pallas_src>
import jax
import jax.numpy as jnp
import numpy as np
from jax.experimental import pallas as pl
from jax.experimental.pallas import tpu as pltpu

MAX_LEN = 8          # max_len      (scaled down from 300)
HIDDEN = 32          # hidden_size  (scaled down from 768)
LSTM_OUT = 32        # lstm_out     (scaled down from 768)
HEAD_HIDDEN = 32     # nn.Linear(max_len*lstm_out, 32)
NUM_CLASS = 5        # num_class
VOCAB = 50
N_SEG = 2


# --------------------------- fused forward kernel ---------------------------
def _fused_kernel(x_ref, wi_ref, wh_ref, b_ref, w1_ref, b1_ref, w2_ref, b2_ref, out_ref):
    B, T, Hin = x_ref.shape
    H = wh_ref.shape[1]
    Hm = w1_ref.shape[2]

    # Load per-gate weights once; they stay resident in VMEM/vregs for all timesteps.
    wi = [wi_ref[k] for k in range(4)]     # 4 x (Hin, H)   gate order: i, f, g, o
    wh = [wh_ref[k] for k in range(4)]     # 4 x (H, H)
    bg = [b_ref[k] for k in range(4)]      # 4 x (1, H)

    h = jnp.zeros((B, H), jnp.float32)
    c = jnp.zeros((B, H), jnp.float32)
    acc = jnp.zeros((B, Hm), jnp.float32)  # pre-bias Linear1 accumulator

    # T=8: fully static unroll -> LLO scheduler sees across iterations, zero pipeline overhead.
    for t in range(T):
        x_t = x_ref[:, t, :]               # (B, Hin), static slice

        def gate(k):
            return (jnp.dot(x_t, wi[k], preferred_element_type=jnp.float32)
                    + jnp.dot(h, wh[k], preferred_element_type=jnp.float32)
                    + bg[k])

        i_g = jax.nn.sigmoid(gate(0))
        f_g = jax.nn.sigmoid(gate(1))
        g_g = jnp.tanh(gate(2))
        o_g = jax.nn.sigmoid(gate(3))
        c = f_g * c + i_g * g_g
        h = o_g * jnp.tanh(c)

        # tanh(concat_t h_t) @ w1  ==  sum_t tanh(h_t) @ w1[t]   (tanh is elementwise)
        acc = acc + jnp.dot(jnp.tanh(h), w1_ref[t], preferred_element_type=jnp.float32)

    h1 = acc + b1_ref[...]                                               # Linear(max_len*lstm_out, 32)
    logits = jnp.dot(h1, w2_ref[...], preferred_element_type=jnp.float32) + b2_ref[...]
    m = jnp.max(logits, axis=1, keepdims=True)
    e = jnp.exp(logits - m)
    denom = jnp.sum(e, axis=1, keepdims=True)
    out_ref[...] = (e * pl.reciprocal(denom, approx=True)).astype(out_ref.dtype)  # Softmax(dim=1)


def fused_forward(doc_tok, params):
    """doc_tok: (B, T, Hin) batch-first activations from the bert stub."""
    B, T, Hin = doc_tok.shape
    H = LSTM_OUT
    Hm = HEAD_HIDDEN
    C = NUM_CLASS

    # Split the combined gate weights column-wise into per-gate blocks (i, f, g, o) so the kernel
    # never slices sub-128-lane columns out of a (.., 4H) tile.
    wi4 = params["wi"].reshape(Hin, 4, H).transpose(1, 0, 2)      # (4, Hin, H)
    wh4 = params["wh"].reshape(H, 4, H).transpose(1, 0, 2)        # (4, H, H)
    b4 = params["b_lstm"].reshape(1, 4, H).transpose(1, 0, 2)     # (4, 1, H)
    w1r = params["w1"].reshape(T, H, Hm)                          # (T, H, Hm): w1[t] = rows t*H:(t+1)*H

    bb = B  # batch block; shrink (e.g. B // 2) to split across TensorCores on v7x at large B
    return pl.pallas_call(
        _fused_kernel,
        out_shape=jax.ShapeDtypeStruct((B, C), jnp.float32),
        grid=(pl.cdiv(B, bb),),
        in_specs=[
            pl.BlockSpec((bb, T, Hin), lambda i: (i, 0, 0)),
            pl.BlockSpec((4, Hin, H), lambda i: (0, 0, 0)),
            pl.BlockSpec((4, H, H), lambda i: (0, 0, 0)),
            pl.BlockSpec((4, 1, H), lambda i: (0, 0, 0)),
            pl.BlockSpec((T, H, Hm), lambda i: (0, 0, 0)),
            pl.BlockSpec((1, Hm), lambda i: (0, 0)),
            pl.BlockSpec((Hm, C), lambda i: (0, 0)),
            pl.BlockSpec((1, C), lambda i: (0, 0)),
        ],
        out_specs=pl.BlockSpec((bb, C), lambda i: (i, 0)),
        compiler_params=pltpu.CompilerParams(
            dimension_semantics=("parallel",)),
    )(doc_tok, wi4, wh4, b4, w1r, params["b1"], params["w2"], params["b2"])


# ------------------------------- glue ---------------------------------------
def init_params(key):
    ks = jax.random.split(key, 10)
    s = 0.1
    return {
        "tok_emb": jax.random.normal(ks[0], (VOCAB, HIDDEN), jnp.float32) * s,
        "seg_emb": jax.random.normal(ks[1], (N_SEG, HIDDEN), jnp.float32) * s,
        "pos_emb": jax.random.normal(ks[2], (MAX_LEN, HIDDEN), jnp.float32) * s,
        "wi": jax.random.normal(ks[3], (HIDDEN, 4 * LSTM_OUT), jnp.float32) * s,
        "wh": jax.random.normal(ks[4], (LSTM_OUT, 4 * LSTM_OUT), jnp.float32) * s,
        "b_lstm": jax.random.normal(ks[5], (1, 4 * LSTM_OUT), jnp.float32) * s,
        "w1": jax.random.normal(ks[6], (MAX_LEN * LSTM_OUT, HEAD_HIDDEN), jnp.float32) * s,
        "b1": jax.random.normal(ks[7], (1, HEAD_HIDDEN), jnp.float32) * s,
        "w2": jax.random.normal(ks[8], (HEAD_HIDDEN, NUM_CLASS), jnp.float32) * s,
        "b2": jax.random.normal(ks[9], (1, NUM_CLASS), jnp.float32) * s,
    }


def gen_attention_mask(token_ids, valid_length):
    T = token_ids.shape[1]
    pos = jnp.arange(T)[None, :]
    return (pos < valid_length[:, None]).astype(jnp.float32)


def bert_stub(params, token_ids, segment_ids, attention_mask):
    # TODO(synk): the external `bert` submodule (full transformer encoder) has no in-script
    # equivalent; stand-in is a deterministic embedding sum masked by the attention mask,
    # producing doc_tok of shape (B, T, HIDDEN).
    emb = (params["tok_emb"][token_ids]
           + params["seg_emb"][segment_ids]
           + params["pos_emb"][None, :, :])
    return emb * attention_mask[:, :, None]


def bert_classifier_forward(params, token_ids, valid_length, segment_ids):
    attention_mask = gen_attention_mask(token_ids, valid_length)
    doc_tok = bert_stub(params, token_ids, segment_ids, attention_mask)  # (B, T, H)
    # dr_rate=None -> dropout skipped (eval-mode identity)
    return fused_forward(doc_tok, params)                                # (B, NUM_CLASS)


# pure-JAX reference for correctness check (uses the original, unsplit parameters)
def reference_forward(params, token_ids, valid_length, segment_ids):
    attention_mask = gen_attention_mask(token_ids, valid_length)
    doc_tok = bert_stub(params, token_ids, segment_ids, attention_mask)
    H = LSTM_OUT
    B = doc_tok.shape[0]

    def step(carry, x_t):
        h, c = carry
        gates = x_t @ params["wi"] + h @ params["wh"] + params["b_lstm"][0]
        i = jax.nn.sigmoid(gates[:, :H])
        f = jax.nn.sigmoid(gates[:, H:2 * H])
        g = jnp.tanh(gates[:, 2 * H:3 * H])
        o = jax.nn.sigmoid(gates[:, 3 * H:])
        c = f * c + i * g
        h = o * jnp.tanh(c)
        return (h, c), h

    init = (jnp.zeros((B, H), jnp.float32), jnp.zeros((B, H), jnp.float32))
    _, hs = jax.lax.scan(step, init, jnp.transpose(doc_tok, (1, 0, 2)))
    flat = jnp.transpose(hs, (1, 0, 2)).reshape(B, -1)
    y = jnp.tanh(flat)
    h1 = y @ params["w1"] + params["b1"][0]
    logits = h1 @ params["w2"] + params["b2"][0]
    return jax.nn.softmax(logits, axis=1)


if __name__ == "__main__":
    key = jax.random.PRNGKey(0)
    pkey, dkey = jax.random.split(key)
    params = init_params(pkey)

    k1, k2 = jax.random.split(dkey)
    B = 8  # fill all 8 sublanes of a vreg
    token_ids = jax.random.randint(k1, (B, MAX_LEN), 0, VOCAB, dtype=jnp.int32)
    valid_length = jnp.array([3, 5, MAX_LEN, 2, 7, MAX_LEN, 4, 6], dtype=jnp.int32)
    segment_ids = jax.random.randint(k2, (B, MAX_LEN), 0, N_SEG, dtype=jnp.int32)

    out = bert_classifier_forward(params, token_ids, valid_length, segment_ids)
    out = jax.block_until_ready(out)

    ref = reference_forward(params, token_ids, valid_length, segment_ids)
    assert out.shape == (B, NUM_CLASS)
    # 2e-3 tolerance: pl.reciprocal(approx=True) in the softmax denominator.
    assert np.allclose(np.asarray(out), np.asarray(ref), atol=2e-3), "kernel/ref mismatch"
    print("KERNEL_OK")
</pallas_src>

<mosaic_0001>
module attributes {stable_mosaic.version = 11 : i64} {
  func.func @_fused_kernel(%arg0: i32, %arg1: memref<8x8x32xf32, #tpu.memory_space<vmem>>, %arg2: memref<4x32x32xf32, #tpu.memory_space<vmem>>, %arg3: memref<4x32x32xf32, #tpu.memory_space<vmem>>, %arg4: memref<4x1x32xf32, #tpu.memory_space<vmem>>, %arg5: memref<8x32x32xf32, #tpu.memory_space<vmem>>, %arg6: memref<1x32xf32, #tpu.memory_space<vmem>>, %arg7: memref<32x5xf32, #tpu.memory_space<vmem>>, %arg8: memref<1x5xf32, #tpu.memory_space<vmem>>, %arg9: memref<8x5xf32, #tpu.memory_space<vmem>>) attributes {dimension_semantics = [#tpu.dimension_semantics<parallel>], iteration_bounds = array<i64: 1>, scalar_prefetch = 0 : i64, scratch_operands = 0 : i64, tpu.core_type = #tpu.core_type<tc>, window_params = [{transform_indices = @transform_0, window_bounds = array<i64: 8, 8, 32>}, {pipeline_mode = #tpu.pipeline_mode<synchronous>, transform_indices = @transform_1, window_bounds = array<i64: 4, 32, 32>}, {pipeline_mode = #tpu.pipeline_mode<synchronous>, transform_indices = @transform_2, window_bounds = array<i64: 4, 32, 32>}, {pipeline_mode = #tpu.pipeline_mode<synchronous>, transform_indices = @transform_3, window_bounds = array<i64: 4, 1, 32>}, {pipeline_mode = #tpu.pipeline_mode<synchronous>, transform_indices = @transform_4, window_bounds = array<i64: 8, 32, 32>}, {pipeline_mode = #tpu.pipeline_mode<synchronous>, transform_indices = @transform_5, window_bounds = array<i64: 1, 32>}, {pipeline_mode = #tpu.pipeline_mode<synchronous>, transform_indices = @transform_6, window_bounds = array<i64: 32, 5>}, {pipeline_mode = #tpu.pipeline_mode<synchronous>, transform_indices = @transform_7, window_bounds = array<i64: 1, 5>}, {transform_indices = @transform_8, window_bounds = array<i64: 8, 5>}]} {
    %c0 = arith.constant 0 : index
    %c0_0 = arith.constant 0 : index
    %c0_1 = arith.constant 0 : index
    %0 = vector.load %arg2[%c0, %c0_0, %c0_1] : memref<4x32x32xf32, #tpu.memory_space<vmem>>, vector<1x32x32xf32>
    %1 = vector.shape_cast %0 : vector<1x32x32xf32> to vector<32x32xf32>
    %c1 = arith.constant 1 : index
    %c0_2 = arith.constant 0 : index
    %c0_3 = arith.constant 0 : index
    %2 = vector.load %arg2[%c1, %c0_2, %c0_3] : memref<4x32x32xf32, #tpu.memory_space<vmem>>, vector<1x32x32xf32>
    %3 = vector.shape_cast %2 : vector<1x32x32xf32> to vector<32x32xf32>
    %c2 = arith.constant 2 : index
    %c0_4 = arith.constant 0 : index
    %c0_5 = arith.constant 0 : index
    %4 = vector.load %arg2[%c2, %c0_4, %c0_5] : memref<4x32x32xf32, #tpu.memory_space<vmem>>, vector<1x32x32xf32>
    %5 = vector.shape_cast %4 : vector<1x32x32xf32> to vector<32x32xf32>
    %c3 = arith.constant 3 : index
    %c0_6 = arith.constant 0 : index
    %c0_7 = arith.constant 0 : index
    %6 = vector.load %arg2[%c3, %c0_6, %c0_7] : memref<4x32x32xf32, #tpu.memory_space<vmem>>, vector<1x32x32xf32>
    %7 = vector.shape_cast %6 : vector<1x32x32xf32> to vector<32x32xf32>
    %c0_8 = arith.constant 0 : index
    %c0_9 = arith.constant 0 : index
    %c0_10 = arith.constant 0 : index
    %8 = vector.load %arg3[%c0_8, %c0_9, %c0_10] : memref<4x32x32xf32, #tpu.memory_space<vmem>>, vector<1x32x32xf32>
    %9 = vector.shape_cast %8 : vector<1x32x32xf32> to vector<32x32xf32>
    %c1_11 = arith.constant 1 : index
    %c0_12 = arith.constant 0 : index
    %c0_13 = arith.constant 0 : index
    %10 = vector.load %arg3[%c1_11, %c0_12, %c0_13] : memref<4x32x32xf32, #tpu.memory_space<vmem>>, vector<1x32x32xf32>
    %11 = vector.shape_cast %10 : vector<1x32x32xf32> to vector<32x32xf32>
    %c2_14 = arith.constant 2 : index
    %c0_15 = arith.constant 0 : index
    %c0_16 = arith.constant 0 : index
    %12 = vector.load %arg3[%c2_14, %c0_15, %c0_16] : memref<4x32x32xf32, #tpu.memory_space<vmem>>, vector<1x32x32xf32>
    %13 = vector.shape_cast %12 : vector<1x32x32xf32> to vector<32x32xf32>
    %c3_17 = arith.constant 3 : index
    %c0_18 = arith.constant 0 : index
    %c0_19 = arith.constant 0 : index
    %14 = vector.load %arg3[%c3_17, %c0_18, %c0_19] : memref<4x32x32xf32, #tpu.memory_space<vmem>>, vector<1x32x32xf32>
    %15 = vector.shape_cast %14 : vector<1x32x32xf32> to vector<32x32xf32>
    %c0_20 = arith.constant 0 : index
    %c0_21 = arith.constant 0 : index
    %c0_22 = arith.constant 0 : index
    %16 = vector.load %arg4[%c0_20, %c0_21, %c0_22] : memref<4x1x32xf32, #tpu.memory_space<vmem>>, vector<1x1x32xf32>
    %17 = vector.shape_cast %16 : vector<1x1x32xf32> to vector<1x32xf32>
    %c1_23 = arith.constant 1 : index
    %c0_24 = arith.constant 0 : index
    %c0_25 = arith.constant 0 : index
    %18 = vector.load %arg4[%c1_23, %c0_24, %c0_25] : memref<4x1x32xf32, #tpu.memory_space<vmem>>, vector<1x1x32xf32>
    %19 = vector.shape_cast %18 : vector<1x1x32xf32> to vector<1x32xf32>
    %c2_26 = arith.constant 2 : index
    %c0_27 = arith.constant 0 : index
    %c0_28 = arith.constant 0 : index
    %20 = vector.load %arg4[%c2_26, %c0_27, %c0_28] : memref<4x1x32xf32, #tpu.memory_space<vmem>>, vector<1x1x32xf32>
    %21 = vector.shape_cast %20 : vector<1x1x32xf32> to vector<1x32xf32>
    %c3_29 = arith.constant 3 : index
    %c0_30 = arith.constant 0 : index
    %c0_31 = arith.constant 0 : index
    %22 = vector.load %arg4[%c3_29, %c0_30, %c0_31] : memref<4x1x32xf32, #tpu.memory_space<vmem>>, vector<1x1x32xf32>
    %23 = vector.shape_cast %22 : vector<1x1x32xf32> to vector<1x32xf32>
    %cst = arith.constant 0.000000e+00 : f32
    %24 = vector.broadcast %cst : f32 to vector<8x32xf32>
    %cst_32 = arith.constant 0.000000e+00 : f32
    %25 = vector.broadcast %cst_32 : f32 to vector<8x32xf32>
    %cst_33 = arith.constant 0.000000e+00 : f32
    %26 = vector.broadcast %cst_33 : f32 to vector<8x32xf32>
    %c0_34 = arith.constant 0 : index
    %c0_35 = arith.constant 0 : index
    %c0_36 = arith.constant 0 : index
    %27 = vector.load %arg1[%c0_34, %c0_35, %c0_36] : memref<8x8x32xf32, #tpu.memory_space<vmem>>, vector<8x1x32xf32>
    %28 = vector.shape_cast %27 : vector<8x1x32xf32> to vector<8x32xf32>
    %cst_37 = arith.constant dense<0.000000e+00> : vector<8x32xf32>
    %29 = tpu.matmul %28, %1, %cst_37 {dimension_numbers = #tpu.dot_dimension_numbers<[1], [0], [0], [1], [0, 0, 1, 1], [], []>} : vector<8x32xf32>, vector<32x32xf32>, vector<8x32xf32> -> vector<8x32xf32>
    %cst_38 = arith.constant dense<0.000000e+00> : vector<8x32xf32>
    %30 = tpu.matmul %24, %9, %cst_38 {dimension_numbers = #tpu.dot_dimension_numbers<[1], [0], [0], [1], [0, 0, 1, 1], [], []>} : vector<8x32xf32>, vector<32x32xf32>, vector<8x32xf32> -> vector<8x32xf32>
    %31 = arith.addf %29, %30 : vector<8x32xf32>
    %32 = vector.broadcast %17 : vector<1x32xf32> to vector<8x32xf32>
    %33 = arith.addf %31, %32 : vector<8x32xf32>
    %34 = arith.negf %33 : vector<8x32xf32>
    %35 = math.exp %34 : vector<8x32xf32>
    %cst_39 = arith.constant 1.000000e+00 : f32
    %36 = vector.broadcast %cst_39 : f32 to vector<8x32xf32>
    %37 = arith.addf %36, %35 : vector<8x32xf32>
    %38 = arith.divf %36, %37 : vector<8x32xf32>
    %cst_40 = arith.constant dense<0.000000e+00> : vector<8x32xf32>
    %39 = tpu.matmul %28, %3, %cst_40 {dimension_numbers = #tpu.dot_dimension_numbers<[1], [0], [0], [1], [0, 0, 1, 1], [], []>} : vector<8x32xf32>, vector<32x32xf32>, vector<8x32xf32> -> vector<8x32xf32>
    %cst_41 = arith.constant dense<0.000000e+00> : vector<8x32xf32>
    %40 = tpu.matmul %24, %11, %cst_41 {dimension_numbers = #tpu.dot_dimension_numbers<[1], [0], [0], [1], [0, 0, 1, 1], [], []>} : vector<8x32xf32>, vector<32x32xf32>, vector<8x32xf32> -> vector<8x32xf32>
    %41 = arith.addf %39, %40 : vector<8x32xf32>
    %42 = vector.broadcast %19 : vector<1x32xf32> to vector<8x32xf32>
    %43 = arith.addf %41, %42 : vector<8x32xf32>
    %44 = arith.negf %43 : vector<8x32xf32>
    %45 = math.exp %44 : vector<8x32xf32>
    %cst_42 = arith.constant 1.000000e+00 : f32
    %46 = vector.broadcast %cst_42 : f32 to vector<8x32xf32>
    %47 = arith.addf %46, %45 : vector<8x32xf32>
    %48 = arith.divf %46, %47 : vector<8x32xf32>
    %cst_43 = arith.constant dense<0.000000e+00> : vector<8x32xf32>
    %49 = tpu.matmul %28, %5, %cst_43 {dimension_numbers = #tpu.dot_dimension_numbers<[1], [0], [0], [1], [0, 0, 1, 1], [], []>} : vector<8x32xf32>, vector<32x32xf32>, vector<8x32xf32> -> vector<8x32xf32>
    %cst_44 = arith.constant dense<0.000000e+00> : vector<8x32xf32>
    %50 = tpu.matmul %24, %13, %cst_44 {dimension_numbers = #tpu.dot_dimension_numbers<[1], [0], [0], [1], [0, 0, 1, 1], [], []>} : vector<8x32xf32>, vector<32x32xf32>, vector<8x32xf32> -> vector<8x32xf32>
    %51 = arith.addf %49, %50 : vector<8x32xf32>
    %52 = vector.broadcast %21 : vector<1x32xf32> to vector<8x32xf32>
    %53 = arith.addf %51, %52 : vector<8x32xf32>
    %54 = math.tanh %53 : vector<8x32xf32>
    %cst_45 = arith.constant dense<0.000000e+00> : vector<8x32xf32>
    %55 = tpu.matmul %28, %7, %cst_45 {dimension_numbers = #tpu.dot_dimension_numbers<[1], [0], [0], [1], [0, 0, 1, 1], [], []>} : vector<8x32xf32>, vector<32x32xf32>, vector<8x32xf32> -> vector<8x32xf32>
    %cst_46 = arith.constant dense<0.000000e+00> : vector<8x32xf32>
    %56 = tpu.matmul %24, %15, %cst_46 {dimension_numbers = #tpu.dot_dimension_numbers<[1], [0], [0], [1], [0, 0, 1, 1], [], []>} : vector<8x32xf32>, vector<32x32xf32>, vector<8x32xf32> -> vector<8x32xf32>
    %57 = arith.addf %55, %56 : vector<8x32xf32>
    %58 = vector.broadcast %23 : vector<1x32xf32> to vector<8x32xf32>
    %59 = arith.addf %57, %58 : vector<8x32xf32>
    %60 = arith.negf %59 : vector<8x32xf32>
    %61 = math.exp %60 : vector<8x32xf32>
    %cst_47 = arith.constant 1.000000e+00 : f32
    %62 = vector.broadcast %cst_47 : f32 to vector<8x32xf32>
    %63 = arith.addf %62, %61 : vector<8x32xf32>
    %64 = arith.divf %62, %63 : vector<8x32xf32>
    %65 = arith.mulf %48, %25 : vector<8x32xf32>
    %66 = arith.mulf %38, %54 : vector<8x32xf32>
    %67 = arith.addf %65, %66 : vector<8x32xf32>
    %68 = math.tanh %67 : vector<8x32xf32>
    %69 = arith.mulf %64, %68 : vector<8x32xf32>
    %70 = math.tanh %69 : vector<8x32xf32>
    %c0_48 = arith.constant 0 : index
    %c0_49 = arith.constant 0 : index
    %c0_50 = arith.constant 0 : index
    %71 = vector.load %arg5[%c0_48, %c0_49, %c0_50] : memref<8x32x32xf32, #tpu.memory_space<vmem>>, vector<1x32x32xf32>
    %72 = vector.shape_cast %71 : vector<1x32x32xf32> to vector<32x32xf32>
    %cst_51 = arith.constant dense<0.000000e+00> : vector<8x32xf32>
    %73 = tpu.matmul %70, %72, %cst_51 {dimension_numbers = #tpu.dot_dimension_numbers<[1], [0], [0], [1], [0, 0, 1, 1], [], []>} : vector<8x32xf32>, vector<32x32xf32>, vector<8x32xf32> -> vector<8x32xf32>
    %74 = arith.addf %26, %73 : vector<8x32xf32>
    %c0_52 = arith.constant 0 : index
    %c1_53 = arith.constant 1 : index
    %c0_54 = arith.constant 0 : index
    %75 = vector.load %arg1[%c0_52, %c1_53, %c0_54] : memref<8x8x32xf32, #tpu.memory_space<vmem>>, vector<8x1x32xf32>
    %76 = vector.shape_cast %75 : vector<8x1x32xf32> to vector<8x32xf32>
    %cst_55 = arith.constant dense<0.000000e+00> : vector<8x32xf32>
    %77 = tpu.matmul %76, %1, %cst_55 {dimension_numbers = #tpu.dot_dimension_numbers<[1], [0], [0], [1], [0, 0, 1, 1], [], []>} : vector<8x32xf32>, vector<32x32xf32>, vector<8x32xf32> -> vector<8x32xf32>
    %cst_56 = arith.constant dense<0.000000e+00> : vector<8x32xf32>
    %78 = tpu.matmul %69, %9, %cst_56 {dimension_numbers = #tpu.dot_dimension_numbers<[1], [0], [0], [1], [0, 0, 1, 1], [], []>} : vector<8x32xf32>, vector<32x32xf32>, vector<8x32xf32> -> vector<8x32xf32>
    %79 = arith.addf %77, %78 : vector<8x32xf32>
    %80 = vector.broadcast %17 : vector<1x32xf32> to vector<8x32xf32>
    %81 = arith.addf %79, %80 : vector<8x32xf32>
    %82 = arith.negf %81 : vector<8x32xf32>
    %83 = math.exp %82 : vector<8x32xf32>
    %cst_57 = arith.constant 1.000000e+00 : f32
    %84 = vector.broadcast %cst_57 : f32 to vector<8x32xf32>
    %85 = arith.addf %84, %83 : vector<8x32xf32>
    %86 = arith.divf %84, %85 : vector<8x32xf32>
    %cst_58 = arith.constant dense<0.000000e+00> : vector<8x32xf32>
    %87 = tpu.matmul %76, %3, %cst_58 {dimension_numbers = #tpu.dot_dimension_numbers<[1], [0], [0], [1], [0, 0, 1, 1], [], []>} : vector<8x32xf32>, vector<32x32xf32>, vector<8x32xf32> -> vector<8x32xf32>
    %cst_59 = arith.constant dense<0.000000e+00> : vector<8x32xf32>
    %88 = tpu.matmul %69, %11, %cst_59 {dimension_numbers = #tpu.dot_dimension_numbers<[1], [0], [0], [1], [0, 0, 1, 1], [], []>} : vector<8x32xf32>, vector<32x32xf32>, vector<8x32xf32> -> vector<8x32xf32>
    %89 = arith.addf %87, %88 : vector<8x32xf32>
    %90 = vector.broadcast %19 : vector<1x32xf32> to vector<8x32xf32>
    %91 = arith.addf %89, %90 : vector<8x32xf32>
    %92 = arith.negf %91 : vector<8x32xf32>
    %93 = math.exp %92 : vector<8x32xf32>
    %cst_60 = arith.constant 1.000000e+00 : f32
    %94 = vector.broadcast %cst_60 : f32 to vector<8x32xf32>
    %95 = arith.addf %94, %93 : vector<8x32xf32>
    %96 = arith.divf %94, %95 : vector<8x32xf32>
    %cst_61 = arith.constant dense<0.000000e+00> : vector<8x32xf32>
    %97 = tpu.matmul %76, %5, %cst_61 {dimension_numbers = #tpu.dot_dimension_numbers<[1], [0], [0], [1], [0, 0, 1, 1], [], []>} : vector<8x32xf32>, vector<32x32xf32>, vector<8x32xf32> -> vector<8x32xf32>
    %cst_62 = arith.constant dense<0.000000e+00> : vector<8x32xf32>
    %98 = tpu.matmul %69, %13, %cst_62 {dimension_numbers = #tpu.dot_dimension_numbers<[1], [0], [0], [1], [0, 0, 1, 1], [], []>} : vector<8x32xf32>, vector<32x32xf32>, vector<8x32xf32> -> vector<8x32xf32>
    %99 = arith.addf %97, %98 : vector<8x32xf32>
    %100 = vector.broadcast %21 : vector<1x32xf32> to vector<8x32xf32>
    %101 = arith.addf %99, %100 : vector<8x32xf32>
    %102 = math.tanh %101 : vector<8x32xf32>
    %cst_63 = arith.constant dense<0.000000e+00> : vector<8x32xf32>
    %103 = tpu.matmul %76, %7, %cst_63 {dimension_numbers = #tpu.dot_dimension_numbers<[1], [0], [0], [1], [0, 0, 1, 1], [], []>} : vector<8x32xf32>, vector<32x32xf32>, vector<8x32xf32> -> vector<8x32xf32>
    %cst_64 = arith.constant dense<0.000000e+00> : vector<8x32xf32>
    %104 = tpu.matmul %69, %15, %cst_64 {dimension_numbers = #tpu.dot_dimension_numbers<[1], [0], [0], [1], [0, 0, 1, 1], [], []>} : vector<8x32xf32>, vector<32x32xf32>, vector<8x32xf32> -> vector<8x32xf32>
    %105 = arith.addf %103, %104 : vector<8x32xf32>
    %106 = vector.broadcast %23 : vector<1x32xf32> to vector<8x32xf32>
    %107 = arith.addf %105, %106 : vector<8x32xf32>
    %108 = arith.negf %107 : vector<8x32xf32>
    %109 = math.exp %108 : vector<8x32xf32>
    %cst_65 = arith.constant 1.000000e+00 : f32
    %110 = vector.broadcast %cst_65 : f32 to vector<8x32xf32>
    %111 = arith.addf %110, %109 : vector<8x32xf32>
    %112 = arith.divf %110, %111 : vector<8x32xf32>
    %113 = arith.mulf %96, %67 : vector<8x32xf32>
    %114 = arith.mulf %86, %102 : vector<8x32xf32>
    %115 = arith.addf %113, %114 : vector<8x32xf32>
    %116 = math.tanh %115 : vector<8x32xf32>
    %117 = arith.mulf %112, %116 : vector<8x32xf32>
    %118 = math.tanh %117 : vector<8x32xf32>
    %c1_66 = arith.constant 1 : index
    %c0_67 = arith.constant 0 : index
    %c0_68 = arith.constant 0 : index
    %119 = vector.load %arg5[%c1_66, %c0_67, %c0_68] : memref<8x32x32xf32, #tpu.memory_space<vmem>>, vector<1x32x32xf32>
    %120 = vector.shape_cast %119 : vector<1x32x32xf32> to vector<32x32xf32>
    %cst_69 = arith.constant dense<0.000000e+00> : vector<8x32xf32>
    %121 = tpu.matmul %118, %120, %cst_69 {dimension_numbers = #tpu.dot_dimension_numbers<[1], [0], [0], [1], [0, 0, 1, 1], [], []>} : vector<8x32xf32>, vector<32x32xf32>, vector<8x32xf32> -> vector<8x32xf32>
    %122 = arith.addf %74, %121 : vector<8x32xf32>
    %c0_70 = arith.constant 0 : index
    %c2_71 = arith.constant 2 : index
    %c0_72 = arith.constant 0 : index
    %123 = vector.load %arg1[%c0_70, %c2_71, %c0_72] : memref<8x8x32xf32, #tpu.memory_space<vmem>>, vector<8x1x32xf32>
    %124 = vector.shape_cast %123 : vector<8x1x32xf32> to vector<8x32xf32>
    %cst_73 = arith.constant dense<0.000000e+00> : vector<8x32xf32>
    %125 = tpu.matmul %124, %1, %cst_73 {dimension_numbers = #tpu.dot_dimension_numbers<[1], [0], [0], [1], [0, 0, 1, 1], [], []>} : vector<8x32xf32>, vector<32x32xf32>, vector<8x32xf32> -> vector<8x32xf32>
    %cst_74 = arith.constant dense<0.000000e+00> : vector<8x32xf32>
    %126 = tpu.matmul %117, %9, %cst_74 {dimension_numbers = #tpu.dot_dimension_numbers<[1], [0], [0], [1], [0, 0, 1, 1], [], []>} : vector<8x32xf32>, vector<32x32xf32>, vector<8x32xf32> -> vector<8x32xf32>
    %127 = arith.addf %125, %126 : vector<8x32xf32>
    %128 = vector.broadcast %17 : vector<1x32xf32> to vector<8x32xf32>
    %129 = arith.addf %127, %128 : vector<8x32xf32>
    %130 = arith.negf %129 : vector<8x32xf32>
    %131 = math.exp %130 : vector<8x32xf32>
    %cst_75 = arith.constant 1.000000e+00 : f32
    %132 = vector.broadcast %cst_75 : f32 to vector<8x32xf32>
    %133 = arith.addf %132, %131 : vector<8x32xf32>
    %134 = arith.divf %132, %133 : vector<8x32xf32>
    %cst_76 = arith.constant dense<0.000000e+00> : vector<8x32xf32>
    %135 = tpu.matmul %124, %3, %cst_76 {dimension_numbers = #tpu.dot_dimension_numbers<[1], [0], [0], [1], [0, 0, 1, 1], [], []>} : vector<8x32xf32>, vector<32x32xf32>, vector<8x32xf32> -> vector<8x32xf32>
    %cst_77 = arith.constant dense<0.000000e+00> : vector<8x32xf32>
    %136 = tpu.matmul %117, %11, %cst_77 {dimension_numbers = #tpu.dot_dimension_numbers<[1], [0], [0], [1], [0, 0, 1, 1], [], []>} : vector<8x32xf32>, vector<32x32xf32>, vector<8x32xf32> -> vector<8x32xf32>
    %137 = arith.addf %135, %136 : vector<8x32xf32>
    %138 = vector.broadcast %19 : vector<1x32xf32> to vector<8x32xf32>
    %139 = arith.addf %137, %138 : vector<8x32xf32>
    %140 = arith.negf %139 : vector<8x32xf32>
    %141 = math.exp %140 : vector<8x32xf32>
    %cst_78 = arith.constant 1.000000e+00 : f32
    %142 = vector.broadcast %cst_78 : f32 to vector<8x32xf32>
    %143 = arith.addf %142, %141 : vector<8x32xf32>
    %144 = arith.divf %142, %143 : vector<8x32xf32>
    %cst_79 = arith.constant dense<0.000000e+00> : vector<8x32xf32>
    %145 = tpu.matmul %124, %5, %cst_79 {dimension_numbers = #tpu.dot_dimension_numbers<[1], [0], [0], [1], [0, 0, 1, 1], [], []>} : vector<8x32xf32>, vector<32x32xf32>, vector<8x32xf32> -> vector<8x32xf32>
    %cst_80 = arith.constant dense<0.000000e+00> : vector<8x32xf32>
    %146 = tpu.matmul %117, %13, %cst_80 {dimension_numbers = #tpu.dot_dimension_numbers<[1], [0], [0], [1], [0, 0, 1, 1], [], []>} : vector<8x32xf32>, vector<32x32xf32>, vector<8x32xf32> -> vector<8x32xf32>
    %147 = arith.addf %145, %146 : vector<8x32xf32>
    %148 = vector.broadcast %21 : vector<1x32xf32> to vector<8x32xf32>
    %149 = arith.addf %147, %148 : vector<8x32xf32>
    %150 = math.tanh %149 : vector<8x32xf32>
    %cst_81 = arith.constant dense<0.000000e+00> : vector<8x32xf32>
    %151 = tpu.matmul %124, %7, %cst_81 {dimension_numbers = #tpu.dot_dimension_numbers<[1], [0], [0], [1], [0, 0, 1, 1], [], []>} : vector<8x32xf32>, vector<32x32xf32>, vector<8x32xf32> -> vector<8x32xf32>
    %cst_82 = arith.constant dense<0.000000e+00> : vector<8x32xf32>
    %152 = tpu.matmul %117, %15, %cst_82 {dimension_numbers = #tpu.dot_dimension_numbers<[1], [0], [0], [1], [0, 0, 1, 1], [], []>} : vector<8x32xf32>, vector<32x32xf32>, vector<8x32xf32> -> vector<8x32xf32>
    %153 = arith.addf %151, %152 : vector<8x32xf32>
    %154 = vector.broadcast %23 : vector<1x32xf32> to vector<8x32xf32>
    %155 = arith.addf %153, %154 : vector<8x32xf32>
    %156 = arith.negf %155 : vector<8x32xf32>
    %157 = math.exp %156 : vector<8x32xf32>
    %cst_83 = arith.constant 1.000000e+00 : f32
    %158 = vector.broadcast %cst_83 : f32 to vector<8x32xf32>
    %159 = arith.addf %158, %157 : vector<8x32xf32>
    %160 = arith.divf %158, %159 : vector<8x32xf32>
    %161 = arith.mulf %144, %115 : vector<8x32xf32>
    %162 = arith.mulf %134, %150 : vector<8x32xf32>
    %163 = arith.addf %161, %162 : vector<8x32xf32>
    %164 = math.tanh %163 : vector<8x32xf32>
    %165 = arith.mulf %160, %164 : vector<8x32xf32>
    %166 = math.tanh %165 : vector<8x32xf32>
    %c2_84 = arith.constant 2 : index
    %c0_85 = arith.constant 0 : index
    %c0_86 = arith.constant 0 : index
    %167 = vector.load %arg5[%c2_84, %c0_85, %c0_86] : memref<8x32x32xf32, #tpu.memory_space<vmem>>, vector<1x32x32xf32>
    %168 = vector.shape_cast %167 : vector<1x32x32xf32> to vector<32x32xf32>
    %cst_87 = arith.constant dense<0.000000e+00> : vector<8x32xf32>
    %169 = tpu.matmul %166, %168, %cst_87 {dimension_numbers = #tpu.dot_dimension_numbers<[1], [0], [0], [1], [0, 0, 1, 1], [], []>} : vector<8x32xf32>, vector<32x32xf32>, vector<8x32xf32> -> vector<8x32xf32>
    %170 = arith.addf %122, %169 : vector<8x32xf32>
    %c0_88 = arith.constant 0 : index
    %c3_89 = arith.constant 3 : index
    %c0_90 = arith.constant 0 : index
    %171 = vector.load %arg1[%c0_88, %c3_89, %c0_90] : memref<8x8x32xf32, #tpu.memory_space<vmem>>, vector<8x1x32xf32>
    %172 = vector.shape_cast %171 : vector<8x1x32xf32> to vector<8x32xf32>
    %cst_91 = arith.constant dense<0.000000e+00> : vector<8x32xf32>
    %173 = tpu.matmul %172, %1, %cst_91 {dimension_numbers = #tpu.dot_dimension_numbers<[1], [0], [0], [1], [0, 0, 1, 1], [], []>} : vector<8x32xf32>, vector<32x32xf32>, vector<8x32xf32> -> vector<8x32xf32>
    %cst_92 = arith.constant dense<0.000000e+00> : vector<8x32xf32>
    %174 = tpu.matmul %165, %9, %cst_92 {dimension_numbers = #tpu.dot_dimension_numbers<[1], [0], [0], [1], [0, 0, 1, 1], [], []>} : vector<8x32xf32>, vector<32x32xf32>, vector<8x32xf32> -> vector<8x32xf32>
    %175 = arith.addf %173, %174 : vector<8x32xf32>
    %176 = vector.broadcast %17 : vector<1x32xf32> to vector<8x32xf32>
    %177 = arith.addf %175, %176 : vector<8x32xf32>
    %178 = arith.negf %177 : vector<8x32xf32>
    %179 = math.exp %178 : vector<8x32xf32>
    %cst_93 = arith.constant 1.000000e+00 : f32
    %180 = vector.broadcast %cst_93 : f32 to vector<8x32xf32>
    %181 = arith.addf %180, %179 : vector<8x32xf32>
    %182 = arith.divf %180, %181 : vector<8x32xf32>
    %cst_94 = arith.constant dense<0.000000e+00> : vector<8x32xf32>
    %183 = tpu.matmul %172, %3, %cst_94 {dimension_numbers = #tpu.dot_dimension_numbers<[1], [0], [0], [1], [0, 0, 1, 1], [], []>} : vector<8x32xf32>, vector<32x32xf32>, vector<8x32xf32> -> vector<8x32xf32>
    %cst_95 = arith.constant dense<0.000000e+00> : vector<8x32xf32>
    %184 = tpu.matmul %165, %11, %cst_95 {dimension_numbers = #tpu.dot_dimension_numbers<[1], [0], [0], [1], [0, 0, 1, 1], [], []>} : vector<8x32xf32>, vector<32x32xf32>, vector<8x32xf32> -> vector<8x32xf32>
    %185 = arith.addf %183, %184 : vector<8x32xf32>
    %186 = vector.broadcast %19 : vector<1x32xf32> to vector<8x32xf32>
    %187 = arith.addf %185, %186 : vector<8x32xf32>
    %188 = arith.negf %187 : vector<8x32xf32>
    %189 = math.exp %188 : vector<8x32xf32>
    %cst_96 = arith.constant 1.000000e+00 : f32
    %190 = vector.broadcast %cst_96 : f32 to vector<8x32xf32>
    %191 = arith.addf %190, %189 : vector<8x32xf32>
    %192 = arith.divf %190, %191 : vector<8x32xf32>
    %cst_97 = arith.constant dense<0.000000e+00> : vector<8x32xf32>
    %193 = tpu.matmul %172, %5, %cst_97 {dimension_numbers = #tpu.dot_dimension_numbers<[1], [0], [0], [1], [0, 0, 1, 1], [], []>} : vector<8x32xf32>, vector<32x32xf32>, vector<8x32xf32> -> vector<8x32xf32>
    %cst_98 = arith.constant dense<0.000000e+00> : vector<8x32xf32>
    %194 = tpu.matmul %165, %13, %cst_98 {dimension_numbers = #tpu.dot_dimension_numbers<[1], [0], [0], [1], [0, 0, 1, 1], [], []>} : vector<8x32xf32>, vector<32x32xf32>, vector<8x32xf32> -> vector<8x32xf32>
    %195 = arith.addf %193, %194 : vector<8x32xf32>
    %196 = vector.broadcast %21 : vector<1x32xf32> to vector<8x32xf32>
    %197 = arith.addf %195, %196 : vector<8x32xf32>
    %198 = math.tanh %197 : vector<8x32xf32>
    %cst_99 = arith.constant dense<0.000000e+00> : vector<8x32xf32>
    %199 = tpu.matmul %172, %7, %cst_99 {dimension_numbers = #tpu.dot_dimension_numbers<[1], [0], [0], [1], [0, 0, 1, 1], [], []>} : vector<8x32xf32>, vector<32x32xf32>, vector<8x32xf32> -> vector<8x32xf32>
    %cst_100 = arith.constant dense<0.000000e+00> : vector<8x32xf32>
    %200 = tpu.matmul %165, %15, %cst_100 {dimension_numbers = #tpu.dot_dimension_numbers<[1], [0], [0], [1], [0, 0, 1, 1], [], []>} : vector<8x32xf32>, vector<32x32xf32>, vector<8x32xf32> -> vector<8x32xf32>
    %201 = arith.addf %199, %200 : vector<8x32xf32>
    %202 = vector.broadcast %23 : vector<1x32xf32> to vector<8x32xf32>
    %203 = arith.addf %201, %202 : vector<8x32xf32>
    %204 = arith.negf %203 : vector<8x32xf32>
    %205 = math.exp %204 : vector<8x32xf32>
    %cst_101 = arith.constant 1.000000e+00 : f32
    %206 = vector.broadcast %cst_101 : f32 to vector<8x32xf32>
    %207 = arith.addf %206, %205 : vector<8x32xf32>
    %208 = arith.divf %206, %207 : vector<8x32xf32>
    %209 = arith.mulf %192, %163 : vector<8x32xf32>
    %210 = arith.mulf %182, %198 : vector<8x32xf32>
    %211 = arith.addf %209, %210 : vector<8x32xf32>
    %212 = math.tanh %211 : vector<8x32xf32>
    %213 = arith.mulf %208, %212 : vector<8x32xf32>
    %214 = math.tanh %213 : vector<8x32xf32>
    %c3_102 = arith.constant 3 : index
    %c0_103 = arith.constant 0 : index
    %c0_104 = arith.constant 0 : index
    %215 = vector.load %arg5[%c3_102, %c0_103, %c0_104] : memref<8x32x32xf32, #tpu.memory_space<vmem>>, vector<1x32x32xf32>
    %216 = vector.shape_cast %215 : vector<1x32x32xf32> to vector<32x32xf32>
    %cst_105 = arith.constant dense<0.000000e+00> : vector<8x32xf32>
    %217 = tpu.matmul %214, %216, %cst_105 {dimension_numbers = #tpu.dot_dimension_numbers<[1], [0], [0], [1], [0, 0, 1, 1], [], []>} : vector<8x32xf32>, vector<32x32xf32>, vector<8x32xf32> -> vector<8x32xf32>
    %218 = arith.addf %170, %217 : vector<8x32xf32>
    %c0_106 = arith.constant 0 : index
    %c4 = arith.constant 4 : index
    %c0_107 = arith.constant 0 : index
    %219 = vector.load %arg1[%c0_106, %c4, %c0_107] : memref<8x8x32xf32, #tpu.memory_space<vmem>>, vector<8x1x32xf32>
    %220 = vector.shape_cast %219 : vector<8x1x32xf32> to vector<8x32xf32>
    %cst_108 = arith.constant dense<0.000000e+00> : vector<8x32xf32>
    %221 = tpu.matmul %220, %1, %cst_108 {dimension_numbers = #tpu.dot_dimension_numbers<[1], [0], [0], [1], [0, 0, 1, 1], [], []>} : vector<8x32xf32>, vector<32x32xf32>, vector<8x32xf32> -> vector<8x32xf32>
    %cst_109 = arith.constant dense<0.000000e+00> : vector<8x32xf32>
    %222 = tpu.matmul %213, %9, %cst_109 {dimension_numbers = #tpu.dot_dimension_numbers<[1], [0], [0], [1], [0, 0, 1, 1], [], []>} : vector<8x32xf32>, vector<32x32xf32>, vector<8x32xf32> -> vector<8x32xf32>
    %223 = arith.addf %221, %222 : vector<8x32xf32>
    %224 = vector.broadcast %17 : vector<1x32xf32> to vector<8x32xf32>
    %225 = arith.addf %223, %224 : vector<8x32xf32>
    %226 = arith.negf %225 : vector<8x32xf32>
    %227 = math.exp %226 : vector<8x32xf32>
    %cst_110 = arith.constant 1.000000e+00 : f32
    %228 = vector.broadcast %cst_110 : f32 to vector<8x32xf32>
    %229 = arith.addf %228, %227 : vector<8x32xf32>
    %230 = arith.divf %228, %229 : vector<8x32xf32>
    %cst_111 = arith.constant dense<0.000000e+00> : vector<8x32xf32>
    %231 = tpu.matmul %220, %3, %cst_111 {dimension_numbers = #tpu.dot_dimension_numbers<[1], [0], [0], [1], [0, 0, 1, 1], [], []>} : vector<8x32xf32>, vector<32x32xf32>, vector<8x32xf32> -> vector<8x32xf32>
    %cst_112 = arith.constant dense<0.000000e+00> : vector<8x32xf32>
    %232 = tpu.matmul %213, %11, %cst_112 {dimension_numbers = #tpu.dot_dimension_numbers<[1], [0], [0], [1], [0, 0, 1, 1], [], []>} : vector<8x32xf32>, vector<32x32xf32>, vector<8x32xf32> -> vector<8x32xf32>
    %233 = arith.addf %231, %232 : vector<8x32xf32>
    %234 = vector.broadcast %19 : vector<1x32xf32> to vector<8x32xf32>
    %235 = arith.addf %233, %234 : vector<8x32xf32>
    %236 = arith.negf %235 : vector<8x32xf32>
    %237 = math.exp %236 : vector<8x32xf32>
    %cst_113 = arith.constant 1.000000e+00 : f32
    %238 = vector.broadcast %cst_113 : f32 to vector<8x32xf32>
    %239 = arith.addf %238, %237 : vector<8x32xf32>
    %240 = arith.divf %238, %239 : vector<8x32xf32>
    %cst_114 = arith.constant dense<0.000000e+00> : vector<8x32xf32>
    %241 = tpu.matmul %220, %5, %cst_114 {dimension_numbers = #tpu.dot_dimension_numbers<[1], [0], [0], [1], [0, 0, 1, 1], [], []>} : vector<8x32xf32>, vector<32x32xf32>, vector<8x32xf32> -> vector<8x32xf32>
    %cst_115 = arith.constant dense<0.000000e+00> : vector<8x32xf32>
    %242 = tpu.matmul %213, %13, %cst_115 {dimension_numbers = #tpu.dot_dimension_numbers<[1], [0], [0], [1], [0, 0, 1, 1], [], []>} : vector<8x32xf32>, vector<32x32xf32>, vector<8x32xf32> -> vector<8x32xf32>
    %243 = arith.addf %241, %242 : vector<8x32xf32>
    %244 = vector.broadcast %21 : vector<1x32xf32> to vector<8x32xf32>
    %245 = arith.addf %243, %244 : vector<8x32xf32>
    %246 = math.tanh %245 : vector<8x32xf32>
    %cst_116 = arith.constant dense<0.000000e+00> : vector<8x32xf32>
    %247 = tpu.matmul %220, %7, %cst_116 {dimension_numbers = #tpu.dot_dimension_numbers<[1], [0], [0], [1], [0, 0, 1, 1], [], []>} : vector<8x32xf32>, vector<32x32xf32>, vector<8x32xf32> -> vector<8x32xf32>
    %cst_117 = arith.constant dense<0.000000e+00> : vector<8x32xf32>
    %248 = tpu.matmul %213, %15, %cst_117 {dimension_numbers = #tpu.dot_dimension_numbers<[1], [0], [0], [1], [0, 0, 1, 1], [], []>} : vector<8x32xf32>, vector<32x32xf32>, vector<8x32xf32> -> vector<8x32xf32>
    %249 = arith.addf %247, %248 : vector<8x32xf32>
    %250 = vector.broadcast %23 : vector<1x32xf32> to vector<8x32xf32>
    %251 = arith.addf %249, %250 : vector<8x32xf32>
    %252 = arith.negf %251 : vector<8x32xf32>
    %253 = math.exp %252 : vector<8x32xf32>
    %cst_118 = arith.constant 1.000000e+00 : f32
    %254 = vector.broadcast %cst_118 : f32 to vector<8x32xf32>
    %255 = arith.addf %254, %253 : vector<8x32xf32>
    %256 = arith.divf %254, %255 : vector<8x32xf32>
    %257 = arith.mulf %240, %211 : vector<8x32xf32>
    %258 = arith.mulf %230, %246 : vector<8x32xf32>
    %259 = arith.addf %257, %258 : vector<8x32xf32>
    %260 = math.tanh %259 : vector<8x32xf32>
    %261 = arith.mulf %256, %260 : vector<8x32xf32>
    %262 = math.tanh %261 : vector<8x32xf32>
    %c4_119 = arith.constant 4 : index
    %c0_120 = arith.constant 0 : index
    %c0_121 = arith.constant 0 : index
    %263 = vector.load %arg5[%c4_119, %c0_120, %c0_121] : memref<8x32x32xf32, #tpu.memory_space<vmem>>, vector<1x32x32xf32>
    %264 = vector.shape_cast %263 : vector<1x32x32xf32> to vector<32x32xf32>
    %cst_122 = arith.constant dense<0.000000e+00> : vector<8x32xf32>
    %265 = tpu.matmul %262, %264, %cst_122 {dimension_numbers = #tpu.dot_dimension_numbers<[1], [0], [0], [1], [0, 0, 1, 1], [], []>} : vector<8x32xf32>, vector<32x32xf32>, vector<8x32xf32> -> vector<8x32xf32>
    %266 = arith.addf %218, %265 : vector<8x32xf32>
    %c0_123 = arith.constant 0 : index
    %c5 = arith.constant 5 : index
    %c0_124 = arith.constant 0 : index
    %267 = vector.load %arg1[%c0_123, %c5, %c0_124] : memref<8x8x32xf32, #tpu.memory_space<vmem>>, vector<8x1x32xf32>
    %268 = vector.shape_cast %267 : vector<8x1x32xf32> to vector<8x32xf32>
    %cst_125 = arith.constant dense<0.000000e+00> : vector<8x32xf32>
    %269 = tpu.matmul %268, %1, %cst_125 {dimension_numbers = #tpu.dot_dimension_numbers<[1], [0], [0], [1], [0, 0, 1, 1], [], []>} : vector<8x32xf32>, vector<32x32xf32>, vector<8x32xf32> -> vector<8x32xf32>
    %cst_126 = arith.constant dense<0.000000e+00> : vector<8x32xf32>
    %270 = tpu.matmul %261, %9, %cst_126 {dimension_numbers = #tpu.dot_dimension_numbers<[1], [0], [0], [1], [0, 0, 1, 1], [], []>} : vector<8x32xf32>, vector<32x32xf32>, vector<8x32xf32> -> vector<8x32xf32>
    %271 = arith.addf %269, %270 : vector<8x32xf32>
    %272 = vector.broadcast %17 : vector<1x32xf32> to vector<8x32xf32>
    %273 = arith.addf %271, %272 : vector<8x32xf32>
    %274 = arith.negf %273 : vector<8x32xf32>
    %275 = math.exp %274 : vector<8x32xf32>
    %cst_127 = arith.constant 1.000000e+00 : f32
    %276 = vector.broadcast %cst_127 : f32 to vector<8x32xf32>
    %277 = arith.addf %276, %275 : vector<8x32xf32>
    %278 = arith.divf %276, %277 : vector<8x32xf32>
    %cst_128 = arith.constant dense<0.000000e+00> : vector<8x32xf32>
    %279 = tpu.matmul %268, %3, %cst_128 {dimension_numbers = #tpu.dot_dimension_numbers<[1], [0], [0], [1], [0, 0, 1, 1], [], []>} : vector<8x32xf32>, vector<32x32xf32>, vector<8x32xf32> -> vector<8x32xf32>
    %cst_129 = arith.constant dense<0.000000e+00> : vector<8x32xf32>
    %280 = tpu.matmul %261, %11, %cst_129 {dimension_numbers = #tpu.dot_dimension_numbers<[1], [0], [0], [1], [0, 0, 1, 1], [], []>} : vector<8x32xf32>, vector<32x32xf32>, vector<8x32xf32> -> vector<8x32xf32>
    %281 = arith.addf %279, %280 : vector<8x32xf32>
    %282 = vector.broadcast %19 : vector<1x32xf32> to vector<8x32xf32>
    %283 = arith.addf %281, %282 : vector<8x32xf32>
    %284 = arith.negf %283 : vector<8x32xf32>
    %285 = math.exp %284 : vector<8x32xf32>
    %cst_130 = arith.constant 1.000000e+00 : f32
    %286 = vector.broadcast %cst_130 : f32 to vector<8x32xf32>
    %287 = arith.addf %286, %285 : vector<8x32xf32>
    %288 = arith.divf %286, %287 : vector<8x32xf32>
    %cst_131 = arith.constant dense<0.000000e+00> : vector<8x32xf32>
    %289 = tpu.matmul %268, %5, %cst_131 {dimension_numbers = #tpu.dot_dimension_numbers<[1], [0], [0], [1], [0, 0, 1, 1], [], []>} : vector<8x32xf32>, vector<32x32xf32>, vector<8x32xf32> -> vector<8x32xf32>
    %cst_132 = arith.constant dense<0.000000e+00> : vector<8x32xf32>
    %290 = tpu.matmul %261, %13, %cst_132 {dimension_numbers = #tpu.dot_dimension_numbers<[1], [0], [0], [1], [0, 0, 1, 1], [], []>} : vector<8x32xf32>, vector<32x32xf32>, vector<8x32xf32> -> vector<8x32xf32>
    %291 = arith.addf %289, %290 : vector<8x32xf32>
    %292 = vector.broadcast %21 : vector<1x32xf32> to vector<8x32xf32>
    %293 = arith.addf %291, %292 : vector<8x32xf32>
    %294 = math.tanh %293 : vector<8x32xf32>
    %cst_133 = arith.constant dense<0.000000e+00> : vector<8x32xf32>
    %295 = tpu.matmul %268, %7, %cst_133 {dimension_numbers = #tpu.dot_dimension_numbers<[1], [0], [0], [1], [0, 0, 1, 1], [], []>} : vector<8x32xf32>, vector<32x32xf32>, vector<8x32xf32> -> vector<8x32xf32>
    %cst_134 = arith.constant dense<0.000000e+00> : vector<8x32xf32>
    %296 = tpu.matmul %261, %15, %cst_134 {dimension_numbers = #tpu.dot_dimension_numbers<[1], [0], [0], [1], [0, 0, 1, 1], [], []>} : vector<8x32xf32>, vector<32x32xf32>, vector<8x32xf32> -> vector<8x32xf32>
    %297 = arith.addf %295, %296 : vector<8x32xf32>
    %298 = vector.broadcast %23 : vector<1x32xf32> to vector<8x32xf32>
    %299 = arith.addf %297, %298 : vector<8x32xf32>
    %300 = arith.negf %299 : vector<8x32xf32>
    %301 = math.exp %300 : vector<8x32xf32>
    %cst_135 = arith.constant 1.000000e+00 : f32
    %302 = vector.broadcast %cst_135 : f32 to vector<8x32xf32>
    %303 = arith.addf %302, %301 : vector<8x32xf32>
    %304 = arith.divf %302, %303 : vector<8x32xf32>
    %305 = arith.mulf %288, %259 : vector<8x32xf32>
    %306 = arith.mulf %278, %294 : vector<8x32xf32>
    %307 = arith.addf %305, %306 : vector<8x32xf32>
    %308 = math.tanh %307 : vector<8x32xf32>
    %309 = arith.mulf %304, %308 : vector<8x32xf32>
    %310 = math.tanh %309 : vector<8x32xf32>
    %c5_136 = arith.constant 5 : index
    %c0_137 = arith.constant 0 : index
    %c0_138 = arith.constant 0 : index
    %311 = vector.load %arg5[%c5_136, %c0_137, %c0_138] : memref<8x32x32xf32, #tpu.memory_space<vmem>>, vector<1x32x32xf32>
    %312 = vector.shape_cast %311 : vector<1x32x32xf32> to vector<32x32xf32>
    %cst_139 = arith.constant dense<0.000000e+00> : vector<8x32xf32>
    %313 = tpu.matmul %310, %312, %cst_139 {dimension_numbers = #tpu.dot_dimension_numbers<[1], [0], [0], [1], [0, 0, 1, 1], [], []>} : vector<8x32xf32>, vector<32x32xf32>, vector<8x32xf32> -> vector<8x32xf32>
    %314 = arith.addf %266, %313 : vector<8x32xf32>
    %c0_140 = arith.constant 0 : index
    %c6 = arith.constant 6 : index
    %c0_141 = arith.constant 0 : index
    %315 = vector.load %arg1[%c0_140, %c6, %c0_141] : memref<8x8x32xf32, #tpu.memory_space<vmem>>, vector<8x1x32xf32>
    %316 = vector.shape_cast %315 : vector<8x1x32xf32> to vector<8x32xf32>
    %cst_142 = arith.constant dense<0.000000e+00> : vector<8x32xf32>
    %317 = tpu.matmul %316, %1, %cst_142 {dimension_numbers = #tpu.dot_dimension_numbers<[1], [0], [0], [1], [0, 0, 1, 1], [], []>} : vector<8x32xf32>, vector<32x32xf32>, vector<8x32xf32> -> vector<8x32xf32>
    %cst_143 = arith.constant dense<0.000000e+00> : vector<8x32xf32>
    %318 = tpu.matmul %309, %9, %cst_143 {dimension_numbers = #tpu.dot_dimension_numbers<[1], [0], [0], [1], [0, 0, 1, 1], [], []>} : vector<8x32xf32>, vector<32x32xf32>, vector<8x32xf32> -> vector<8x32xf32>
    %319 = arith.addf %317, %318 : vector<8x32xf32>
    %320 = vector.broadcast %17 : vector<1x32xf32> to vector<8x32xf32>
    %321 = arith.addf %319, %320 : vector<8x32xf32>
    %322 = arith.negf %321 : vector<8x32xf32>
    %323 = math.exp %322 : vector<8x32xf32>
    %cst_144 = arith.constant 1.000000e+00 : f32
    %324 = vector.broadcast %cst_144 : f32 to vector<8x32xf32>
    %325 = arith.addf %324, %323 : vector<8x32xf32>
    %326 = arith.divf %324, %325 : vector<8x32xf32>
    %cst_145 = arith.constant dense<0.000000e+00> : vector<8x32xf32>
    %327 = tpu.matmul %316, %3, %cst_145 {dimension_numbers = #tpu.dot_dimension_numbers<[1], [0], [0], [1], [0, 0, 1, 1], [], []>} : vector<8x32xf32>, vector<32x32xf32>, vector<8x32xf32> -> vector<8x32xf32>
    %cst_146 = arith.constant dense<0.000000e+00> : vector<8x32xf32>
    %328 = tpu.matmul %309, %11, %cst_146 {dimension_numbers = #tpu.dot_dimension_numbers<[1], [0], [0], [1], [0, 0, 1, 1], [], []>} : vector<8x32xf32>, vector<32x32xf32>, vector<8x32xf32> -> vector<8x32xf32>
    %329 = arith.addf %327, %328 : vector<8x32xf32>
    %330 = vector.broadcast %19 : vector<1x32xf32> to vector<8x32xf32>
    %331 = arith.addf %329, %330 : vector<8x32xf32>
    %332 = arith.negf %331 : vector<8x32xf32>
    %333 = math.exp %332 : vector<8x32xf32>
    %cst_147 = arith.constant 1.000000e+00 : f32
    %334 = vector.broadcast %cst_147 : f32 to vector<8x32xf32>
    %335 = arith.addf %334, %333 : vector<8x32xf32>
    %336 = arith.divf %334, %335 : vector<8x32xf32>
    %cst_148 = arith.constant dense<0.000000e+00> : vector<8x32xf32>
    %337 = tpu.matmul %316, %5, %cst_148 {dimension_numbers = #tpu.dot_dimension_numbers<[1], [0], [0], [1], [0, 0, 1, 1], [], []>} : vector<8x32xf32>, vector<32x32xf32>, vector<8x32xf32> -> vector<8x32xf32>
    %cst_149 = arith.constant dense<0.000000e+00> : vector<8x32xf32>
    %338 = tpu.matmul %309, %13, %cst_149 {dimension_numbers = #tpu.dot_dimension_numbers<[1], [0], [0], [1], [0, 0, 1, 1], [], []>} : vector<8x32xf32>, vector<32x32xf32>, vector<8x32xf32> -> vector<8x32xf32>
    %339 = arith.addf %337, %338 : vector<8x32xf32>
    %340 = vector.broadcast %21 : vector<1x32xf32> to vector<8x32xf32>
    %341 = arith.addf %339, %340 : vector<8x32xf32>
    %342 = math.tanh %341 : vector<8x32xf32>
    %cst_150 = arith.constant dense<0.000000e+00> : vector<8x32xf32>
    %343 = tpu.matmul %316, %7, %cst_150 {dimension_numbers = #tpu.dot_dimension_numbers<[1], [0], [0], [1], [0, 0, 1, 1], [], []>} : vector<8x32xf32>, vector<32x32xf32>, vector<8x32xf32> -> vector<8x32xf32>
    %cst_151 = arith.constant dense<0.000000e+00> : vector<8x32xf32>
    %344 = tpu.matmul %309, %15, %cst_151 {dimension_numbers = #tpu.dot_dimension_numbers<[1], [0], [0], [1], [0, 0, 1, 1], [], []>} : vector<8x32xf32>, vector<32x32xf32>, vector<8x32xf32> -> vector<8x32xf32>
    %345 = arith.addf %343, %344 : vector<8x32xf32>
    %346 = vector.broadcast %23 : vector<1x32xf32> to vector<8x32xf32>
    %347 = arith.addf %345, %346 : vector<8x32xf32>
    %348 = arith.negf %347 : vector<8x32xf32>
    %349 = math.exp %348 : vector<8x32xf32>
    %cst_152 = arith.constant 1.000000e+00 : f32
    %350 = vector.broadcast %cst_152 : f32 to vector<8x32xf32>
    %351 = arith.addf %350, %349 : vector<8x32xf32>
    %352 = arith.divf %350, %351 : vector<8x32xf32>
    %353 = arith.mulf %336, %307 : vector<8x32xf32>
    %354 = arith.mulf %326, %342 : vector<8x32xf32>
    %355 = arith.addf %353, %354 : vector<8x32xf32>
    %356 = math.tanh %355 : vector<8x32xf32>
    %357 = arith.mulf %352, %356 : vector<8x32xf32>
    %358 = math.tanh %357 : vector<8x32xf32>
    %c6_153 = arith.constant 6 : index
    %c0_154 = arith.constant 0 : index
    %c0_155 = arith.constant 0 : index
    %359 = vector.load %arg5[%c6_153, %c0_154, %c0_155] : memref<8x32x32xf32, #tpu.memory_space<vmem>>, vector<1x32x32xf32>
    %360 = vector.shape_cast %359 : vector<1x32x32xf32> to vector<32x32xf32>
    %cst_156 = arith.constant dense<0.000000e+00> : vector<8x32xf32>
    %361 = tpu.matmul %358, %360, %cst_156 {dimension_numbers = #tpu.dot_dimension_numbers<[1], [0], [0], [1], [0, 0, 1, 1], [], []>} : vector<8x32xf32>, vector<32x32xf32>, vector<8x32xf32> -> vector<8x32xf32>
    %362 = arith.addf %314, %361 : vector<8x32xf32>
    %c0_157 = arith.constant 0 : index
    %c7 = arith.constant 7 : index
    %c0_158 = arith.constant 0 : index
    %363 = vector.load %arg1[%c0_157, %c7, %c0_158] : memref<8x8x32xf32, #tpu.memory_space<vmem>>, vector<8x1x32xf32>
    %364 = vector.shape_cast %363 : vector<8x1x32xf32> to vector<8x32xf32>
    %cst_159 = arith.constant dense<0.000000e+00> : vector<8x32xf32>
    %365 = tpu.matmul %364, %1, %cst_159 {dimension_numbers = #tpu.dot_dimension_numbers<[1], [0], [0], [1], [0, 0, 1, 1], [], []>} : vector<8x32xf32>, vector<32x32xf32>, vector<8x32xf32> -> vector<8x32xf32>
    %cst_160 = arith.constant dense<0.000000e+00> : vector<8x32xf32>
    %366 = tpu.matmul %357, %9, %cst_160 {dimension_numbers = #tpu.dot_dimension_numbers<[1], [0], [0], [1], [0, 0, 1, 1], [], []>} : vector<8x32xf32>, vector<32x32xf32>, vector<8x32xf32> -> vector<8x32xf32>
    %367 = arith.addf %365, %366 : vector<8x32xf32>
    %368 = vector.broadcast %17 : vector<1x32xf32> to vector<8x32xf32>
    %369 = arith.addf %367, %368 : vector<8x32xf32>
    %370 = arith.negf %369 : vector<8x32xf32>
    %371 = math.exp %370 : vector<8x32xf32>
    %cst_161 = arith.constant 1.000000e+00 : f32
    %372 = vector.broadcast %cst_161 : f32 to vector<8x32xf32>
    %373 = arith.addf %372, %371 : vector<8x32xf32>
    %374 = arith.divf %372, %373 : vector<8x32xf32>
    %cst_162 = arith.constant dense<0.000000e+00> : vector<8x32xf32>
    %375 = tpu.matmul %364, %3, %cst_162 {dimension_numbers = #tpu.dot_dimension_numbers<[1], [0], [0], [1], [0, 0, 1, 1], [], []>} : vector<8x32xf32>, vector<32x32xf32>, vector<8x32xf32> -> vector<8x32xf32>
    %cst_163 = arith.constant dense<0.000000e+00> : vector<8x32xf32>
    %376 = tpu.matmul %357, %11, %cst_163 {dimension_numbers = #tpu.dot_dimension_numbers<[1], [0], [0], [1], [0, 0, 1, 1], [], []>} : vector<8x32xf32>, vector<32x32xf32>, vector<8x32xf32> -> vector<8x32xf32>
    %377 = arith.addf %375, %376 : vector<8x32xf32>
    %378 = vector.broadcast %19 : vector<1x32xf32> to vector<8x32xf32>
    %379 = arith.addf %377, %378 : vector<8x32xf32>
    %380 = arith.negf %379 : vector<8x32xf32>
    %381 = math.exp %380 : vector<8x32xf32>
    %cst_164 = arith.constant 1.000000e+00 : f32
    %382 = vector.broadcast %cst_164 : f32 to vector<8x32xf32>
    %383 = arith.addf %382, %381 : vector<8x32xf32>
    %384 = arith.divf %382, %383 : vector<8x32xf32>
    %cst_165 = arith.constant dense<0.000000e+00> : vector<8x32xf32>
    %385 = tpu.matmul %364, %5, %cst_165 {dimension_numbers = #tpu.dot_dimension_numbers<[1], [0], [0], [1], [0, 0, 1, 1], [], []>} : vector<8x32xf32>, vector<32x32xf32>, vector<8x32xf32> -> vector<8x32xf32>
    %cst_166 = arith.constant dense<0.000000e+00> : vector<8x32xf32>
    %386 = tpu.matmul %357, %13, %cst_166 {dimension_numbers = #tpu.dot_dimension_numbers<[1], [0], [0], [1], [0, 0, 1, 1], [], []>} : vector<8x32xf32>, vector<32x32xf32>, vector<8x32xf32> -> vector<8x32xf32>
    %387 = arith.addf %385, %386 : vector<8x32xf32>
    %388 = vector.broadcast %21 : vector<1x32xf32> to vector<8x32xf32>
    %389 = arith.addf %387, %388 : vector<8x32xf32>
    %390 = math.tanh %389 : vector<8x32xf32>
    %cst_167 = arith.constant dense<0.000000e+00> : vector<8x32xf32>
    %391 = tpu.matmul %364, %7, %cst_167 {dimension_numbers = #tpu.dot_dimension_numbers<[1], [0], [0], [1], [0, 0, 1, 1], [], []>} : vector<8x32xf32>, vector<32x32xf32>, vector<8x32xf32> -> vector<8x32xf32>
    %cst_168 = arith.constant dense<0.000000e+00> : vector<8x32xf32>
    %392 = tpu.matmul %357, %15, %cst_168 {dimension_numbers = #tpu.dot_dimension_numbers<[1], [0], [0], [1], [0, 0, 1, 1], [], []>} : vector<8x32xf32>, vector<32x32xf32>, vector<8x32xf32> -> vector<8x32xf32>
    %393 = arith.addf %391, %392 : vector<8x32xf32>
    %394 = vector.broadcast %23 : vector<1x32xf32> to vector<8x32xf32>
    %395 = arith.addf %393, %394 : vector<8x32xf32>
    %396 = arith.negf %395 : vector<8x32xf32>
    %397 = math.exp %396 : vector<8x32xf32>
    %cst_169 = arith.constant 1.000000e+00 : f32
    %398 = vector.broadcast %cst_169 : f32 to vector<8x32xf32>
    %399 = arith.addf %398, %397 : vector<8x32xf32>
    %400 = arith.divf %398, %399 : vector<8x32xf32>
    %401 = arith.mulf %384, %355 : vector<8x32xf32>
    %402 = arith.mulf %374, %390 : vector<8x32xf32>
    %403 = arith.addf %401, %402 : vector<8x32xf32>
    %404 = math.tanh %403 : vector<8x32xf32>
    %405 = arith.mulf %400, %404 : vector<8x32xf32>
    %406 = math.tanh %405 : vector<8x32xf32>
    %c7_170 = arith.constant 7 : index
    %c0_171 = arith.constant 0 : index
    %c0_172 = arith.constant 0 : index
    %407 = vector.load %arg5[%c7_170, %c0_171, %c0_172] : memref<8x32x32xf32, #tpu.memory_space<vmem>>, vector<1x32x32xf32>
    %408 = vector.shape_cast %407 : vector<1x32x32xf32> to vector<32x32xf32>
    %cst_173 = arith.constant dense<0.000000e+00> : vector<8x32xf32>
    %409 = tpu.matmul %406, %408, %cst_173 {dimension_numbers = #tpu.dot_dimension_numbers<[1], [0], [0], [1], [0, 0, 1, 1], [], []>} : vector<8x32xf32>, vector<32x32xf32>, vector<8x32xf32> -> vector<8x32xf32>
    %410 = arith.addf %362, %409 : vector<8x32xf32>
    %c0_174 = arith.constant 0 : index
    %c0_175 = arith.constant 0 : index
    %411 = vector.load %arg6[%c0_174, %c0_175] : memref<1x32xf32, #tpu.memory_space<vmem>>, vector<1x32xf32>
    %412 = vector.broadcast %411 : vector<1x32xf32> to vector<8x32xf32>
    %413 = arith.addf %410, %412 : vector<8x32xf32>
    %c0_176 = arith.constant 0 : index
    %c0_177 = arith.constant 0 : index
    %414 = vector.load %arg7[%c0_176, %c0_177] : memref<32x5xf32, #tpu.memory_space<vmem>>, vector<32x5xf32>
    %cst_178 = arith.constant dense<0.000000e+00> : vector<8x5xf32>
    %415 = tpu.matmul %413, %414, %cst_178 {dimension_numbers = #tpu.dot_dimension_numbers<[1], [0], [0], [1], [0, 0, 1, 1], [], []>} : vector<8x32xf32>, vector<32x5xf32>, vector<8x5xf32> -> vector<8x5xf32>
    %c0_179 = arith.constant 0 : index
    %c0_180 = arith.constant 0 : index
    %416 = vector.load %arg8[%c0_179, %c0_180] : memref<1x5xf32, #tpu.memory_space<vmem>>, vector<1x5xf32>
    %417 = vector.broadcast %416 : vector<1x5xf32> to vector<8x5xf32>
    %418 = arith.addf %415, %417 : vector<8x5xf32>
    %cst_181 = arith.constant dense<0xFF800000> : vector<8xf32>
    %419 = vector.multi_reduction <maximumf>, %418, %cst_181 [1] : vector<8x5xf32> to vector<8xf32>
    %420 = vector.shape_cast %419 : vector<8xf32> to vector<8x1xf32>
    %421 = vector.broadcast %420 : vector<8x1xf32> to vector<8x5xf32>
    %422 = arith.subf %418, %421 : vector<8x5xf32>
    %423 = math.exp %422 : vector<8x5xf32>
    %cst_182 = arith.constant dense<0.000000e+00> : vector<8xf32>
    %424 = vector.multi_reduction <add>, %423, %cst_182 [1] : vector<8x5xf32> to vector<8xf32>
    %425 = vector.shape_cast %424 : vector<8xf32> to vector<8x1xf32>
    %426 = tpu.reciprocal %425 {approx = true} : vector<8x1xf32> -> vector<8x1xf32>
    %427 = vector.broadcast %426 : vector<8x1xf32> to vector<8x5xf32>
    %428 = arith.mulf %423, %427 : vector<8x5xf32>
    %c0_183 = arith.constant 0 : index
    %c0_184 = arith.constant 0 : index
    %429 = vector.load %arg9[%c0_183, %c0_184] : memref<8x5xf32, #tpu.memory_space<vmem>>, vector<8x5xf32>
    tpu.vector_store %arg9[%c0_183, %c0_184], %428 {strides = array<i32>} : memref<8x5xf32, #tpu.memory_space<vmem>>, vector<8x5xf32>,
    return
  }
  func.func @transform_0(%arg0: i32) -> (i32, i32, i32) {
    %c0_i32 = arith.constant 0 : i32
    %c0_i32_0 = arith.constant 0 : i32
    %c0_i32_1 = arith.constant 0 : i32
    return %arg0, %c0_i32, %c0_i32_0 : i32, i32, i32
  }
  func.func @transform_1(%arg0: i32) -> (i32, i32, i32) {
    %c0_i32 = arith.constant 0 : i32
    %c0_i32_0 = arith.constant 0 : i32
    %c0_i32_1 = arith.constant 0 : i32
    %c0_i32_2 = arith.constant 0 : i32
    return %c0_i32, %c0_i32_0, %c0_i32_1 : i32, i32, i32
  }
  func.func @transform_2(%arg0: i32) -> (i32, i32, i32) {
    %c0_i32 = arith.constant 0 : i32
    %c0_i32_0 = arith.constant 0 : i32
    %c0_i32_1 = arith.constant 0 : i32
    %c0_i32_2 = arith.constant 0 : i32
    return %c0_i32, %c0_i32_0, %c0_i32_1 : i32, i32, i32
  }
  func.func @transform_3(%arg0: i32) -> (i32, i32, i32) {
    %c0_i32 = arith.constant 0 : i32
    %c0_i32_0 = arith.constant 0 : i32
    %c0_i32_1 = arith.constant 0 : i32
    %c0_i32_2 = arith.constant 0 : i32
    return %c0_i32, %c0_i32_0, %c0_i32_1 : i32, i32, i32
  }
  func.func @transform_4(%arg0: i32) -> (i32, i32, i32) {
    %c0_i32 = arith.constant 0 : i32
    %c0_i32_0 = arith.constant 0 : i32
    %c0_i32_1 = arith.constant 0 : i32
    %c0_i32_2 = arith.constant 0 : i32
    return %c0_i32, %c0_i32_0, %c0_i32_1 : i32, i32, i32
  }
  func.func @transform_5(%arg0: i32) -> (i32, i32) {
    %c0_i32 = arith.constant 0 : i32
    %c0_i32_0 = arith.constant 0 : i32
    %c0_i32_1 = arith.constant 0 : i32
    return %c0_i32, %c0_i32_0 : i32, i32
  }
  func.func @transform_6(%arg0: i32) -> (i32, i32) {
    %c0_i32 = arith.constant 0 : i32
    %c0_i32_0 = arith.constant 0 : i32
    %c0_i32_1 = arith.constant 0 : i32
    return %c0_i32, %c0_i32_0 : i32, i32
  }
  func.func @transform_7(%arg0: i32) -> (i32, i32) {
    %c0_i32 = arith.constant 0 : i32
    %c0_i32_0 = arith.constant 0 : i32
    %c0_i32_1 = arith.constant 0 : i32
    return %c0_i32, %c0_i32_0 : i32, i32
  }
  func.func @transform_8(%arg0: i32) -> (i32, i32) {
    %c0_i32 = arith.constant 0 : i32
    %c0_i32_0 = arith.constant 0 : i32
    return %arg0, %c0_i32 : i32, i32
  }
}

</mosaic_0001>

<bundles_post_ra>
// kernel: tpu_custom_call.1
= control target key start
LH: loop header
LB: loop body
LE: loop exit
PB: predicated region body
PF: predicated region fallthrough
CT: control target
= control target key end

     0   :  { %13 = vsyncpa [#allocation3], 0  ;;  %s8766_s0 = inlined_call_operand.hbm [shape: f32[8,8,32], index: 0, kind: input, shape index: {}]   ;;  %s8767_s1 = inlined_call_operand.hbm [shape: f32[4,32,32], index: 1, kind: input, shape index: {}]   ;;  %s8768_s2 = inlined_call_operand.hbm [shape: f32[4,32,32], index: 2, kind: input, shape index: {}]   ;;  %s8769_s3 = inlined_call_operand.vmem [shape: f32[4,1,32], index: 3, kind: input, shape index: {}]   ;;  %s8770_s4 = inlined_call_operand.hbm [shape: f32[8,32,32], index: 4, kind: input, shape index: {}]   ;;  %s8771_s5 = inlined_call_operand.vmem [shape: f32[1,32], index: 5, kind: input, shape index: {}]   ;;  %s8772_s6 = inlined_call_operand.vmem [shape: f32[32,5], index: 6, kind: input, shape index: {}]   ;;  %s8773_s7 = inlined_call_operand.vmem [shape: f32[1,5], index: 7, kind: input, shape index: {}]   ;;  %s8774_s8 = inlined_call_operand.hbm [shape: f32[8,5], index: 8, kind: output, shape index: {}]  }
   0x1   :  { %14 = vsyncpa [#allocation6], 0 }
   0x2   :  { %15 = vsyncpa [#allocation9], 0 }
   0x3   :  { %16 = vsyncpa [#allocation4], 0  ;;  %s7893_s27 = smov [#allocation5]   ;;  %s7894_s29 = smov [#allocation2]  }
   0x4   :  { %s34_s28 = sshll.u32 %s7893_s27, 4  ;;  %s22_s30 = sshll.u32 %s7894_s29, 4  ;;  %s35_s28 = int_to_ptr.vmem [resolvable:$true] %s34_s28  ;;  %s7948_s30 = int_to_ptr.vmem [resolvable:$true] %s22_s30 }
   0x5   :  { %s7775_s11 = scalar_lea.hbm %s8767_s1, 2048 }
   0x6   :  { %p7776_p0 = scmp.ne.s32.totalorder %s8767_s1, %s7775_s11  ;;  %p7779_p1 = scmp.lt.u32.totalorder %s7775_s11, %s8767_s1 }
   0x8   :  { %p7781_p2 = pnand %p7779_p1, %p7776_p0 }
   0xa   :  { %7784 = shalt.err (!%p7781_p2)
}
   0xb   :  { %s7785_s16 = scalar_lea.vmem %s35_s28, 2048  ;;  %p7790_p4 = scmp.lt.s32.totalorder %s35_s28, %s35_s28 }
   0xc   :  { %p7786_p3 = scmp.ne.s32.totalorder %s35_s28, %s7785_s16  ;;  %p7791_p5 = scmp.lt.s32.totalorder %s7785_s16, %s7785_s16 }
   0xe   :  { %p7792_p6 = por %p7791_p5, %p7790_p4 }
  0x10   :  { %p7793_p7 = pnand %p7792_p6, %p7786_p3 }
  0x12   :  { %7796 = shalt.err (!%p7793_p7)
}
  0x13   :  { %s7895_s17 = smov 128   ;;  %s7896_s18 = smov 8  }
  0x14   :  { %40 = dma.hbm_to_vmem [thread:$0]  %s8767_s1, 2048, %s35_s28, [#allocation6], %s7895_s17, %s7895_s17, %s7896_s18  }
  0x15   :  { %s7797_s23 = scalar_lea.hbm %s8766_s0, 1024 }
  0x16   :  { %p7798_p8 = scmp.ne.s32.totalorder %s8766_s0, %s7797_s23  ;;  %p7801_p9 = scmp.lt.u32.totalorder %s7797_s23, %s8766_s0 }
  0x18   :  { %p7803_p10 = pnand %p7801_p9, %p7798_p8 }
  0x1a   :  { %7806 = shalt.err (!%p7803_p10)
}
  0x1b   :  { %s7807_s29 = scalar_lea.vmem %s7948_s30, 1024  ;;  %p7812_p12 = scmp.lt.s32.totalorder %s7948_s30, %s7948_s30 }
  0x1c   :  { %p7808_p11 = scmp.ne.s32.totalorder %s7948_s30, %s7807_s29  ;;  %p7813_p13 = scmp.lt.s32.totalorder %s7807_s29, %s7807_s29 }
  0x1e   :  { %p7814_p0 = por %p7813_p13, %p7812_p12 }
  0x20   :  { %p7815_p1 = pnand %p7814_p0, %p7808_p11 }
  0x22   :  { %7818 = shalt.err (!%p7815_p1)
}
  0x23   :  { %28 = dma.hbm_to_vmem [thread:$0]  %s8766_s0, 1024, %s7948_s30, [#allocation3], %s7895_s17, %s7895_s17, %s7896_s18  }
  0x24   :  { %s7897_s9 = smov [#allocation7]   ;;  %s7898_s11 = smov [#allocation8]  }
  0x25   :  { %s46_s10 = sshll.u32 %s7897_s9, 4  ;;  %s60_s12 = sshll.u32 %s7898_s11, 4  ;;  %s47_s10 = int_to_ptr.vmem [resolvable:$true] %s46_s10  ;;  %s7985_s12 = int_to_ptr.vmem [resolvable:$true] %s60_s12 }
  0x26   :  { %s7819_s15 = scalar_lea.hbm %s8768_s2, 2048 }
  0x27   :  { %p7820_p2 = scmp.ne.s32.totalorder %s8768_s2, %s7819_s15  ;;  %p7823_p3 = scmp.lt.u32.totalorder %s7819_s15, %s8768_s2 }
  0x29   :  { %p7825_p4 = pnand %p7823_p3, %p7820_p2 }
  0x2b   :  { %7828 = shalt.err (!%p7825_p4)
}
  0x2c   :  { %s7829_s0 = scalar_lea.vmem %s47_s10, 2048  ;;  %p7834_p6 = scmp.lt.s32.totalorder %s47_s10, %s47_s10 }
  0x2d   :  { %p7830_p5 = scmp.ne.s32.totalorder %s47_s10, %s7829_s0  ;;  %p7835_p7 = scmp.lt.s32.totalorder %s7829_s0, %s7829_s0 }
  0x2f   :  { %p7836_p8 = por %p7835_p7, %p7834_p6 }
  0x31   :  { %p7837_p9 = pnand %p7836_p8, %p7830_p5 }
  0x33   :  { %7840 = shalt.err (!%p7837_p9)
}
  0x34   :  { %52 = dma.hbm_to_vmem [thread:$0]  %s8768_s2, 2048, %s47_s10, [#allocation6], %s7895_s17, %s7895_s17, %s7896_s18  }
  0x35   :  { %s7841_s25 = scalar_lea.hbm %s8770_s4, 4096 }
  0x36   :  { %p7842_p10 = scmp.ne.s32.totalorder %s8770_s4, %s7841_s25  ;;  %p7845_p11 = scmp.lt.u32.totalorder %s7841_s25, %s8770_s4 }
  0x38   :  { %p7847_p12 = pnand %p7845_p11, %p7842_p10 }
  0x3a   :  { %7850 = shalt.err (!%p7847_p12)
}
  0x3b   :  { %s7851_s28 = scalar_lea.vmem %s7985_s12, 4096  ;;  %p7856_p0 = scmp.lt.s32.totalorder %s7985_s12, %s7985_s12 }
  0x3c   :  { %p7852_p13 = scmp.ne.s32.totalorder %s7985_s12, %s7851_s28  ;;  %p7857_p1 = scmp.lt.s32.totalorder %s7851_s28, %s7851_s28 }
  0x3e   :  { %p7858_p2 = por %p7857_p1, %p7856_p0 }
  0x40   :  { %p7859_p3 = pnand %p7858_p2, %p7852_p13 }
  0x42   :  { %7862 = shalt.err (!%p7859_p3)
}
  0x43   :  { %66 = dma.hbm_to_vmem [thread:$0]  %s8770_s4, 4096, %s7985_s12, [#allocation9], %s7895_s17, %s7895_s17, %s7896_s18  }
  0x44   :  { %7885 = dma.done.wait [#allocation3], 1024  }
  0x45   :  { %7886 = vsyncadd [#allocation3], 4294966272 }
  0x46   :  { %7887 = dma.done.wait [#allocation6], 4096  }
  0x47   :  { %7888 = vsyncadd [#allocation6], 4294963200 }
  0x48   :  { %7889 = dma.done.wait [#allocation9], 4096  }
  0x49   :  { %7890 = vsyncadd [#allocation9], 4294963200  ;;  %v7899_v0 = vmov 0.0|0.0   ;;  %vm7900_vm0 = vmmov 0   ;;  %v7901_v1 = vmov 0.0   ;;  %v104_v2 = vld [vmem:[#allocation7] sm:$0xff] }
  0x4a   :  { %7175 = vmatprep.subr.bf16.mxu0 %v7899_v0  ;;  %7181 = vmatprep.subr.bf16.mxu1 %v7899_v0  ;;  %v105_v3 = vld [vmem:[#allocation7 + $0x8] sm:$0xff]  ;;  %v85_v4 = vld [vmem:[#allocation5] sm:$0xff]  ;;  %v106_v7 = vld [vmem:[#allocation7 + $0x10] sm:$0xff]  ;;  %vm221_vm1 = vcmask 1041409   ;;  %vm224_vm2 = vcmask 1042434   ;;  %vm227_vm3 = vcmask 1043459  }
  0x4b   :  { %6380 = vmatprep.mubr.msk.f32.mxu0 %vm7900_vm0, %v7901_v1  ;;  %6391 = vmatprep.mubr.msk.f32.mxu1 %vm7900_vm0, %v7901_v1  ;;  %v8028_v5 = vpack.c.bf16 %v105_v3, %v104_v2  ;;  %v86_v6 = vld [vmem:[#allocation5 + $0x8] sm:$0xff]  ;;  %v107_v8 = vld [vmem:[#allocation7 + $0x18] sm:$0xff]  ;;  %v87_v10 = vld [vmem:[#allocation5 + $0x10] sm:$0xff]  ;;  %vm230_vm4 = vcmask 1044484   ;;  %vm233_vm5 = vcmask 1045509   ;;  %vm236_vm6 = vcmask 1046534  }
  0x4c   :  { %v8030_v9 = vpack.c.bf16 %v86_v6, %v85_v4  ;;  %v88_v11 = vld [vmem:[#allocation5 + $0x18] sm:$0xff]  ;;  %v8033_v12 = vpack.c.bf16 %v107_v8, %v106_v7  ;;  %v131_v13 = vld [vmem:[#allocation2 + $0x8] sm:$0x1]  ;;  %v132_v14 = vld [vmem:[#allocation2 + $0x10] sm:$0x1]  ;;  %vm239_vm7 = vcmask 1047559  }
  0x4d   :  { %7177 = vmatpush3.bf16.msra.mxu0 %v8028_v5  ;;  %v133_v15 = vld [vmem:[#allocation2 + $0x18] sm:$0x1]  ;;  %v8037_v16 = vpack.c.bf16 %v88_v11, %v87_v10  ;;  %v130_v17 = vld [vmem:[#allocation2] sm:$0x1]  ;;  %v135_v19 = vld [vmem:[#allocation2 + $0x28] sm:$0x1] }
  0x4e   :  { %7183 = vmatpush3.bf16.msra.mxu1 %v8030_v9  ;;  %7178 = vmatprep.subr.bf16.mxu0 %v7899_v0  ;;  %v134_v18 = vld [vmem:[#allocation2 + $0x20] sm:$0x1]  ;;  %v136_v20 = vld [vmem:[#allocation2 + $0x30] sm:$0x1]  ;;  %v220_v21 = vrot.slane %v131_v13, 7  ;;  %v223_v22 = vrot.slane %v132_v14, 6 }
  0x4f   :  { %7184 = vmatprep.subr.bf16.mxu1 %v7899_v0  ;;  %v226_v23 = vrot.slane %v133_v15, 5  ;;  %v137_v24 = vld [vmem:[#allocation2 + $0x38] sm:$0x1]  ;;  %v229_v25 = vrot.slane %v134_v18, 4  ;;  %v109_v26 = vld [vmem:[#allocation7 + $0x20] sm:$0xff]  ;;  %v110_v27 = vld [vmem:[#allocation7 + $0x28] sm:$0xff] }
  0x50   :  { %v222_v28 = vsel %vm221_vm1, %v220_v21, %v130_v17  ;;  %v232_v29 = vrot.slane %v135_v19, 3  ;;  %v8042_v30 = vpack.c.bf16 %v110_v27, %v109_v26  ;;  %v90_v31 = vld [vmem:[#allocation5 + $0x20] sm:$0xff]  ;;  %v235_v33 = vrot.slane %v136_v20, 2  ;;  %v91_v34 = vld [vmem:[#allocation5 + $0x28] sm:$0xff]  ;;  %v111_v35 = vld [vmem:[#allocation7 + $0x30] sm:$0xff] }
  0x51   :  { %7180 = vmatpush3.bf16.msra.mxu0 %v8033_v12  ;;  %v225_v32 = vsel %vm224_vm2, %v223_v22, %v222_v28  ;;  %v112_v36 = vld [vmem:[#allocation7 + $0x38] sm:$0xff]  ;;  %v238_v38 = vrot.slane %v137_v24, 1  ;;  %vm138_vm8 = vcmask 261120   ;;  %v8053_v41 = vpack.c.bf16 %v91_v34, %v90_v31  ;;  %v92_v43 = vld [vmem:[#allocation5 + $0x30] sm:$0xff]  ;;  %v114_v46 = vld [vmem:[#allocation7 + $0x40] sm:$0xff] }
  0x52   :  { %7186 = vmatpush3.bf16.msra.mxu1 %v8037_v16  ;;  %7187 = vmatprep.subr.bf16.mxu0 %v7899_v0  ;;  %v228_v37 = vsel %vm227_vm3, %v226_v23, %v225_v32  ;;  %v8055_v42 = vpack.c.bf16 %v112_v36, %v111_v35  ;;  %v93_v45 = vld [vmem:[#allocation5 + $0x38] sm:$0xff]  ;;  %v115_v47 = vld [vmem:[#allocation7 + $0x48] sm:$0xff]  ;;  %v95_v51 = vld [vmem:[#allocation5 + $0x40] sm:$0xff]  ;;  %vm5875_vm9 = vcmask 39936  }
  0x53   :  { %7193 = vmatprep.subr.bf16.mxu1 %v7899_v0  ;;  %v231_v39 = vsel %vm230_vm4, %v229_v25, %v228_v37  ;;  %v8065_v49 = vpack.c.bf16 %v93_v45, %v92_v43  ;;  %v8067_v50 = vpack.c.bf16 %v115_v47, %v114_v46  ;;  %v96_v52 = vld [vmem:[#allocation5 + $0x48] sm:$0xff]  ;;  %v116_v53 = vld [vmem:[#allocation7 + $0x50] sm:$0xff]  ;;  %v117_v54 = vld [vmem:[#allocation7 + $0x58] sm:$0xff] }
  0x54   :  { %6381 = vmatmul.mubr.f32.vlgmr.msra.gmra.mrb[0].mxu0 %v7901_v1  ;;  %v234_v40 = vsel %vm233_vm5, %v232_v29, %v231_v39  ;;  %v8076_v55 = vpack.c.bf16 %v96_v52, %v95_v51  ;;  %v8078_v56 = vpack.c.bf16 %v117_v54, %v116_v53  ;;  %v97_v57 = vld [vmem:[#allocation5 + $0x50] sm:$0xff]  ;;  %v98_v58 = vld [vmem:[#allocation5 + $0x58] sm:$0xff]  ;;  %v119_v59 = vld [vmem:[#allocation7 + $0x60] sm:$0xff] }
  0x55   :  { %7189 = vmatpush3.bf16.msra.mxu0 %v8042_v30  ;;  %6402 = vmatprep.mubr.msk.f32.mxu0 %vm7900_vm0, %v7901_v1  ;;  %v237_v44 = vsel %vm236_vm6, %v235_v33, %v234_v40  ;;  %v120_v60 = vld [vmem:[#allocation7 + $0x68] sm:$0xff]  ;;  %v8087_v61 = vpack.c.bf16 %v98_v58, %v97_v57  ;;  %v100_v63 = vld [vmem:[#allocation5 + $0x60] sm:$0xff]  ;;  %v121_v3 = vld [vmem:[#allocation7 + $0x70] sm:$0xff] }
  0x56   :  { %7190 = vmatprep.subr.bf16.mxu0 %v7899_v0  ;;  %v240_v48 = vsel %vm239_vm7, %v238_v38, %v237_v44  ;;  %v8089_v62 = vpack.c.bf16 %v120_v60, %v119_v59  ;;  %v101_v2 = vld [vmem:[#allocation5 + $0x68] sm:$0xff]  ;;  %v122_v4 = vld [vmem:[#allocation7 + $0x78] sm:$0xff]  ;;  %v102_v8 = vld [vmem:[#allocation5 + $0x70] sm:$0xff] }
  0x57   :  { %6392 = vmatmul.mubr.msk.f32.vlgmr.msra.gmra.mrb[0].mxu1 %vm138_vm8, %v240_v48  ;;  %v8098_v6 = vpack.c.bf16 %v101_v2, %v100_v63  ;;  %v8100_v7 = vpack.c.bf16 %v122_v4, %v121_v3  ;;  %v103_v10 = vld [vmem:[#allocation5 + $0x78] sm:$0xff]  ;;  %v791_v13 = vld [vmem:[#allocation2 + $0x9] sm:$0x1]  ;;  %v792_v14 = vld [vmem:[#allocation2 + $0x11] sm:$0x1] }
  0x58   :  { %7195 = vmatpush3.bf16.msra.mxu1 %v8053_v41  ;;  %6413 = vmatprep.mubr.msk.f32.mxu1 %vm7900_vm0, %v7901_v1  ;;  %v8109_v11 = vpack.c.bf16 %v103_v10, %v102_v8  ;;  %v879_v15 = vrot.slane %v791_v13, 7  ;;  %v790_v17 = vld [vmem:[#allocation2 + $0x1] sm:$0x1]  ;;  %v793_v18 = vld [vmem:[#allocation2 + $0x19] sm:$0x1]  ;;  %v881_v19 = vrot.slane %v792_v14, 6 }
  0x59   :  { %7192 = vmatpush3.bf16.msra.mxu0 %v8055_v42  ;;  %7196 = vmatprep.subr.bf16.mxu1 %v7899_v0  ;;  %v794_v20 = vld [vmem:[#allocation2 + $0x21] sm:$0x1]  ;;  %v883_v22 = vrot.slane %v793_v18, 5  ;;  %v795_v23 = vld [vmem:[#allocation2 + $0x29] sm:$0x1]  ;;  %v788_v40 = vld [vmem:[#allocation8 + $0x10] sm:$0xff] }
  0x5a   :  { %7199 = vmatprep.subr.bf16.mxu0 %v7899_v0  ;;  %v880_v21 = vsel %vm221_vm1, %v879_v15, %v790_v17  ;;  %v885_v25 = vrot.slane %v794_v20, 4  ;;  %v796_v26 = vld [vmem:[#allocation2 + $0x31] sm:$0x1]  ;;  %v887_v28 = vrot.slane %v795_v23, 3  ;;  %v797_v29 = vld [vmem:[#allocation2 + $0x39] sm:$0x1] }
  0x5b   :  { %v882_v24 = vsel %vm224_vm2, %v881_v19, %v880_v21  ;;  %v889_v32 = vrot.slane %v796_v26, 2  ;;  %v891_v34 = vrot.slane %v797_v29, 1  ;;  %v786_v37 = vld [vmem:[#allocation8] sm:$0xff]  ;;  %v787_v38 = vld [vmem:[#allocation8 + $0x8] sm:$0xff]  ;;  %v789_v43 = vld [vmem:[#allocation8 + $0x18] sm:$0xff] }
  0x5c   :  { %6403 = vmatmul.mubr.f32.vlgmr.msra.gmra.mrb[2].mxu0 %v7901_v1  ;;  %7198 = vmatpush3.bf16.msra.mxu1 %v8065_v49  ;;  %v884_v27 = vsel %vm227_vm3, %v883_v22, %v882_v24  ;;  %v7278_v39 = vpack.c.bf16 %v787_v38, %v786_v37  ;;  %v7281_v44 = vpack.c.bf16 %v789_v43, %v788_v40  ;;  %v8167_v47 = vld [vmem:[%s8769_s3] ss:$0 sm:$0xff]  ;;  %v8173_v59 = vld [vmem:[%s8769_s3 + $0x1] ss:$0 sm:$0xff]  ;;  %v8179_v13 = vld [vmem:[%s8769_s3 + $0x2] ss:$0 sm:$0xff] }
  0x5d   :  { %7201 = vmatpush3.bf16.msra.mxu0 %v8067_v50  ;;  %7205 = vmatprep.subr.bf16.mxu1 %v7899_v0  ;;  %v886_v31 = vsel %vm230_vm4, %v885_v25, %v884_v27  ;;  %v8185_v23 = vld [vmem:[%s8769_s3 + $0x3] ss:$0 sm:$0xff] }
  0x5e   :  { %7202 = vmatprep.subr.bf16.mxu0 %v7899_v0  ;;  %6424 = vmatprep.mubr.msk.f32.mxu0 %vm7900_vm0, %v7901_v1  ;;  %v888_v33 = vsel %vm233_vm5, %v887_v28, %v886_v31 }
  0x5f   :  { %6414 = vmatmul.mubr.msk.f32.vlgmr.msra.gmra.mrb[2].mxu1 %vm138_vm8, %v240_v48  ;;  %v890_v35 = vsel %vm236_vm6, %v889_v32, %v888_v33 }
  0x60   :  { %7207 = vmatpush3.bf16.msra.mxu1 %v8076_v55  ;;  %6435 = vmatprep.mubr.msk.f32.mxu1 %vm7900_vm0, %v7901_v1  ;;  %v892_v36 = vsel %vm239_vm7, %v891_v34, %v890_v35 }
  0x61   :  { %7204 = vmatpush3.bf16.msra.mxu0 %v8078_v56  ;;  %7208 = vmatprep.subr.bf16.mxu1 %v7899_v0 }
  0x62   :  { %7211 = vmatprep.subr.bf16.mxu0 %v7899_v0 }
  0x64   :  { %6425 = vmatmul.mubr.f32.vlgmr.msra.gmra.mrb[4].mxu0 %v7901_v1  ;;  %7210 = vmatpush3.bf16.msra.mxu1 %v8087_v61 }
  0x65   :  { %7213 = vmatpush3.bf16.msra.mxu0 %v8089_v62  ;;  %7217 = vmatprep.subr.bf16.mxu1 %v7899_v0 }
  0x66   :  { %7214 = vmatprep.subr.bf16.mxu0 %v7899_v0  ;;  %6446 = vmatprep.mubr.msk.f32.mxu0 %vm7900_vm0, %v7901_v1 }
  0x67   :  { %6436 = vmatmul.mubr.msk.f32.vlgmr.msra.gmra.mrb[4].mxu1 %vm138_vm8, %v240_v48 }
  0x68   :  { %7219 = vmatpush3.bf16.msra.mxu1 %v8098_v6  ;;  %6457 = vmatprep.mubr.msk.f32.mxu1 %vm7900_vm0, %v7901_v1 }
  0x69   :  { %7216 = vmatpush3.bf16.msra.mxu0 %v8100_v7  ;;  %7220 = vmatprep.subr.bf16.mxu1 %v7899_v0 }
  0x6a   :  { %7223 = vmatprep.subr.bf16.mxu0 %v7899_v0 }
  0x6c   :  { %6447 = vmatmul.mubr.f32.vlgmr.msra.gmra.mrb[6].mxu0 %v7901_v1  ;;  %7222 = vmatpush3.bf16.msra.mxu1 %v8109_v11 }
  0x6d   :  { %7225 = vmatpush3.bf16.msra.mxu0 %v8028_v5  ;;  %7229 = vmatprep.subr.bf16.mxu1 %v7899_v0 }
  0x6e   :  { %7226 = vmatprep.subr.bf16.mxu0 %v7899_v0  ;;  %6468 = vmatprep.mubr.msk.f32.mxu0 %vm7900_vm0, %v7901_v1 }
  0x6f   :  { %6458 = vmatmul.mubr.msk.f32.vlgmr.msra.gmra.mrb[6].mxu1 %vm138_vm8, %v240_v48 }
  0x70   :  { %7231 = vmatpush3.bf16.msra.mxu1 %v8030_v9  ;;  %6479 = vmatprep.mubr.msk.f32.mxu1 %vm7900_vm0, %v7901_v1 }
  0x71   :  { %7232 = vmatprep.subr.bf16.mxu1 %v7899_v0  ;;  %7228 = vmatpush3.bf16.msra.mxu0 %v8033_v12 }
  0x72   :  { %7235 = vmatprep.subr.bf16.mxu0 %v7899_v0 }
  0x74   :  { %7234 = vmatpush3.bf16.msra.mxu1 %v8037_v16 }
  0x75   :  { %7241 = vmatprep.subr.bf16.mxu1 %v7899_v0 }
  0x77   :  { %6480 = vmatmul.mubr.msk.f32.vlgmr.msra.gmra.mrb[8].mxu1 %vm138_vm8, %v892_v36 }
  0x78   :  { %7243 = vmatpush3.bf16.msra.mxu1 %v8053_v41  ;;  %6501 = vmatprep.mubr.msk.f32.mxu1 %vm7900_vm0, %v7901_v1 }
  0x79   :  { %7244 = vmatprep.subr.bf16.mxu1 %v7899_v0 }
  0x7c   :  { %7246 = vmatpush3.bf16.msra.mxu1 %v8065_v49 }
  0x7d   :  { %7253 = vmatprep.subr.bf16.mxu1 %v7899_v0 }
  0x7f   :  { %6502 = vmatmul.mubr.msk.f32.vlgmr.msra.gmra.mrb[10].mxu1 %vm138_vm8, %v892_v36 }
  0x80   :  { %7255 = vmatpush3.bf16.msra.mxu1 %v8076_v55  ;;  %6523 = vmatprep.mubr.msk.f32.mxu1 %vm7900_vm0, %v7901_v1 }
  0x81   :  { %7256 = vmatprep.subr.bf16.mxu1 %v7899_v0 }
  0x84   :  { %7258 = vmatpush3.bf16.msra.mxu1 %v8087_v61 }
  0x85   :  { %7265 = vmatprep.subr.bf16.mxu1 %v7899_v0 }
  0x87   :  { %6524 = vmatmul.mubr.msk.f32.vlgmr.msra.gmra.mrb[12].mxu1 %vm138_vm8, %v892_v36 }
  0x88   :  { %7267 = vmatpush3.bf16.msra.mxu1 %v8098_v6  ;;  %6545 = vmatprep.mubr.msk.f32.mxu1 %vm7900_vm0, %v7901_v1 }
  0x89   :  { %7268 = vmatprep.subr.bf16.mxu1 %v7899_v0 }
  0x8c   :  { %7270 = vmatpush3.bf16.msra.mxu1 %v8109_v11 }
  0x8d   :  { %7277 = vmatprep.subr.bf16.mxu1 %v7899_v0 }
  0x8f   :  { %6546 = vmatmul.mubr.msk.f32.vlgmr.msra.gmra.mrb[14].mxu1 %vm138_vm8, %v892_v36 }
  0x90   :  { %7279 = vmatpush3.bf16.msra.mxu1 %v7278_v39  ;;  %6567 = vmatprep.mubr.msk.f32.mxu1 %vm7900_vm0, %v7901_v1 }
  0x91   :  { %7280 = vmatprep.subr.bf16.mxu1 %v7899_v0 }
  0x94   :  { %7282 = vmatpush3.bf16.msra.mxu1 %v7281_v44 }
  0x95   :  { %7289 = vmatprep.subr.bf16.mxu1 %v7899_v0 }
 0x127   :  { %v208_v45 = vpop.f32.mrb[0].mxu0 }
 0x128   :  { %v6382_v46 = vpop.f32.mrb[1].mxu0 }
 0x12a   :  { %v309_v48 = vpop.f32.mrb[0].mxu1 }
 0x12b   :  { %v310_v51 = vadd.f32 %v309_v48, %v208_v45  ;;  %v6393_v52 = vpop.f32.mrb[1].mxu1 }
 0x12d   :  { %v319_v53 = vadd.f32 %v8167_v47, %v310_v51 }
 0x12f   :  { %v392_v54 = vpop.f32.mrb[2].mxu0  ;;  %v5910_v57 = vmul.f32 -1.442695, %v319_v53 }
 0x130   :  { %v6404_v58 = vpop.f32.mrb[3].mxu0 }
 0x131   :  { %7623 = vpow2.f32 %v5910_v57 }
 0x132   :  { %v462_v60 = vpop.f32.mrb[2].mxu1 }
 0x133   :  { %v463_v63 = vadd.f32 %v462_v60, %v392_v54  ;;  %v6415_v2 = vpop.f32.mrb[3].mxu1  ;;  %v1415_v60 = vld [vmem:[#allocation8 + $0x20] sm:$0xff] }
 0x134   :  { %v1417_v2 = vld [vmem:[#allocation8 + $0x30] sm:$0xff] }
 0x135   :  { %v472_v3 = vadd.f32 %v8173_v59, %v463_v63  ;;  %v1416_v63 = vld [vmem:[#allocation8 + $0x28] sm:$0xff] }
 0x137   :  { %v545_v4 = vpop.f32.mrb[4].mxu0  ;;  %v5913_v8 = vmul.f32 -1.442695, %v472_v3  ;;  %v7272_v3 = vpack.c.bf16 %v1416_v63, %v1415_v60 }
 0x138   :  { %v6426_v10 = vpop.f32.mrb[5].mxu0 }
 0x139   :  { %7625 = vpow2.f32 %v5913_v8  ;;  %v1566_v10 = vld [vmem:[#allocation2 + $0xa] sm:$0x1] }
 0x13a   :  { %v615_v14 = vpop.f32.mrb[4].mxu1 }
 0x13b   :  { %v7624_v15 = vpop.eup %7623  ;;  %v616_v17 = vadd.f32 %v615_v14, %v545_v4  ;;  %v6437_v18 = vpop.f32.mrb[5].mxu1  ;;  %v1418_v4 = vld [vmem:[#allocation8 + $0x38] sm:$0xff]  ;;  %v1567_v14 = vld [vmem:[#allocation2 + $0x12] sm:$0x1] }
 0x13c   :  { %v323_v19 = vadd.f32 1.0, %v7624_v15  ;;  %v7275_v8 = vpack.c.bf16 %v1418_v4, %v1417_v2  ;;  %v1654_v15 = vrot.slane %v1566_v10, 7  ;;  %v1568_v18 = vld [vmem:[#allocation2 + $0x1a] sm:$0x1] }
 0x13d   :  { %v625_v20 = vadd.f32 %v8179_v13, %v616_v17  ;;  %v1565_v17 = vld [vmem:[#allocation2 + $0x2] sm:$0x1] }
 0x13e   :  { %7627 = vrcp.f32 %v323_v19  ;;  %v1656_v19 = vrot.slane %v1567_v14, 6 }
 0x13f   :  { %v693_v21 = vpop.f32.mrb[6].mxu0  ;;  %7629 = vtanh.f32 %v625_v20  ;;  %v1569_v20 = vld [vmem:[#allocation2 + $0x22] sm:$0x1] }
 0x140   :  { %v6448_v22 = vpop.f32.mrb[7].mxu0 }
 0x141   :  { %v1658_v22 = vrot.slane %v1568_v18, 5 }
 0x142   :  { %v763_v24 = vpop.f32.mrb[6].mxu1 }
 0x143   :  { %v7626_v25 = vpop.eup %7625  ;;  %v764_v26 = vadd.f32 %v763_v24, %v693_v21  ;;  %v6459_v27 = vpop.f32.mrb[7].mxu1  ;;  %v1655_v21 = vsel %vm221_vm1, %v1654_v15, %v1565_v17  ;;  %v1570_v24 = vld [vmem:[#allocation2 + $0x2a] sm:$0x1] }
 0x144   :  { %v476_v28 = vadd.f32 1.0, %v7626_v25  ;;  %v1657_v25 = vsel %vm224_vm2, %v1656_v19, %v1655_v21  ;;  %v1571_v27 = vld [vmem:[#allocation2 + $0x32] sm:$0x1] }
 0x145   :  { %v773_v29 = vadd.f32 %v8185_v23, %v764_v26  ;;  %v1660_v26 = vrot.slane %v1569_v20, 4 }
 0x146   :  { %7631 = vrcp.f32 %v476_v28  ;;  %v1659_v28 = vsel %vm227_vm3, %v1658_v22, %v1657_v25 }
 0x147   :  { %v5918_v31 = vmul.f32 -1.442695, %v773_v29  ;;  %v1662_v29 = vrot.slane %v1570_v24, 3 }
 0x148   :  { %v7628_v32 = vpop.eup %7627 }
 0x149   :  { %v7630_v33 = vpop.eup %7629  ;;  %7633 = vpow2.f32 %v5918_v31  ;;  %v1572_v31 = vld [vmem:[#allocation2 + $0x3a] sm:$0x1] }
 0x14a   :  { %v781_v34 = vmul.f32 %v7630_v33, %v7628_v32  ;;  %v8222_v46 = vpop.f32.mrb[8].mxu1  ;;  %v1661_v32 = vsel %vm230_vm4, %v1660_v26, %v1659_v28  ;;  %v1664_v33 = vrot.slane %v1571_v27, 2 }
 0x14b   :  { %v6481_v48 = vpop.f32.mrb[9].mxu1 }
 0x150   :  { %v7632_v35 = vpop.eup %7631 }
 0x151   :  { %v780_v36 = vmul.f32 0.0, %v7632_v35  ;;  %v1666_v35 = vrot.slane %v1572_v31, 1 }
 0x152   :  { %v8224_v51 = vpop.f32.mrb[10].mxu1 }
 0x153   :  { %v7634_v37 = vpop.eup %7633  ;;  %v8188_v38 = vadd.f32 %v781_v34, %v780_v36  ;;  %v6503_v52 = vpop.f32.mrb[11].mxu1  ;;  %v1663_v34 = vsel %vm233_vm5, %v1662_v29, %v1661_v32 }
 0x154   :  { %v777_v39 = vadd.f32 1.0, %v7634_v37  ;;  %v1665_v36 = vsel %vm236_vm6, %v1664_v33, %v1663_v34 }
 0x155   :  { %7635 = vtanh.f32 %v8188_v38  ;;  %v1667_v37 = vsel %vm239_vm7, %v1666_v35, %v1665_v36 }
 0x156   :  { %7637 = vrcp.f32 %v777_v39 }
 0x15a   :  { %v8226_v53 = vpop.f32.mrb[12].mxu1 }
 0x15b   :  { %v6525_v54 = vpop.f32.mrb[13].mxu1 }
 0x15f   :  { %v7636_v40 = vpop.eup %7635 }
 0x160   :  { %v7638_v43 = vpop.eup %7637 }
 0x161   :  { %v784_v44 = vmul.f32 %v7638_v43, %v7636_v40 }
 0x162   :  { %v8228_v57 = vpop.f32.mrb[14].mxu1 }
 0x163   :  { %7639 = vtanh.f32 %v784_v44  ;;  %6469 = vmatmul.mubr.msk.f32.vlgmr.msra.gmra.mrb[8].mxu0 %vm138_vm8, %v784_v44  ;;  %v6547_v58 = vpop.f32.mrb[15].mxu1 }
 0x164   :  { %7237 = vmatpush3.bf16.msra.mxu0 %v8042_v30  ;;  %6490 = vmatprep.mubr.msk.f32.mxu0 %vm7900_vm0, %v7901_v1 }
 0x165   :  { %7238 = vmatprep.subr.bf16.mxu0 %v7899_v0 }
 0x168   :  { %7240 = vmatpush3.bf16.msra.mxu0 %v8055_v42 }
 0x169   :  { %7247 = vmatprep.subr.bf16.mxu0 %v7899_v0 }
 0x16b   :  { %6491 = vmatmul.mubr.msk.f32.vlgmr.msra.gmra.mrb[10].mxu0 %vm138_vm8, %v784_v44 }
 0x16c   :  { %7249 = vmatpush3.bf16.msra.mxu0 %v8067_v50  ;;  %6512 = vmatprep.mubr.msk.f32.mxu0 %vm7900_vm0, %v7901_v1 }
 0x16d   :  { %v7640_v45 = vpop.eup %7639  ;;  %7250 = vmatprep.subr.bf16.mxu0 %v7899_v0 }
 0x16e   :  { %6568 = vmatmul.mubr.msk.f32.vlgmr.msra.gmra.mrb[16].mxu1 %vm138_vm8, %v7640_v45 }
 0x16f   :  { %7291 = vmatpush3.bf16.msra.mxu1 %v8030_v9  ;;  %6589 = vmatprep.mubr.msk.f32.mxu1 %vm7900_vm0, %v7901_v1 }
 0x170   :  { %7252 = vmatpush3.bf16.msra.mxu0 %v8078_v56  ;;  %7292 = vmatprep.subr.bf16.mxu1 %v7899_v0 }
 0x171   :  { %7259 = vmatprep.subr.bf16.mxu0 %v7899_v0 }
 0x173   :  { %6513 = vmatmul.mubr.msk.f32.vlgmr.msra.gmra.mrb[12].mxu0 %vm138_vm8, %v784_v44  ;;  %7294 = vmatpush3.bf16.msra.mxu1 %v8037_v16 }
 0x174   :  { %7261 = vmatpush3.bf16.msra.mxu0 %v8089_v62  ;;  %6534 = vmatprep.mubr.msk.f32.mxu0 %vm7900_vm0, %v7901_v1 }
 0x175   :  { %7262 = vmatprep.subr.bf16.mxu0 %v7899_v0  ;;  %7301 = vmatprep.subr.bf16.mxu1 %v7899_v0 }
 0x176   :  { %6590 = vmatmul.mubr.msk.f32.vlgmr.msra.gmra.mrb[18].mxu1 %vm138_vm8, %v1667_v37 }
 0x177   :  { %7303 = vmatpush3.bf16.msra.mxu1 %v8053_v41  ;;  %6611 = vmatprep.mubr.msk.f32.mxu1 %vm7900_vm0, %v7901_v1 }
 0x178   :  { %7264 = vmatpush3.bf16.msra.mxu0 %v8100_v7  ;;  %7304 = vmatprep.subr.bf16.mxu1 %v7899_v0 }
 0x179   :  { %7271 = vmatprep.subr.bf16.mxu0 %v7899_v0 }
 0x17b   :  { %6535 = vmatmul.mubr.msk.f32.vlgmr.msra.gmra.mrb[14].mxu0 %vm138_vm8, %v784_v44  ;;  %7306 = vmatpush3.bf16.msra.mxu1 %v8065_v49 }
 0x17c   :  { %6556 = vmatprep.mubr.msk.f32.mxu0 %vm7900_vm0, %v7901_v1  ;;  %7273 = vmatpush3.bf16.msra.mxu0 %v7272_v3 }
 0x17d   :  { %7274 = vmatprep.subr.bf16.mxu0 %v7899_v0  ;;  %7313 = vmatprep.subr.bf16.mxu1 %v7899_v0 }
 0x17e   :  { %6612 = vmatmul.mubr.msk.f32.vlgmr.msra.gmra.mrb[20].mxu1 %vm138_vm8, %v1667_v37 }
 0x17f   :  { %7315 = vmatpush3.bf16.msra.mxu1 %v8076_v55  ;;  %6633 = vmatprep.mubr.msk.f32.mxu1 %vm7900_vm0, %v7901_v1 }
 0x180   :  { %7276 = vmatpush3.bf16.msra.mxu0 %v7275_v8  ;;  %7316 = vmatprep.subr.bf16.mxu1 %v7899_v0 }
 0x181   :  { %7283 = vmatprep.subr.bf16.mxu0 %v7899_v0 }
 0x183   :  { %7318 = vmatpush3.bf16.msra.mxu1 %v8087_v61 }
 0x184   :  { %7325 = vmatprep.subr.bf16.mxu1 %v7899_v0 }
 0x186   :  { %6634 = vmatmul.mubr.msk.f32.vlgmr.msra.gmra.mrb[22].mxu1 %vm138_vm8, %v1667_v37 }
 0x187   :  { %7327 = vmatpush3.bf16.msra.mxu1 %v8098_v6  ;;  %6655 = vmatprep.mubr.msk.f32.mxu1 %vm7900_vm0, %v7901_v1 }
 0x188   :  { %7328 = vmatprep.subr.bf16.mxu1 %v7899_v0 }
 0x18b   :  { %7330 = vmatpush3.bf16.msra.mxu1 %v8109_v11 }
 0x18c   :  { %7337 = vmatprep.subr.bf16.mxu1 %v7899_v0 }
 0x18e   :  { %6656 = vmatmul.mubr.msk.f32.vlgmr.msra.gmra.mrb[24].mxu1 %vm138_vm8, %v1667_v37 }
 0x18f   :  { %7339 = vmatpush3.bf16.msra.mxu1 %v8028_v5  ;;  %6677 = vmatprep.mubr.msk.f32.mxu1 %vm7900_vm0, %v7901_v1 }
 0x190   :  { %7340 = vmatprep.subr.bf16.mxu1 %v7899_v0 }
 0x193   :  { %7342 = vmatpush3.bf16.msra.mxu1 %v8033_v12 }
 0x194   :  { %7349 = vmatprep.subr.bf16.mxu1 %v7899_v0 }
 0x236   :  { %v867_v39 = vpop.f32.mrb[8].mxu0 }
 0x237   :  { %v962_v40 = vadd.f32 %v8222_v46, %v867_v39  ;;  %v6470_v43 = vpop.f32.mrb[9].mxu0 }
 0x239   :  { %v965_v44 = vadd.f32 %v8167_v47, %v962_v40 }
 0x23b   :  { %v5921_v45 = vmul.f32 -1.442695, %v965_v44  ;;  %v2190_v44 = vld [vmem:[#allocation8 + $0x40] sm:$0xff] }
 0x23d   :  { %7641 = vpow2.f32 %v5921_v45  ;;  %v2191_v45 = vld [vmem:[#allocation8 + $0x48] sm:$0xff] }
 0x23e   :  { %v1038_v48 = vpop.f32.mrb[10].mxu0 }
 0x23f   :  { %v1109_v52 = vadd.f32 %v8224_v51, %v1038_v48  ;;  %v6492_v54 = vpop.f32.mrb[11].mxu0  ;;  %v7332_v48 = vpack.c.bf16 %v2191_v45, %v2190_v44  ;;  %v2270_v44 = vld [vmem:[#allocation2 + $0x13] sm:$0x1] }
 0x240   :  { %v2193_v54 = vld [vmem:[#allocation8 + $0x58] sm:$0xff] }
 0x241   :  { %v1112_v58 = vadd.f32 %v8173_v59, %v1109_v52  ;;  %v8271_v60 = vpop.f32.mrb[16].mxu1  ;;  %v2192_v52 = vld [vmem:[#allocation8 + $0x50] sm:$0xff] }
 0x242   :  { %v6569_v63 = vpop.f32.mrb[17].mxu1 }
 0x243   :  { %v5924_v2 = vmul.f32 -1.442695, %v1112_v58  ;;  %v7335_v58 = vpack.c.bf16 %v2193_v54, %v2192_v52 }
 0x245   :  { %7643 = vpow2.f32 %v5924_v2 }
 0x246   :  { %v1185_v3 = vpop.f32.mrb[12].mxu0 }
 0x247   :  { %v7642_v4 = vpop.eup %7641  ;;  %v1256_v46 = vadd.f32 %v8226_v53, %v1185_v3  ;;  %v6514_v8 = vpop.f32.mrb[13].mxu0 }
 0x248   :  { %v969_v10 = vadd.f32 1.0, %v7642_v4 }
 0x249   :  { %v1259_v14 = vadd.f32 %v8179_v13, %v1256_v46 }
 0x24a   :  { %7645 = vrcp.f32 %v969_v10 }
 0x24b   :  { %7647 = vtanh.f32 %v1259_v14 }
 0x24e   :  { %v1327_v15 = vpop.f32.mrb[14].mxu0 }
 0x24f   :  { %v7644_v51 = vpop.eup %7643  ;;  %v1398_v17 = vadd.f32 %v8228_v57, %v1327_v15  ;;  %v6536_v18 = vpop.f32.mrb[15].mxu0 }
 0x250   :  { %v1116_v19 = vadd.f32 1.0, %v7644_v51 }
 0x251   :  { %v1401_v20 = vadd.f32 %v8185_v23, %v1398_v17 }
 0x252   :  { %7649 = vrcp.f32 %v1116_v19 }
 0x253   :  { %v5929_v21 = vmul.f32 -1.442695, %v1401_v20 }
 0x254   :  { %v7646_v22 = vpop.eup %7645 }
 0x255   :  { %v7648_v24 = vpop.eup %7647  ;;  %7651 = vpow2.f32 %v5929_v21 }
 0x256   :  { %v1409_v53 = vmul.f32 %v7648_v24, %v7646_v22 }
 0x25c   :  { %v7650_v25 = vpop.eup %7649 }
 0x25d   :  { %v1408_v26 = vmul.f32 %v7650_v25, %v8188_v38  ;;  %v1736_v38 = vpop.f32.mrb[18].mxu1 }
 0x25e   :  { %v6591_v34 = vpop.f32.mrb[19].mxu1 }
 0x25f   :  { %v7652_v27 = vpop.eup %7651  ;;  %v8278_v28 = vadd.f32 %v1409_v53, %v1408_v26  ;;  %v1883_v35 = vpop.f32.mrb[20].mxu1 }
 0x260   :  { %v1405_v29 = vadd.f32 1.0, %v7652_v27  ;;  %v6613_v36 = vpop.f32.mrb[21].mxu1 }
 0x261   :  { %7653 = vtanh.f32 %v8278_v28  ;;  %v2030_v37 = vpop.f32.mrb[22].mxu1 }
 0x262   :  { %7655 = vrcp.f32 %v1405_v29  ;;  %v6635_v39 = vpop.f32.mrb[23].mxu1 }
 0x263   :  { %v2172_v40 = vpop.f32.mrb[24].mxu1 }
 0x264   :  { %v6657_v43 = vpop.f32.mrb[25].mxu1 }
 0x26b   :  { %v7654_v57 = vpop.eup %7653 }
 0x26c   :  { %v7656_v31 = vpop.eup %7655 }
 0x26d   :  { %v1412_v32 = vmul.f32 %v7656_v31, %v7654_v57 }
 0x26f   :  { %7657 = vtanh.f32 %v1412_v32 }
 0x279   :  { %v7658_v33 = vpop.eup %7657 }
 0x27a   :  { %6557 = vmatmul.mubr.msk.f32.vlgmr.msra.gmra.mrb[16].mxu0 %vm138_vm8, %v7658_v33 }
 0x27b   :  { %7285 = vmatpush3.bf16.msra.mxu0 %v8028_v5  ;;  %6578 = vmatprep.mubr.msk.f32.mxu0 %vm7900_vm0, %v7901_v1 }
 0x27c   :  { %7286 = vmatprep.subr.bf16.mxu0 %v7899_v0 }
 0x27f   :  { %7288 = vmatpush3.bf16.msra.mxu0 %v8033_v12 }
 0x280   :  { %7295 = vmatprep.subr.bf16.mxu0 %v7899_v0 }
 0x282   :  { %6579 = vmatmul.mubr.msk.f32.vlgmr.msra.gmra.mrb[18].mxu0 %vm138_vm8, %v1412_v32 }
 0x283   :  { %7297 = vmatpush3.bf16.msra.mxu0 %v8042_v30  ;;  %6600 = vmatprep.mubr.msk.f32.mxu0 %vm7900_vm0, %v7901_v1 }
 0x284   :  { %7298 = vmatprep.subr.bf16.mxu0 %v7899_v0 }
 0x287   :  { %7300 = vmatpush3.bf16.msra.mxu0 %v8055_v42 }
 0x288   :  { %7307 = vmatprep.subr.bf16.mxu0 %v7899_v0 }
 0x28a   :  { %6601 = vmatmul.mubr.msk.f32.vlgmr.msra.gmra.mrb[20].mxu0 %vm138_vm8, %v1412_v32 }
 0x28b   :  { %7309 = vmatpush3.bf16.msra.mxu0 %v8067_v50  ;;  %6622 = vmatprep.mubr.msk.f32.mxu0 %vm7900_vm0, %v7901_v1 }
 0x28c   :  { %7310 = vmatprep.subr.bf16.mxu0 %v7899_v0 }
 0x28f   :  { %7312 = vmatpush3.bf16.msra.mxu0 %v8078_v56 }
 0x290   :  { %7319 = vmatprep.subr.bf16.mxu0 %v7899_v0 }
 0x292   :  { %6623 = vmatmul.mubr.msk.f32.vlgmr.msra.gmra.mrb[22].mxu0 %vm138_vm8, %v1412_v32 }
 0x293   :  { %7321 = vmatpush3.bf16.msra.mxu0 %v8089_v62  ;;  %6644 = vmatprep.mubr.msk.f32.mxu0 %vm7900_vm0, %v7901_v1 }
 0x294   :  { %7322 = vmatprep.subr.bf16.mxu0 %v7899_v0 }
 0x297   :  { %7324 = vmatpush3.bf16.msra.mxu0 %v8100_v7 }
 0x298   :  { %7331 = vmatprep.subr.bf16.mxu0 %v7899_v0 }
 0x29a   :  { %6645 = vmatmul.mubr.msk.f32.vlgmr.msra.gmra.mrb[24].mxu0 %vm138_vm8, %v1412_v32 }
 0x29b   :  { %6666 = vmatprep.mubr.msk.f32.mxu0 %vm7900_vm0, %v7901_v1  ;;  %7333 = vmatpush3.bf16.msra.mxu0 %v7332_v48  ;;  %v2268_v48 = vld [vmem:[#allocation2 + $0x3] sm:$0x1] }
 0x29c   :  { %7334 = vmatprep.subr.bf16.mxu0 %v7899_v0 }
 0x29f   :  { %7336 = vmatpush3.bf16.msra.mxu0 %v7335_v58  ;;  %v2271_v58 = vld [vmem:[#allocation2 + $0x1b] sm:$0x1] }
 0x2a0   :  { %7343 = vmatprep.subr.bf16.mxu0 %v7899_v0 }
 0x34d   :  { %v1488_v63 = vpop.f32.mrb[16].mxu0 }
 0x34e   :  { %v8315_v2 = vadd.f32 %v8271_v60, %v1488_v63  ;;  %v6558_v3 = vpop.f32.mrb[17].mxu0  ;;  %v2359_v63 = vrot.slane %v2270_v44, 6 }
 0x355   :  { %v1642_v4 = vpop.f32.mrb[18].mxu0 }
 0x356   :  { %v1737_v46 = vadd.f32 %v1736_v38, %v1642_v4  ;;  %v6580_v8 = vpop.f32.mrb[19].mxu0 }
 0x358   :  { %v1740_v10 = vadd.f32 %v8167_v47, %v1737_v46  ;;  %v2361_v46 = vrot.slane %v2271_v58, 5 }
 0x35a   :  { %v5934_v14 = vmul.f32 -1.442695, %v1740_v10  ;;  %v2273_v10 = vld [vmem:[#allocation2 + $0x2b] sm:$0x1] }
 0x35c   :  { %7659 = vpow2.f32 %v5934_v14 }
 0x35d   :  { %v1813_v15 = vpop.f32.mrb[20].mxu0 }
 0x35e   :  { %v1884_v51 = vadd.f32 %v1883_v35, %v1813_v15  ;;  %v6602_v17 = vpop.f32.mrb[21].mxu0 }
 0x35f   :  { %v2365_v17 = vrot.slane %v2273_v10, 3 }
 0x360   :  { %v1887_v18 = vadd.f32 %v8173_v59, %v1884_v51  ;;  %v2274_v51 = vld [vmem:[#allocation2 + $0x33] sm:$0x1] }
 0x362   :  { %v5937_v19 = vmul.f32 -1.442695, %v1887_v18 }
 0x364   :  { %7661 = vpow2.f32 %v5937_v19  ;;  %v2275_v19 = vld [vmem:[#allocation2 + $0x3b] sm:$0x1] }
 0x365   :  { %v1960_v20 = vpop.f32.mrb[22].mxu0 }
 0x366   :  { %v7660_v21 = vpop.eup %7659  ;;  %v2031_v22 = vadd.f32 %v2030_v37, %v1960_v20  ;;  %v6624_v60 = vpop.f32.mrb[23].mxu0  ;;  %v2367_v20 = vrot.slane %v2274_v51, 2 }
 0x367   :  { %v1744_v24 = vadd.f32 1.0, %v7660_v21  ;;  %v2369_v60 = vrot.slane %v2275_v19, 1 }
 0x368   :  { %v2034_v53 = vadd.f32 %v8179_v13, %v2031_v22 }
 0x369   :  { %7663 = vrcp.f32 %v1744_v24 }
 0x36a   :  { %7665 = vtanh.f32 %v2034_v53 }
 0x36d   :  { %v2102_v25 = vpop.f32.mrb[24].mxu0 }
 0x36e   :  { %v7662_v26 = vpop.eup %7661  ;;  %v2173_v27 = vadd.f32 %v2172_v40, %v2102_v25  ;;  %v6646_v29 = vpop.f32.mrb[25].mxu0  ;;  %v2269_v40 = vld [vmem:[#allocation2 + $0xb] sm:$0x1]  ;;  %v2893_v25 = vld [vmem:[#allocation8 + $0x60] sm:$0xff] }
 0x36f   :  { %v1891_v57 = vadd.f32 1.0, %v7662_v26  ;;  %v2357_v45 = vrot.slane %v2269_v40, 7  ;;  %v2894_v26 = vld [vmem:[#allocation8 + $0x68] sm:$0xff]  ;;  %v2895_v29 = vld [vmem:[#allocation8 + $0x70] sm:$0xff] }
 0x370   :  { %v2176_v31 = vadd.f32 %v8185_v23, %v2173_v27  ;;  %v7386_v27 = vpack.c.bf16 %v2894_v26, %v2893_v25 }
 0x371   :  { %7667 = vrcp.f32 %v1891_v57  ;;  %v2358_v4 = vsel %vm221_vm1, %v2357_v45, %v2268_v48  ;;  %v2896_v57 = vld [vmem:[#allocation8 + $0x78] sm:$0xff] }
 0x372   :  { %v5942_v32 = vmul.f32 -1.442695, %v2176_v31  ;;  %v2360_v8 = vsel %vm224_vm2, %v2359_v63, %v2358_v4  ;;  %v7389_v31 = vpack.c.bf16 %v2896_v57, %v2895_v29 }
 0x373   :  { %v7664_v33 = vpop.eup %7663  ;;  %v2362_v15 = vsel %vm227_vm3, %v2361_v46, %v2360_v8 }
 0x374   :  { %v7666_v38 = vpop.eup %7665  ;;  %7669 = vpow2.f32 %v5942_v32 }
 0x375   :  { %v2184_v34 = vmul.f32 %v7666_v38, %v7664_v33 }
 0x37b   :  { %v7668_v35 = vpop.eup %7667 }
 0x37c   :  { %v2183_v36 = vmul.f32 %v7668_v35, %v8278_v28  ;;  %v2272_v28 = vld [vmem:[#allocation2 + $0x23] sm:$0x1] }
 0x37d   :  { %v2363_v14 = vrot.slane %v2272_v28, 4 }
 0x37e   :  { %v7670_v37 = vpop.eup %7669  ;;  %v8322_v39 = vadd.f32 %v2184_v34, %v2183_v36 }
 0x37f   :  { %v2180_v43 = vadd.f32 1.0, %v7670_v37  ;;  %v2364_v18 = vsel %vm230_vm4, %v2363_v14, %v2362_v15 }
 0x380   :  { %7671 = vtanh.f32 %v8322_v39  ;;  %v2366_v22 = vsel %vm233_vm5, %v2365_v17, %v2364_v18 }
 0x381   :  { %7673 = vrcp.f32 %v2180_v43  ;;  %v2368_v24 = vsel %vm236_vm6, %v2367_v20, %v2366_v22 }
 0x382   :  { %v2370_v53 = vsel %vm239_vm7, %v2369_v60, %v2368_v24 }
 0x38a   :  { %v7672_v52 = vpop.eup %7671 }
 0x38b   :  { %v7674_v54 = vpop.eup %7673 }
 0x38c   :  { %v2187_v3 = vmul.f32 %v7674_v54, %v7672_v52 }
 0x38e   :  { %7675 = vtanh.f32 %v2187_v3  ;;  %6678 = vmatmul.mubr.msk.f32.vlgmr.msra.gmra.mrb[26].mxu1 %vm138_vm8, %v2187_v3 }
 0x38f   :  { %7351 = vmatpush3.bf16.msra.mxu1 %v8042_v30  ;;  %6699 = vmatprep.mubr.msk.f32.mxu1 %vm7900_vm0, %v7901_v1 }
 0x390   :  { %7352 = vmatprep.subr.bf16.mxu1 %v7899_v0 }
 0x393   :  { %7354 = vmatpush3.bf16.msra.mxu1 %v8055_v42 }
 0x394   :  { %7361 = vmatprep.subr.bf16.mxu1 %v7899_v0 }
 0x396   :  { %6700 = vmatmul.mubr.msk.f32.vlgmr.msra.gmra.mrb[28].mxu1 %vm138_vm8, %v2187_v3 }
 0x397   :  { %7363 = vmatpush3.bf16.msra.mxu1 %v8067_v50  ;;  %6721 = vmatprep.mubr.msk.f32.mxu1 %vm7900_vm0, %v7901_v1 }
 0x398   :  { %v7676_v21 = vpop.eup %7675  ;;  %7364 = vmatprep.subr.bf16.mxu1 %v7899_v0 }
 0x399   :  { %6667 = vmatmul.mubr.msk.f32.vlgmr.msra.gmra.mrb[26].mxu0 %vm138_vm8, %v7676_v21 }
 0x39a   :  { %7345 = vmatpush3.bf16.msra.mxu0 %v8030_v9  ;;  %6688 = vmatprep.mubr.msk.f32.mxu0 %vm7900_vm0, %v7901_v1 }
 0x39b   :  { %7366 = vmatpush3.bf16.msra.mxu1 %v8078_v56  ;;  %7346 = vmatprep.subr.bf16.mxu0 %v7899_v0 }
 0x39c   :  { %7373 = vmatprep.subr.bf16.mxu1 %v7899_v0 }
 0x39e   :  { %7348 = vmatpush3.bf16.msra.mxu0 %v8037_v16  ;;  %6722 = vmatmul.mubr.msk.f32.vlgmr.msra.gmra.mrb[30].mxu1 %vm138_vm8, %v2187_v3 }
 0x39f   :  { %7375 = vmatpush3.bf16.msra.mxu1 %v8089_v62  ;;  %7355 = vmatprep.subr.bf16.mxu0 %v7899_v0 }
 0x3a0   :  { %7376 = vmatprep.subr.bf16.mxu1 %v7899_v0  ;;  %6743 = vmatprep.mubr.msk.f32.mxu1 %vm7900_vm0, %v7901_v1 }
 0x3a1   :  { %6689 = vmatmul.mubr.msk.f32.vlgmr.msra.gmra.mrb[28].mxu0 %vm138_vm8, %v2370_v53 }
 0x3a2   :  { %7357 = vmatpush3.bf16.msra.mxu0 %v8053_v41  ;;  %6710 = vmatprep.mubr.msk.f32.mxu0 %vm7900_vm0, %v7901_v1 }
 0x3a3   :  { %7378 = vmatpush3.bf16.msra.mxu1 %v8100_v7  ;;  %7358 = vmatprep.subr.bf16.mxu0 %v7899_v0 }
 0x3a4   :  { %7385 = vmatprep.subr.bf16.mxu1 %v7899_v0 }
 0x3a6   :  { %7360 = vmatpush3.bf16.msra.mxu0 %v8065_v49  ;;  %6744 = vmatmul.mubr.msk.f32.vlgmr.msra.gmra.mrb[32].mxu1 %vm138_vm8, %v2187_v3 }
 0x3a7   :  { %7367 = vmatprep.subr.bf16.mxu0 %v7899_v0  ;;  %6765 = vmatprep.mubr.msk.f32.mxu1 %vm7900_vm0, %v7901_v1 }
 0x3a8   :  { %7387 = vmatpush3.bf16.msra.mxu1 %v7386_v27 }
 0x3a9   :  { %6711 = vmatmul.mubr.msk.f32.vlgmr.msra.gmra.mrb[30].mxu0 %vm138_vm8, %v2370_v53  ;;  %7388 = vmatprep.subr.bf16.mxu1 %v7899_v0 }
 0x3aa   :  { %7369 = vmatpush3.bf16.msra.mxu0 %v8076_v55  ;;  %6732 = vmatprep.mubr.msk.f32.mxu0 %vm7900_vm0, %v7901_v1 }
 0x3ab   :  { %7370 = vmatprep.subr.bf16.mxu0 %v7899_v0 }
 0x3ac   :  { %7390 = vmatpush3.bf16.msra.mxu1 %v7389_v31 }
 0x3ad   :  { %7397 = vmatprep.subr.bf16.mxu1 %v7899_v0 }
 0x3ae   :  { %7372 = vmatpush3.bf16.msra.mxu0 %v8087_v61 }
 0x3af   :  { %7379 = vmatprep.subr.bf16.mxu0 %v7899_v0 }
 0x3b1   :  { %6733 = vmatmul.mubr.msk.f32.vlgmr.msra.gmra.mrb[32].mxu0 %vm138_vm8, %v2370_v53 }
 0x3b2   :  { %7381 = vmatpush3.bf16.msra.mxu0 %v8098_v6  ;;  %6754 = vmatprep.mubr.msk.f32.mxu0 %vm7900_vm0, %v7901_v1 }
 0x3b3   :  { %7382 = vmatprep.subr.bf16.mxu0 %v7899_v0 }
 0x3b6   :  { %7384 = vmatpush3.bf16.msra.mxu0 %v8109_v11 }
 0x3b7   :  { %7391 = vmatprep.subr.bf16.mxu0 %v7899_v0 }
 0x3b9   :  { %6755 = vmatmul.mubr.msk.f32.vlgmr.msra.gmra.mrb[34].mxu0 %vm138_vm8, %v2370_v53 }
 0x3ba   :  { %7393 = vmatpush3.bf16.msra.mxu0 %v8028_v5  ;;  %6776 = vmatprep.mubr.msk.f32.mxu0 %vm7900_vm0, %v7901_v1 }
 0x3bb   :  { %7394 = vmatprep.subr.bf16.mxu0 %v7899_v0 }
 0x3be   :  { %7396 = vmatpush3.bf16.msra.mxu0 %v8033_v12 }
 0x3bf   :  { %7403 = vmatprep.subr.bf16.mxu0 %v7899_v0 }
 0x461   :  { %v2345_v32 = vpop.f32.mrb[26].mxu1 }
 0x462   :  { %v6679_v33 = vpop.f32.mrb[27].mxu1 }
 0x463   :  { %v2973_v33 = vld [vmem:[#allocation2 + $0x14] sm:$0x1] }
 0x469   :  { %v2516_v38 = vpop.f32.mrb[28].mxu1 }
 0x46a   :  { %v6701_v34 = vpop.f32.mrb[29].mxu1 }
 0x46b   :  { %v2971_v34 = vld [vmem:[#allocation2 + $0x4] sm:$0x1] }
 0x46c   :  { %v2263_v35 = vpop.f32.mrb[26].mxu0 }
 0x46d   :  { %v8394_v36 = vadd.f32 %v2263_v35, %v8315_v2  ;;  %v6668_v37 = vpop.f32.mrb[27].mxu0 }
 0x471   :  { %v2663_v43 = vpop.f32.mrb[30].mxu1 }
 0x472   :  { %v6723_v40 = vpop.f32.mrb[31].mxu1 }
 0x473   :  { %v3062_v40 = vrot.slane %v2973_v33, 6 }
 0x474   :  { %v2439_v44 = vpop.f32.mrb[28].mxu0 }
 0x475   :  { %v2440_v45 = vadd.f32 %v2439_v44, %v2345_v32  ;;  %v6690_v48 = vpop.f32.mrb[29].mxu0  ;;  %v2972_v32 = vld [vmem:[#allocation2 + $0xc] sm:$0x1] }
 0x477   :  { %v2443_v52 = vadd.f32 %v8167_v47, %v2440_v45 }
 0x479   :  { %v5946_v54 = vmul.f32 -1.442695, %v2443_v52  ;;  %v2805_v58 = vpop.f32.mrb[32].mxu1 }
 0x47a   :  { %v6745_v63 = vpop.f32.mrb[33].mxu1 }
 0x47b   :  { %7677 = vpow2.f32 %v5946_v54  ;;  %v2976_v54 = vld [vmem:[#allocation2 + $0x2c] sm:$0x1] }
 0x47c   :  { %v2586_v3 = vpop.f32.mrb[30].mxu0 }
 0x47d   :  { %v2587_v4 = vadd.f32 %v2586_v3, %v2516_v38  ;;  %v6712_v28 = vpop.f32.mrb[31].mxu0  ;;  %v3060_v38 = vrot.slane %v2972_v32, 7  ;;  %v2977_v3 = vld [vmem:[#allocation2 + $0x34] sm:$0x1] }
 0x47f   :  { %v2590_v46 = vadd.f32 %v8173_v59, %v2587_v4  ;;  %v3061_v45 = vsel %vm221_vm1, %v3060_v38, %v2971_v34  ;;  %v3068_v4 = vrot.slane %v2976_v54, 3  ;;  %v8478_v34 = vld [vmem:[%s8769_s3] ss:$0 sm:$0xff] }
 0x480   :  { %v3063_v52 = vsel %vm224_vm2, %v3062_v40, %v3061_v45 }
 0x481   :  { %v5949_v8 = vmul.f32 -1.442695, %v2590_v46  ;;  %v2978_v46 = vld [vmem:[#allocation2 + $0x3c] sm:$0x1] }
 0x483   :  { %7679 = vpow2.f32 %v5949_v8  ;;  %v3070_v8 = vrot.slane %v2977_v3, 2 }
 0x484   :  { %v2733_v2 = vpop.f32.mrb[32].mxu0 }
 0x485   :  { %v7678_v10 = vpop.eup %7677  ;;  %v2734_v14 = vadd.f32 %v2733_v2, %v2663_v43  ;;  %v6734_v15 = vpop.f32.mrb[33].mxu0  ;;  %v2974_v43 = vld [vmem:[#allocation2 + $0x1c] sm:$0x1] }
 0x486   :  { %v2447_v51 = vadd.f32 1.0, %v7678_v10  ;;  %v3064_v48 = vrot.slane %v2974_v43, 5 }
 0x487   :  { %v2737_v17 = vadd.f32 %v8179_v13, %v2734_v14  ;;  %v3072_v14 = vrot.slane %v2978_v46, 1 }
 0x488   :  { %7681 = vrcp.f32 %v2447_v51  ;;  %v3065_v63 = vsel %vm227_vm3, %v3064_v48, %v3063_v52 }
 0x489   :  { %7683 = vtanh.f32 %v2737_v17  ;;  %v3596_v17 = vld [vmem:[#allocation8 + $0x80] sm:$0xff] }
 0x48c   :  { %v2875_v47 = vpop.f32.mrb[34].mxu0 }
 0x48d   :  { %v7680_v18 = vpop.eup %7679  ;;  %v2876_v19 = vadd.f32 %v2875_v47, %v2805_v58  ;;  %v6756_v20 = vpop.f32.mrb[35].mxu0  ;;  %v3597_v47 = vld [vmem:[#allocation8 + $0x88] sm:$0xff] }
 0x48e   :  { %v2594_v21 = vadd.f32 1.0, %v7680_v18  ;;  %v7440_v18 = vpack.c.bf16 %v3597_v47, %v3596_v17  ;;  %v3599_v20 = vld [vmem:[#allocation8 + $0x98] sm:$0xff] }
 0x48f   :  { %v2879_v22 = vadd.f32 %v8185_v23, %v2876_v19  ;;  %v3598_v19 = vld [vmem:[#allocation8 + $0x90] sm:$0xff] }
 0x490   :  { %7685 = vrcp.f32 %v2594_v21  ;;  %v7443_v21 = vpack.c.bf16 %v3599_v20, %v3598_v19 }
 0x491   :  { %v5954_v60 = vmul.f32 -1.442695, %v2879_v22 }
 0x492   :  { %v7682_v24 = vpop.eup %7681 }
 0x493   :  { %v7684_v53 = vpop.eup %7683  ;;  %7687 = vpow2.f32 %v5954_v60 }
 0x494   :  { %v2887_v25 = vmul.f32 %v7684_v53, %v7682_v24 }
 0x49a   :  { %v7686_v26 = vpop.eup %7685 }
 0x49b   :  { %v2886_v27 = vmul.f32 %v7686_v26, %v8322_v39  ;;  %v2975_v39 = vld [vmem:[#allocation2 + $0x24] sm:$0x1] }
 0x49c   :  { %v3066_v58 = vrot.slane %v2975_v39, 4 }
 0x49d   :  { %v7688_v29 = vpop.eup %7687  ;;  %v8401_v57 = vadd.f32 %v2887_v25, %v2886_v27 }
 0x49e   :  { %v2883_v31 = vadd.f32 1.0, %v7688_v29  ;;  %v3067_v28 = vsel %vm230_vm4, %v3066_v58, %v3065_v63 }
 0x49f   :  { %7689 = vtanh.f32 %v8401_v57  ;;  %v3069_v10 = vsel %vm233_vm5, %v3068_v4, %v3067_v28 }
 0x4a0   :  { %7691 = vrcp.f32 %v2883_v31  ;;  %v3071_v15 = vsel %vm236_vm6, %v3070_v8, %v3069_v10 }
 0x4a1   :  { %v3073_v51 = vsel %vm239_vm7, %v3072_v14, %v3071_v15 }
 0x4a9   :  { %v7690_v35 = vpop.eup %7689 }
 0x4aa   :  { %v7692_v37 = vpop.eup %7691 }
 0x4ab   :  { %v2890_v44 = vmul.f32 %v7692_v37, %v7690_v35 }
 0x4ad   :  { %7693 = vtanh.f32 %v2890_v44  ;;  %6777 = vmatmul.mubr.msk.f32.vlgmr.msra.gmra.mrb[36].mxu0 %vm138_vm8, %v2890_v44 }
 0x4ae   :  { %7405 = vmatpush3.bf16.msra.mxu0 %v8042_v30  ;;  %6798 = vmatprep.mubr.msk.f32.mxu0 %vm7900_vm0, %v7901_v1 }
 0x4af   :  { %7406 = vmatprep.subr.bf16.mxu0 %v7899_v0 }
 0x4b2   :  { %7408 = vmatpush3.bf16.msra.mxu0 %v8055_v42 }
 0x4b3   :  { %7415 = vmatprep.subr.bf16.mxu0 %v7899_v0 }
 0x4b5   :  { %6799 = vmatmul.mubr.msk.f32.vlgmr.msra.gmra.mrb[38].mxu0 %vm138_vm8, %v2890_v44 }
 0x4b6   :  { %7417 = vmatpush3.bf16.msra.mxu0 %v8067_v50  ;;  %6820 = vmatprep.mubr.msk.f32.mxu0 %vm7900_vm0, %v7901_v1 }
 0x4b7   :  { %v7694_v2 = vpop.eup %7693  ;;  %7418 = vmatprep.subr.bf16.mxu0 %v7899_v0 }
 0x4b8   :  { %6766 = vmatmul.mubr.msk.f32.vlgmr.msra.gmra.mrb[34].mxu1 %vm138_vm8, %v7694_v2 }
 0x4b9   :  { %7399 = vmatpush3.bf16.msra.mxu1 %v8030_v9  ;;  %6787 = vmatprep.mubr.msk.f32.mxu1 %vm7900_vm0, %v7901_v1 }
 0x4ba   :  { %7420 = vmatpush3.bf16.msra.mxu0 %v8078_v56  ;;  %7400 = vmatprep.subr.bf16.mxu1 %v7899_v0 }
 0x4bb   :  { %7427 = vmatprep.subr.bf16.mxu0 %v7899_v0 }
 0x4bd   :  { %7402 = vmatpush3.bf16.msra.mxu1 %v8037_v16  ;;  %6821 = vmatmul.mubr.msk.f32.vlgmr.msra.gmra.mrb[40].mxu0 %vm138_vm8, %v2890_v44 }
 0x4be   :  { %7429 = vmatpush3.bf16.msra.mxu0 %v8089_v62  ;;  %7409 = vmatprep.subr.bf16.mxu1 %v7899_v0 }
 0x4bf   :  { %7430 = vmatprep.subr.bf16.mxu0 %v7899_v0  ;;  %6842 = vmatprep.mubr.msk.f32.mxu0 %vm7900_vm0, %v7901_v1 }
 0x4c0   :  { %6788 = vmatmul.mubr.msk.f32.vlgmr.msra.gmra.mrb[36].mxu1 %vm138_vm8, %v3073_v51 }
 0x4c1   :  { %7411 = vmatpush3.bf16.msra.mxu1 %v8053_v41  ;;  %6809 = vmatprep.mubr.msk.f32.mxu1 %vm7900_vm0, %v7901_v1 }
 0x4c2   :  { %7432 = vmatpush3.bf16.msra.mxu0 %v8100_v7  ;;  %7412 = vmatprep.subr.bf16.mxu1 %v7899_v0 }
 0x4c3   :  { %7439 = vmatprep.subr.bf16.mxu0 %v7899_v0 }
 0x4c5   :  { %7414 = vmatpush3.bf16.msra.mxu1 %v8065_v49  ;;  %6843 = vmatmul.mubr.msk.f32.vlgmr.msra.gmra.mrb[42].mxu0 %vm138_vm8, %v2890_v44 }
 0x4c6   :  { %7421 = vmatprep.subr.bf16.mxu1 %v7899_v0  ;;  %6864 = vmatprep.mubr.msk.f32.mxu0 %vm7900_vm0, %v7901_v1 }
 0x4c7   :  { %7441 = vmatpush3.bf16.msra.mxu0 %v7440_v18 }
 0x4c8   :  { %6810 = vmatmul.mubr.msk.f32.vlgmr.msra.gmra.mrb[38].mxu1 %vm138_vm8, %v3073_v51  ;;  %7442 = vmatprep.subr.bf16.mxu0 %v7899_v0 }
 0x4c9   :  { %7423 = vmatpush3.bf16.msra.mxu1 %v8076_v55  ;;  %6831 = vmatprep.mubr.msk.f32.mxu1 %vm7900_vm0, %v7901_v1 }
 0x4ca   :  { %7424 = vmatprep.subr.bf16.mxu1 %v7899_v0 }
 0x4cb   :  { %7444 = vmatpush3.bf16.msra.mxu0 %v7443_v21  ;;  %v3675_v21 = vld [vmem:[#allocation2 + $0xd] sm:$0x1] }
 0x4cc   :  { %7451 = vmatprep.subr.bf16.mxu0 %v7899_v0 }
 0x4cd   :  { %7426 = vmatpush3.bf16.msra.mxu1 %v8087_v61 }
 0x4ce   :  { %7433 = vmatprep.subr.bf16.mxu1 %v7899_v0 }
 0x4d0   :  { %6832 = vmatmul.mubr.msk.f32.vlgmr.msra.gmra.mrb[40].mxu1 %vm138_vm8, %v3073_v51 }
 0x4d1   :  { %7435 = vmatpush3.bf16.msra.mxu1 %v8098_v6  ;;  %6853 = vmatprep.mubr.msk.f32.mxu1 %vm7900_vm0, %v7901_v1 }
 0x4d2   :  { %7436 = vmatprep.subr.bf16.mxu1 %v7899_v0 }
 0x4d5   :  { %7438 = vmatpush3.bf16.msra.mxu1 %v8109_v11 }
 0x4d6   :  { %7445 = vmatprep.subr.bf16.mxu1 %v7899_v0 }
 0x4d8   :  { %6854 = vmatmul.mubr.msk.f32.vlgmr.msra.gmra.mrb[42].mxu1 %vm138_vm8, %v3073_v51 }
 0x4d9   :  { %7447 = vmatpush3.bf16.msra.mxu1 %v8028_v5  ;;  %6875 = vmatprep.mubr.msk.f32.mxu1 %vm7900_vm0, %v7901_v1 }
 0x4da   :  { %7448 = vmatprep.subr.bf16.mxu1 %v7899_v0 }
 0x4dd   :  { %7450 = vmatpush3.bf16.msra.mxu1 %v8033_v12 }
 0x4de   :  { %7457 = vmatprep.subr.bf16.mxu1 %v7899_v0 }
 0x580   :  { %v3048_v22 = vpop.f32.mrb[36].mxu0 }
 0x581   :  { %v6778_v60 = vpop.f32.mrb[37].mxu0 }
 0x582   :  { %v3763_v60 = vrot.slane %v3675_v21, 7 }
 0x588   :  { %v3219_v24 = vpop.f32.mrb[38].mxu0 }
 0x589   :  { %v6800_v53 = vpop.f32.mrb[39].mxu0 }
 0x58b   :  { %v2966_v25 = vpop.f32.mrb[34].mxu1 }
 0x58c   :  { %v8473_v26 = vadd.f32 %v2966_v25, %v8394_v36  ;;  %v6767_v27 = vpop.f32.mrb[35].mxu1  ;;  %v3677_v25 = vld [vmem:[#allocation2 + $0x1d] sm:$0x1] }
 0x590   :  { %v3366_v29 = vpop.f32.mrb[40].mxu0 }
 0x591   :  { %v6822_v31 = vpop.f32.mrb[41].mxu0 }
 0x593   :  { %v3142_v32 = vpop.f32.mrb[36].mxu1 }
 0x594   :  { %v3143_v33 = vadd.f32 %v3142_v32, %v3048_v22  ;;  %v6789_v38 = vpop.f32.mrb[37].mxu1  ;;  %v3676_v22 = vld [vmem:[#allocation2 + $0x15] sm:$0x1]  ;;  %v3767_v32 = vrot.slane %v3677_v25, 5 }
 0x595   :  { %v3765_v27 = vrot.slane %v3676_v22, 6  ;;  %v3679_v38 = vld [vmem:[#allocation2 + $0x2d] sm:$0x1] }
 0x596   :  { %v3146_v35 = vadd.f32 %v8478_v34, %v3143_v33 }
 0x598   :  { %v5958_v37 = vmul.f32 -1.442695, %v3146_v35  ;;  %v3508_v43 = vpop.f32.mrb[42].mxu0 }
 0x599   :  { %v6844_v40 = vpop.f32.mrb[43].mxu0 }
 0x59a   :  { %7695 = vpow2.f32 %v5958_v37  ;;  %v3771_v40 = vrot.slane %v3679_v38, 3 }
 0x59b   :  { %v3289_v44 = vpop.f32.mrb[38].mxu1 }
 0x59c   :  { %v3290_v36 = vadd.f32 %v3289_v44, %v3219_v24  ;;  %v6811_v45 = vpop.f32.mrb[39].mxu1 }
 0x59e   :  { %v3293_v39 = vadd.f32 %v8173_v59, %v3290_v36  ;;  %v3681_v36 = vld [vmem:[#allocation2 + $0x3d] sm:$0x1] }
 0x5a0   :  { %v5961_v48 = vmul.f32 -1.442695, %v3293_v39 }
 0x5a2   :  { %7697 = vpow2.f32 %v5961_v48 }
 0x5a3   :  { %v3436_v52 = vpop.f32.mrb[40].mxu1 }
 0x5a4   :  { %v7696_v54 = vpop.eup %7695  ;;  %v3437_v58 = vadd.f32 %v3436_v52, %v3366_v29  ;;  %v6833_v63 = vpop.f32.mrb[41].mxu1  ;;  %v3775_v52 = vrot.slane %v3681_v36, 1 }
 0x5a5   :  { %v3150_v3 = vadd.f32 1.0, %v7696_v54  ;;  %v4299_v63 = vld [vmem:[#allocation8 + $0xa0] sm:$0xff] }
 0x5a6   :  { %v3440_v4 = vadd.f32 %v8179_v13, %v3437_v58 }
 0x5a7   :  { %7699 = vrcp.f32 %v3150_v3  ;;  %v4300_v3 = vld [vmem:[#allocation8 + $0xa8] sm:$0xff] }
 0x5a8   :  { %7701 = vtanh.f32 %v3440_v4  ;;  %v7494_v4 = vpack.c.bf16 %v4300_v3, %v4299_v63 }
 0x5ab   :  { %v3578_v28 = vpop.f32.mrb[42].mxu1 }
 0x5ac   :  { %v7698_v46 = vpop.eup %7697  ;;  %v3579_v8 = vadd.f32 %v3578_v28, %v3508_v43  ;;  %v6855_v2 = vpop.f32.mrb[43].mxu1  ;;  %v3680_v43 = vld [vmem:[#allocation2 + $0x35] sm:$0x1] }
 0x5ad   :  { %v3297_v10 = vadd.f32 1.0, %v7698_v46  ;;  %v3773_v45 = vrot.slane %v3680_v43, 2  ;;  %v4301_v28 = vld [vmem:[#allocation8 + $0xb0] sm:$0xff]  ;;  %v4302_v46 = vld [vmem:[#allocation8 + $0xb8] sm:$0xff] }
 0x5ae   :  { %v3582_v14 = vadd.f32 %v8185_v23, %v3579_v8  ;;  %v3674_v23 = vld [vmem:[#allocation2 + $0x5] sm:$0x1]  ;;  %v7497_v8 = vpack.c.bf16 %v4302_v46, %v4301_v28 }
 0x5af   :  { %7703 = vrcp.f32 %v3297_v10  ;;  %v3764_v31 = vsel %vm221_vm1, %v3763_v60, %v3674_v23 }
 0x5b0   :  { %v5966_v59 = vmul.f32 -1.442695, %v3582_v14  ;;  %v3766_v33 = vsel %vm224_vm2, %v3765_v27, %v3764_v31 }
 0x5b1   :  { %v7700_v15 = vpop.eup %7699  ;;  %v3768_v37 = vsel %vm227_vm3, %v3767_v32, %v3766_v33 }
 0x5b2   :  { %v7702_v51 = vpop.eup %7701  ;;  %7705 = vpow2.f32 %v5966_v59 }
 0x5b3   :  { %v3590_v17 = vmul.f32 %v7702_v51, %v7700_v15 }
 0x5b9   :  { %v7704_v47 = vpop.eup %7703 }
 0x5ba   :  { %v3589_v18 = vmul.f32 %v7704_v47, %v8401_v57  ;;  %v3678_v57 = vld [vmem:[#allocation2 + $0x25] sm:$0x1] }
 0x5bb   :  { %v3769_v35 = vrot.slane %v3678_v57, 4 }
 0x5bc   :  { %v7706_v19 = vpop.eup %7705  ;;  %v8485_v13 = vadd.f32 %v3590_v17, %v3589_v18 }
 0x5bd   :  { %v3586_v20 = vadd.f32 1.0, %v7706_v19  ;;  %v3770_v44 = vsel %vm230_vm4, %v3769_v35, %v3768_v37  ;;  %v8569_v37 = vld [vmem:[%s8769_s3 + $0x2] ss:$0 sm:$0xff] }
 0x5be   :  { %7707 = vtanh.f32 %v8485_v13  ;;  %v3772_v48 = vsel %vm233_vm5, %v3771_v40, %v3770_v44 }
 0x5bf   :  { %7709 = vrcp.f32 %v3586_v20  ;;  %v3774_v54 = vsel %vm236_vm6, %v3773_v45, %v3772_v48  ;;  %v8575_v48 = vld [vmem:[%s8769_s3 + $0x3] ss:$0 sm:$0xff] }
 0x5c0   :  { %v3776_v58 = vsel %vm239_vm7, %v3775_v52, %v3774_v54 }
 0x5c8   :  { %v7708_v24 = vpop.eup %7707 }
 0x5c9   :  { %v7710_v53 = vpop.eup %7709 }
 0x5ca   :  { %v3593_v29 = vmul.f32 %v7710_v53, %v7708_v24 }
 0x5cc   :  { %7711 = vtanh.f32 %v3593_v29  ;;  %6876 = vmatmul.mubr.msk.f32.vlgmr.msra.gmra.mrb[44].mxu1 %vm138_vm8, %v3593_v29 }
 0x5cd   :  { %7459 = vmatpush3.bf16.msra.mxu1 %v8042_v30  ;;  %6897 = vmatprep.mubr.msk.f32.mxu1 %vm7900_vm0, %v7901_v1 }
 0x5ce   :  { %7460 = vmatprep.subr.bf16.mxu1 %v7899_v0 }
 0x5d1   :  { %7462 = vmatpush3.bf16.msra.mxu1 %v8055_v42 }
 0x5d2   :  { %7469 = vmatprep.subr.bf16.mxu1 %v7899_v0 }
 0x5d4   :  { %6898 = vmatmul.mubr.msk.f32.vlgmr.msra.gmra.mrb[46].mxu1 %vm138_vm8, %v3593_v29 }
 0x5d5   :  { %7471 = vmatpush3.bf16.msra.mxu1 %v8067_v50  ;;  %6919 = vmatprep.mubr.msk.f32.mxu1 %vm7900_vm0, %v7901_v1 }
 0x5d6   :  { %v7712_v39 = vpop.eup %7711  ;;  %7472 = vmatprep.subr.bf16.mxu1 %v7899_v0 }
 0x5d7   :  { %6865 = vmatmul.mubr.msk.f32.vlgmr.msra.gmra.mrb[44].mxu0 %vm138_vm8, %v7712_v39 }
 0x5d8   :  { %7453 = vmatpush3.bf16.msra.mxu0 %v8030_v9  ;;  %6886 = vmatprep.mubr.msk.f32.mxu0 %vm7900_vm0, %v7901_v1 }
 0x5d9   :  { %7474 = vmatpush3.bf16.msra.mxu1 %v8078_v56  ;;  %7454 = vmatprep.subr.bf16.mxu0 %v7899_v0 }
 0x5da   :  { %7481 = vmatprep.subr.bf16.mxu1 %v7899_v0 }
 0x5dc   :  { %7456 = vmatpush3.bf16.msra.mxu0 %v8037_v16  ;;  %6920 = vmatmul.mubr.msk.f32.vlgmr.msra.gmra.mrb[48].mxu1 %vm138_vm8, %v3593_v29 }
 0x5dd   :  { %7483 = vmatpush3.bf16.msra.mxu1 %v8089_v62  ;;  %7463 = vmatprep.subr.bf16.mxu0 %v7899_v0 }
 0x5de   :  { %7484 = vmatprep.subr.bf16.mxu1 %v7899_v0  ;;  %6941 = vmatprep.mubr.msk.f32.mxu1 %vm7900_vm0, %v7901_v1 }
 0x5df   :  { %6887 = vmatmul.mubr.msk.f32.vlgmr.msra.gmra.mrb[46].mxu0 %vm138_vm8, %v3776_v58 }
 0x5e0   :  { %7465 = vmatpush3.bf16.msra.mxu0 %v8053_v41  ;;  %6908 = vmatprep.mubr.msk.f32.mxu0 %vm7900_vm0, %v7901_v1 }
 0x5e1   :  { %7486 = vmatpush3.bf16.msra.mxu1 %v8100_v7  ;;  %7466 = vmatprep.subr.bf16.mxu0 %v7899_v0 }
 0x5e2   :  { %7493 = vmatprep.subr.bf16.mxu1 %v7899_v0 }
 0x5e4   :  { %7468 = vmatpush3.bf16.msra.mxu0 %v8065_v49  ;;  %6942 = vmatmul.mubr.msk.f32.vlgmr.msra.gmra.mrb[50].mxu1 %vm138_vm8, %v3593_v29 }
 0x5e5   :  { %7475 = vmatprep.subr.bf16.mxu0 %v7899_v0  ;;  %6963 = vmatprep.mubr.msk.f32.mxu1 %vm7900_vm0, %v7901_v1 }
 0x5e6   :  { %7495 = vmatpush3.bf16.msra.mxu1 %v7494_v4 }
 0x5e7   :  { %6909 = vmatmul.mubr.msk.f32.vlgmr.msra.gmra.mrb[48].mxu0 %vm138_vm8, %v3776_v58  ;;  %7496 = vmatprep.subr.bf16.mxu1 %v7899_v0 }
 0x5e8   :  { %7477 = vmatpush3.bf16.msra.mxu0 %v8076_v55  ;;  %6930 = vmatprep.mubr.msk.f32.mxu0 %vm7900_vm0, %v7901_v1 }
 0x5e9   :  { %7478 = vmatprep.subr.bf16.mxu0 %v7899_v0 }
 0x5ea   :  { %7498 = vmatpush3.bf16.msra.mxu1 %v7497_v8 }
 0x5eb   :  { %7505 = vmatprep.subr.bf16.mxu1 %v7899_v0 }
 0x5ec   :  { %7480 = vmatpush3.bf16.msra.mxu0 %v8087_v61 }
 0x5ed   :  { %7487 = vmatprep.subr.bf16.mxu0 %v7899_v0 }
 0x5ef   :  { %6931 = vmatmul.mubr.msk.f32.vlgmr.msra.gmra.mrb[50].mxu0 %vm138_vm8, %v3776_v58 }
 0x5f0   :  { %7489 = vmatpush3.bf16.msra.mxu0 %v8098_v6  ;;  %6952 = vmatprep.mubr.msk.f32.mxu0 %vm7900_vm0, %v7901_v1 }
 0x5f1   :  { %7490 = vmatprep.subr.bf16.mxu0 %v7899_v0 }
 0x5f4   :  { %7492 = vmatpush3.bf16.msra.mxu0 %v8109_v11 }
 0x5f5   :  { %7499 = vmatprep.subr.bf16.mxu0 %v7899_v0 }
 0x5f7   :  { %6953 = vmatmul.mubr.msk.f32.vlgmr.msra.gmra.mrb[52].mxu0 %vm138_vm8, %v3776_v58 }
 0x5f8   :  { %7501 = vmatpush3.bf16.msra.mxu0 %v8028_v5  ;;  %6974 = vmatprep.mubr.msk.f32.mxu0 %vm7900_vm0, %v7901_v1 }
 0x5f9   :  { %7502 = vmatprep.subr.bf16.mxu0 %v7899_v0 }
 0x5fc   :  { %7504 = vmatpush3.bf16.msra.mxu0 %v8033_v12 }
 0x5fd   :  { %7511 = vmatprep.subr.bf16.mxu0 %v7899_v0 }
 0x69f   :  { %v3751_v2 = vpop.f32.mrb[44].mxu1 }
 0x6a0   :  { %v6877_v10 = vpop.f32.mrb[45].mxu1 }
 0x6a1   :  { %v4378_v10 = vld [vmem:[#allocation2 + $0xe] sm:$0x1] }
 0x6a7   :  { %v3922_v14 = vpop.f32.mrb[46].mxu1 }
 0x6a8   :  { %v6899_v59 = vpop.f32.mrb[47].mxu1 }
 0x6a9   :  { %v4466_v59 = vrot.slane %v4378_v10, 7 }
 0x6aa   :  { %v3669_v15 = vpop.f32.mrb[44].mxu0 }
 0x6ab   :  { %v8557_v51 = vadd.f32 %v3669_v15, %v8473_v26  ;;  %v6866_v17 = vpop.f32.mrb[45].mxu0  ;;  %v8563_v26 = vld [vmem:[%s8769_s3 + $0x1] ss:$0 sm:$0xff]  ;;  %v4377_v15 = vld [vmem:[#allocation2 + $0x6] sm:$0x1] }
 0x6af   :  { %v4069_v47 = vpop.f32.mrb[48].mxu1 }
 0x6b0   :  { %v6921_v18 = vpop.f32.mrb[49].mxu1 }
 0x6b1   :  { %v4380_v18 = vld [vmem:[#allocation2 + $0x1e] sm:$0x1] }
 0x6b2   :  { %v3845_v19 = vpop.f32.mrb[46].mxu0 }
 0x6b3   :  { %v3846_v20 = vadd.f32 %v3845_v19, %v3751_v2  ;;  %v6888_v21 = vpop.f32.mrb[47].mxu0 }
 0x6b4   :  { %v4467_v21 = vsel %vm221_vm1, %v4466_v59, %v4377_v15 }
 0x6b5   :  { %v3849_v22 = vadd.f32 %v8478_v34, %v3846_v20 }
 0x6b7   :  { %v5970_v60 = vmul.f32 -1.442695, %v3849_v22  ;;  %v4211_v23 = vpop.f32.mrb[50].mxu1  ;;  %v4470_v22 = vrot.slane %v4380_v18, 5 }
 0x6b8   :  { %v6943_v24 = vpop.f32.mrb[51].mxu1 }
 0x6b9   :  { %7713 = vpow2.f32 %v5970_v60 }
 0x6ba   :  { %v3992_v53 = vpop.f32.mrb[48].mxu0 }
 0x6bb   :  { %v3993_v25 = vadd.f32 %v3992_v53, %v3922_v14  ;;  %v6910_v27 = vpop.f32.mrb[49].mxu0  ;;  %v4379_v14 = vld [vmem:[#allocation2 + $0x16] sm:$0x1] }
 0x6bc   :  { %v4468_v19 = vrot.slane %v4379_v14, 6 }
 0x6bd   :  { %v3996_v29 = vadd.f32 %v8563_v26, %v3993_v25  ;;  %v4383_v25 = vld [vmem:[#allocation2 + $0x36] sm:$0x1] }
 0x6be   :  { %v4469_v60 = vsel %vm224_vm2, %v4468_v19, %v4467_v21 }
 0x6bf   :  { %v5973_v31 = vmul.f32 -1.442695, %v3996_v29  ;;  %v4471_v53 = vsel %vm227_vm3, %v4470_v22, %v4469_v60 }
 0x6c1   :  { %7715 = vpow2.f32 %v5973_v31  ;;  %v4384_v31 = vld [vmem:[#allocation2 + $0x3e] sm:$0x1] }
 0x6c2   :  { %v4139_v57 = vpop.f32.mrb[50].mxu0 }
 0x6c3   :  { %v7714_v32 = vpop.eup %7713  ;;  %v4140_v33 = vadd.f32 %v4139_v57, %v4069_v47  ;;  %v6932_v38 = vpop.f32.mrb[51].mxu0  ;;  %v4476_v57 = vrot.slane %v4383_v25, 2 }
 0x6c4   :  { %v3853_v35 = vadd.f32 1.0, %v7714_v32  ;;  %v4478_v38 = vrot.slane %v4384_v31, 1 }
 0x6c5   :  { %v4143_v43 = vadd.f32 %v8569_v37, %v4140_v33 }
 0x6c6   :  { %7717 = vrcp.f32 %v3853_v35 }
 0x6c7   :  { %7719 = vtanh.f32 %v4143_v43 }
 0x6ca   :  { %v4281_v40 = vpop.f32.mrb[52].mxu0 }
 0x6cb   :  { %v7716_v44 = vpop.eup %7715  ;;  %v4282_v36 = vadd.f32 %v4281_v40, %v4211_v23  ;;  %v6954_v45 = vpop.f32.mrb[53].mxu0  ;;  %v4382_v23 = vld [vmem:[#allocation2 + $0x2e] sm:$0x1]  ;;  %v5002_v40 = vld [vmem:[#allocation8 + $0xc0] sm:$0xff] }
 0x6cc   :  { %v4000_v39 = vadd.f32 1.0, %v7716_v44  ;;  %v4474_v27 = vrot.slane %v4382_v23, 3  ;;  %v5003_v44 = vld [vmem:[#allocation8 + $0xc8] sm:$0xff]  ;;  %v5004_v45 = vld [vmem:[#allocation8 + $0xd0] sm:$0xff] }
 0x6cd   :  { %v4285_v52 = vadd.f32 %v8575_v48, %v4282_v36  ;;  %v7548_v36 = vpack.c.bf16 %v5003_v44, %v5002_v40 }
 0x6ce   :  { %7721 = vrcp.f32 %v4000_v39  ;;  %v5005_v39 = vld [vmem:[#allocation8 + $0xd8] sm:$0xff] }
 0x6cf   :  { %v5978_v54 = vmul.f32 -1.442695, %v4285_v52  ;;  %v7551_v52 = vpack.c.bf16 %v5005_v39, %v5004_v45 }
 0x6d0   :  { %v7718_v58 = vpop.eup %7717 }
 0x6d1   :  { %v7720_v63 = vpop.eup %7719  ;;  %7723 = vpow2.f32 %v5978_v54 }
 0x6d2   :  { %v4293_v3 = vmul.f32 %v7720_v63, %v7718_v58 }
 0x6d8   :  { %v7722_v4 = vpop.eup %7721 }
 0x6d9   :  { %v4292_v28 = vmul.f32 %v7722_v4, %v8485_v13  ;;  %v4381_v13 = vld [vmem:[#allocation2 + $0x26] sm:$0x1] }
 0x6da   :  { %v4472_v24 = vrot.slane %v4381_v13, 4 }
 0x6db   :  { %v7724_v46 = vpop.eup %7723  ;;  %v8579_v8 = vadd.f32 %v4293_v3, %v4292_v28 }
 0x6dc   :  { %v4289_v2 = vadd.f32 1.0, %v7724_v46  ;;  %v4473_v29 = vsel %vm230_vm4, %v4472_v24, %v4471_v53 }
 0x6dd   :  { %7725 = vtanh.f32 %v8579_v8  ;;  %v4475_v33 = vsel %vm233_vm5, %v4474_v27, %v4473_v29 }
 0x6de   :  { %7727 = vrcp.f32 %v4289_v2  ;;  %v4477_v35 = vsel %vm236_vm6, %v4476_v57, %v4475_v33 }
 0x6df   :  { %v4479_v43 = vsel %vm239_vm7, %v4478_v38, %v4477_v35 }
 0x6e7   :  { %v7726_v17 = vpop.eup %7725 }
 0x6e8   :  { %v7728_v47 = vpop.eup %7727 }
 0x6e9   :  { %v4296_v20 = vmul.f32 %v7728_v47, %v7726_v17 }
 0x6eb   :  { %7729 = vtanh.f32 %v4296_v20  ;;  %6975 = vmatmul.mubr.msk.f32.vlgmr.msra.gmra.mrb[54].mxu0 %vm138_vm8, %v4296_v20 }
 0x6ec   :  { %7513 = vmatpush3.bf16.msra.mxu0 %v8042_v30  ;;  %6996 = vmatprep.mubr.msk.f32.mxu0 %vm7900_vm0, %v7901_v1 }
 0x6ed   :  { %7514 = vmatprep.subr.bf16.mxu0 %v7899_v0 }
 0x6f0   :  { %7516 = vmatpush3.bf16.msra.mxu0 %v8055_v42 }
 0x6f1   :  { %7523 = vmatprep.subr.bf16.mxu0 %v7899_v0 }
 0x6f3   :  { %6997 = vmatmul.mubr.msk.f32.vlgmr.msra.gmra.mrb[56].mxu0 %vm138_vm8, %v4296_v20 }
 0x6f4   :  { %7525 = vmatpush3.bf16.msra.mxu0 %v8067_v50  ;;  %7018 = vmatprep.mubr.msk.f32.mxu0 %vm7900_vm0, %v7901_v1 }
 0x6f5   :  { %v7730_v32 = vpop.eup %7729  ;;  %7526 = vmatprep.subr.bf16.mxu0 %v7899_v0 }
 0x6f6   :  { %6964 = vmatmul.mubr.msk.f32.vlgmr.msra.gmra.mrb[52].mxu1 %vm138_vm8, %v7730_v32 }
 0x6f7   :  { %7507 = vmatpush3.bf16.msra.mxu1 %v8030_v9  ;;  %6985 = vmatprep.mubr.msk.f32.mxu1 %vm7900_vm0, %v7901_v1 }
 0x6f8   :  { %7528 = vmatpush3.bf16.msra.mxu0 %v8078_v56  ;;  %7508 = vmatprep.subr.bf16.mxu1 %v7899_v0 }
 0x6f9   :  { %7535 = vmatprep.subr.bf16.mxu0 %v7899_v0 }
 0x6fb   :  { %7510 = vmatpush3.bf16.msra.mxu1 %v8037_v16  ;;  %7019 = vmatmul.mubr.msk.f32.vlgmr.msra.gmra.mrb[58].mxu0 %vm138_vm8, %v4296_v20 }
 0x6fc   :  { %7537 = vmatpush3.bf16.msra.mxu0 %v8089_v62  ;;  %7517 = vmatprep.subr.bf16.mxu1 %v7899_v0 }
 0x6fd   :  { %7538 = vmatprep.subr.bf16.mxu0 %v7899_v0  ;;  %7040 = vmatprep.mubr.msk.f32.mxu0 %vm7900_vm0, %v7901_v1 }
 0x6fe   :  { %6986 = vmatmul.mubr.msk.f32.vlgmr.msra.gmra.mrb[54].mxu1 %vm138_vm8, %v4479_v43 }
 0x6ff   :  { %7519 = vmatpush3.bf16.msra.mxu1 %v8053_v41  ;;  %7007 = vmatprep.mubr.msk.f32.mxu1 %vm7900_vm0, %v7901_v1 }
 0x700   :  { %7540 = vmatpush3.bf16.msra.mxu0 %v8100_v7  ;;  %7520 = vmatprep.subr.bf16.mxu1 %v7899_v0 }
 0x701   :  { %7547 = vmatprep.subr.bf16.mxu0 %v7899_v0 }
 0x703   :  { %7522 = vmatpush3.bf16.msra.mxu1 %v8065_v49  ;;  %7041 = vmatmul.mubr.msk.f32.vlgmr.msra.gmra.mrb[60].mxu0 %vm138_vm8, %v4296_v20 }
 0x704   :  { %7529 = vmatprep.subr.bf16.mxu1 %v7899_v0  ;;  %7062 = vmatprep.mubr.msk.f32.mxu0 %vm7900_vm0, %v7901_v1 }
 0x705   :  { %7549 = vmatpush3.bf16.msra.mxu0 %v7548_v36 }
 0x706   :  { %7008 = vmatmul.mubr.msk.f32.vlgmr.msra.gmra.mrb[56].mxu1 %vm138_vm8, %v4479_v43  ;;  %7550 = vmatprep.subr.bf16.mxu0 %v7899_v0 }
 0x707   :  { %7531 = vmatpush3.bf16.msra.mxu1 %v8076_v55  ;;  %7029 = vmatprep.mubr.msk.f32.mxu1 %vm7900_vm0, %v7901_v1 }
 0x708   :  { %7532 = vmatprep.subr.bf16.mxu1 %v7899_v0 }
 0x709   :  { %7552 = vmatpush3.bf16.msra.mxu0 %v7551_v52  ;;  %v5081_v52 = vld [vmem:[#allocation2 + $0xf] sm:$0x1] }
 0x70a   :  { %7559 = vmatprep.subr.bf16.mxu0 %v7899_v0 }
 0x70b   :  { %7534 = vmatpush3.bf16.msra.mxu1 %v8087_v61 }
 0x70c   :  { %7541 = vmatprep.subr.bf16.mxu1 %v7899_v0 }
 0x70e   :  { %7030 = vmatmul.mubr.msk.f32.vlgmr.msra.gmra.mrb[58].mxu1 %vm138_vm8, %v4479_v43 }
 0x70f   :  { %7543 = vmatpush3.bf16.msra.mxu1 %v8098_v6  ;;  %7051 = vmatprep.mubr.msk.f32.mxu1 %vm7900_vm0, %v7901_v1 }
 0x710   :  { %7544 = vmatprep.subr.bf16.mxu1 %v7899_v0 }
 0x713   :  { %7546 = vmatpush3.bf16.msra.mxu1 %v8109_v11 }
 0x714   :  { %7553 = vmatprep.subr.bf16.mxu1 %v7899_v0 }
 0x716   :  { %7052 = vmatmul.mubr.msk.f32.vlgmr.msra.gmra.mrb[60].mxu1 %vm138_vm8, %v4479_v43 }
 0x717   :  { %7555 = vmatpush3.bf16.msra.mxu1 %v8028_v5  ;;  %7073 = vmatprep.mubr.msk.f32.mxu1 %vm7900_vm0, %v7901_v1 }
 0x718   :  { %7556 = vmatprep.subr.bf16.mxu1 %v7899_v0 }
 0x71b   :  { %7558 = vmatpush3.bf16.msra.mxu1 %v8033_v12 }
 0x71c   :  { %7565 = vmatprep.subr.bf16.mxu1 %v7899_v0 }
 0x7be   :  { %v4454_v5 = vpop.f32.mrb[54].mxu0 }
 0x7bf   :  { %v6976_v54 = vpop.f32.mrb[55].mxu0 }
 0x7c0   :  { %v5169_v54 = vrot.slane %v5081_v52, 7 }
 0x7c6   :  { %v4625_v58 = vpop.f32.mrb[56].mxu0 }
 0x7c7   :  { %v6998_v63 = vpop.f32.mrb[57].mxu0 }
 0x7c9   :  { %v4372_v3 = vpop.f32.mrb[52].mxu1 }
 0x7ca   :  { %v8651_v12 = vadd.f32 %v4372_v3, %v8557_v51  ;;  %v6965_v4 = vpop.f32.mrb[53].mxu1 }
 0x7cb   :  { %v5083_v4 = vld [vmem:[#allocation2 + $0x1f] sm:$0x1] }
 0x7ce   :  { %v4772_v28 = vpop.f32.mrb[58].mxu0 }
 0x7cf   :  { %v7020_v46 = vpop.f32.mrb[59].mxu0 }
 0x7d1   :  { %v4548_v2 = vpop.f32.mrb[54].mxu1 }
 0x7d2   :  { %v4549_v10 = vadd.f32 %v4548_v2, %v4454_v5  ;;  %v6987_v14 = vpop.f32.mrb[55].mxu1  ;;  %v5082_v5 = vld [vmem:[#allocation2 + $0x17] sm:$0x1] }
 0x7d4   :  { %v4552_v59 = vadd.f32 %v8478_v34, %v4549_v10  ;;  %v5173_v10 = vrot.slane %v5083_v4, 5 }
 0x7d6   :  { %v5982_v15 = vmul.f32 -1.442695, %v4552_v59  ;;  %v4914_v17 = vpop.f32.mrb[60].mxu0  ;;  %v5085_v59 = vld [vmem:[#allocation2 + $0x2f] sm:$0x1] }
 0x7d7   :  { %v7042_v47 = vpop.f32.mrb[61].mxu0 }
 0x7d8   :  { %7731 = vpow2.f32 %v5982_v15  ;;  %v5086_v47 = vld [vmem:[#allocation2 + $0x37] sm:$0x1] }
 0x7d9   :  { %v4695_v18 = vpop.f32.mrb[56].mxu1 }
 0x7da   :  { %v4696_v19 = vadd.f32 %v4695_v18, %v4625_v58  ;;  %v7009_v20 = vpop.f32.mrb[57].mxu1  ;;  %v5080_v58 = vld [vmem:[#allocation2 + $0x7] sm:$0x1]  ;;  %v5177_v18 = vrot.slane %v5085_v59, 3 }
 0x7db   :  { %v5170_v2 = vsel %vm221_vm1, %v5169_v54, %v5080_v58  ;;  %v5179_v20 = vrot.slane %v5086_v47, 2 }
 0x7dc   :  { %v4699_v21 = vadd.f32 %v8563_v26, %v4696_v19 }
 0x7de   :  { %v5985_v13 = vmul.f32 -1.442695, %v4699_v21 }
 0x7e0   :  { %7733 = vpow2.f32 %v5985_v13 }
 0x7e1   :  { %v4842_v51 = vpop.f32.mrb[58].mxu1 }
 0x7e2   :  { %v7732_v22 = vpop.eup %7731  ;;  %v4843_v60 = vadd.f32 %v4842_v51, %v4772_v28  ;;  %v7031_v23 = vpop.f32.mrb[59].mxu1  ;;  %v5171_v28 = vrot.slane %v5082_v5, 6 }
 0x7e3   :  { %v4556_v24 = vadd.f32 1.0, %v7732_v22 }
 0x7e4   :  { %v4846_v53 = vadd.f32 %v8569_v37, %v4843_v60  ;;  %v5172_v14 = vsel %vm224_vm2, %v5171_v28, %v5170_v2 }
 0x7e5   :  { %7735 = vrcp.f32 %v4556_v24 }
 0x7e6   :  { %7737 = vtanh.f32 %v4846_v53 }
 0x7e9   :  { %v4984_v25 = vpop.f32.mrb[60].mxu1 }
 0x7ea   :  { %v7734_v27 = vpop.eup %7733  ;;  %v4985_v29 = vadd.f32 %v4984_v25, %v4914_v17  ;;  %v7053_v31 = vpop.f32.mrb[61].mxu1  ;;  %v5174_v17 = vsel %vm227_vm3, %v5173_v10, %v5172_v14 }
 0x7eb   :  { %v4703_v57 = vadd.f32 1.0, %v7734_v27 }
 0x7ec   :  { %v4988_v32 = vadd.f32 %v8575_v48, %v4985_v29 }
 0x7ed   :  { %7739 = vrcp.f32 %v4703_v57 }
 0x7ee   :  { %v5990_v33 = vmul.f32 -1.442695, %v4988_v32 }
 0x7ef   :  { %v7736_v38 = vpop.eup %7735 }
 0x7f0   :  { %v7738_v35 = vpop.eup %7737  ;;  %7741 = vpow2.f32 %v5990_v33 }
 0x7f1   :  { %v4996_v43 = vmul.f32 %v7738_v35, %v7736_v38 }
 0x7f7   :  { %v7740_v40 = vpop.eup %7739 }
 0x7f8   :  { %v4995_v44 = vmul.f32 %v7740_v40, %v8579_v8  ;;  %v5084_v8 = vld [vmem:[#allocation2 + $0x27] sm:$0x1] }
 0x7f9   :  { %v5175_v15 = vrot.slane %v5084_v8, 4 }
 0x7fa   :  { %v7742_v36 = vpop.eup %7741  ;;  %v8658_v45 = vadd.f32 %v4996_v43, %v4995_v44 }
 0x7fb   :  { %v4992_v39 = vadd.f32 1.0, %v7742_v36  ;;  %v5176_v19 = vsel %vm230_vm4, %v5175_v15, %v5174_v17 }
 0x7fc   :  { %7743 = vtanh.f32 %v8658_v45 }
 0x7fd   :  { %7745 = vrcp.f32 %v4992_v39 }
 0x806   :  { %v7744_v63 = vpop.eup %7743 }
 0x807   :  { %v7746_v3 = vpop.eup %7745 }
 0x808   :  { %v4999_v46 = vmul.f32 %v7746_v3, %v7744_v63 }
 0x80a   :  { %7747 = vtanh.f32 %v4999_v46  ;;  %7074 = vmatmul.mubr.msk.f32.vlgmr.msra.gmra.mrb[62].mxu1 %vm138_vm8, %v4999_v46 }
 0x80b   :  { %7567 = vmatpush3.bf16.msra.mxu1 %v8042_v30  ;;  %7095 = vmatprep.mubr.msk.f32.mxu1 %vm7900_vm0, %v7901_v1  ;;  %v5087_v30 = vld [vmem:[#allocation2 + $0x3f] sm:$0x1] }
 0x80c   :  { %7568 = vmatprep.subr.bf16.mxu1 %v7899_v0  ;;  %v5181_v13 = vrot.slane %v5087_v30, 1 }
 0x80f   :  { %7570 = vmatpush3.bf16.msra.mxu1 %v8055_v42  ;;  %v5178_v42 = vsel %vm233_vm5, %v5177_v18, %v5176_v19 }
 0x810   :  { %7577 = vmatprep.subr.bf16.mxu1 %v7899_v0 }
 0x812   :  { %7096 = vmatmul.mubr.msk.f32.vlgmr.msra.gmra.mrb[64].mxu1 %vm138_vm8, %v4999_v46 }
 0x813   :  { %7579 = vmatpush3.bf16.msra.mxu1 %v8067_v50  ;;  %7117 = vmatprep.mubr.msk.f32.mxu1 %vm7900_vm0, %v7901_v1  ;;  %v5180_v50 = vsel %vm236_vm6, %v5179_v20, %v5178_v42 }
 0x814   :  { %v7748_v21 = vpop.eup %7747  ;;  %7580 = vmatprep.subr.bf16.mxu1 %v7899_v0  ;;  %v5182_v51 = vsel %vm239_vm7, %v5181_v13, %v5180_v50 }
 0x815   :  { %7063 = vmatmul.mubr.msk.f32.vlgmr.msra.gmra.mrb[62].mxu0 %vm138_vm8, %v7748_v21  ;;  %v6004_v21 = vld [vmem:[%s8771_s5] ss:$0 sm:$0xff]  ;;  %s7902_s5 = smov [#allocation10]  }
 0x816   :  { %7561 = vmatpush3.bf16.msra.mxu0 %v8030_v9  ;;  %7084 = vmatprep.mubr.msk.f32.mxu0 %vm7900_vm0, %v7901_v1  ;;  %v5705_v9 = vld [vmem:[#allocation8 + $0xe0] sm:$0xff] }
 0x817   :  { %7582 = vmatpush3.bf16.msra.mxu1 %v8078_v56  ;;  %7562 = vmatprep.subr.bf16.mxu0 %v7899_v0 }
 0x818   :  { %7589 = vmatprep.subr.bf16.mxu1 %v7899_v0 }
 0x81a   :  { %7564 = vmatpush3.bf16.msra.mxu0 %v8037_v16  ;;  %7118 = vmatmul.mubr.msk.f32.vlgmr.msra.gmra.mrb[66].mxu1 %vm138_vm8, %v4999_v46  ;;  %v5706_v16 = vld [vmem:[#allocation8 + $0xe8] sm:$0xff] }
 0x81b   :  { %7591 = vmatpush3.bf16.msra.mxu1 %v8089_v62  ;;  %7571 = vmatprep.subr.bf16.mxu0 %v7899_v0  ;;  %v5792_v62 = vld [vmem:[%s8772_s6 + $0x8] sm:$0xff] }
 0x81c   :  { %7592 = vmatprep.subr.bf16.mxu1 %v7899_v0  ;;  %7139 = vmatprep.mubr.msk.f32.mxu1 %vm7900_vm0, %v7901_v1 }
 0x81d   :  { %7085 = vmatmul.mubr.msk.f32.vlgmr.msra.gmra.mrb[64].mxu0 %vm138_vm8, %v5182_v51 }
 0x81e   :  { %7573 = vmatpush3.bf16.msra.mxu0 %v8053_v41  ;;  %7106 = vmatprep.mubr.msk.f32.mxu0 %vm7900_vm0, %v7901_v1  ;;  %v5707_v41 = vld [vmem:[#allocation8 + $0xf0] sm:$0xff] }
 0x81f   :  { %7594 = vmatpush3.bf16.msra.mxu1 %v8100_v7  ;;  %7574 = vmatprep.subr.bf16.mxu0 %v7899_v0 }
 0x820   :  { %7601 = vmatprep.subr.bf16.mxu1 %v7899_v0 }
 0x822   :  { %7576 = vmatpush3.bf16.msra.mxu0 %v8065_v49  ;;  %7140 = vmatmul.mubr.msk.f32.vlgmr.msra.gmra.mrb[68].mxu1 %vm138_vm8, %v4999_v46  ;;  %v7602_v49 = vpack.c.bf16 %v5706_v16, %v5705_v9 }
 0x823   :  { %7583 = vmatprep.subr.bf16.mxu0 %v7899_v0  ;;  %7161 = vmatprep.mubr.msk.f32.mxu1 %vm7900_vm0, %v7901_v1 }
 0x824   :  { %7603 = vmatpush3.bf16.msra.mxu1 %v7602_v49 }
 0x825   :  { %7107 = vmatmul.mubr.msk.f32.vlgmr.msra.gmra.mrb[66].mxu0 %vm138_vm8, %v5182_v51  ;;  %7604 = vmatprep.subr.bf16.mxu1 %v7899_v0 }
 0x826   :  { %7585 = vmatpush3.bf16.msra.mxu0 %v8076_v55  ;;  %7128 = vmatprep.mubr.msk.f32.mxu0 %vm7900_vm0, %v7901_v1  ;;  %v5708_v55 = vld [vmem:[#allocation8 + $0xf8] sm:$0xff] }
 0x827   :  { %7586 = vmatprep.subr.bf16.mxu0 %v7899_v0  ;;  %v7605_v56 = vpack.c.bf16 %v5708_v55, %v5707_v41 }
 0x829   :  { %7606 = vmatpush3.bf16.msra.mxu1 %v7605_v56 }
 0x82a   :  { %7588 = vmatpush3.bf16.msra.mxu0 %v8087_v61  ;;  %v5791_v61 = vld [vmem:[%s8772_s6] sm:$0xff] }
 0x82b   :  { %7595 = vmatprep.subr.bf16.mxu0 %v7899_v0 }
 0x82d   :  { %7129 = vmatmul.mubr.msk.f32.vlgmr.msra.gmra.mrb[68].mxu0 %vm138_vm8, %v5182_v51 }
 0x82e   :  { %7597 = vmatpush3.bf16.msra.mxu0 %v8098_v6  ;;  %7150 = vmatprep.mubr.msk.f32.mxu0 %vm7900_vm0, %v7901_v1  ;;  %v7608_v6 = vpack.c.bf16 %v5792_v62, %v5791_v61 }
 0x82f   :  { %7598 = vmatprep.subr.bf16.mxu0 %v7899_v0 }
 0x832   :  { %7600 = vmatpush3.bf16.msra.mxu0 %v8109_v11 }
 0x833   :  { %7607 = vmatprep.subr.bf16.mxu0 %v7899_v0 }
 0x835   :  { %7151 = vmatmul.mubr.msk.f32.vlgmr.msra.gmra.mrb[70].mxu0 %vm138_vm8, %v5182_v51  ;;  %v6005_v51 = vld [vmem:[%s8773_s7] ss:$0 sm:$0xff] }
 0x836   :  { %7172 = vmatprep.mubr.msk.f32.mxu0 %vm7900_vm0, %v7901_v1  ;;  %7609 = vmatpush3.bf16.msra.mxu0 %v7608_v6 }
 0x837   :  { %7610 = vmatprep.subr.bf16.mxu0 %v7899_v0 }
 0x8dd   :  { %v5157_v1 = vpop.f32.mrb[62].mxu1 }
 0x8de   :  { %v7075_v7 = vpop.f32.mrb[63].mxu1 }
 0x8e5   :  { %v5328_v11 = vpop.f32.mrb[64].mxu1 }
 0x8e6   :  { %v7097_v22 = vpop.f32.mrb[65].mxu1 }
 0x8e8   :  { %v5075_v60 = vpop.f32.mrb[62].mxu0 }
 0x8e9   :  { %v5079_v23 = vadd.f32 %v5075_v60, %v8651_v12  ;;  %v7064_v24 = vpop.f32.mrb[63].mxu0 }
 0x8ed   :  { %v5475_v53 = vpop.f32.mrb[66].mxu1 }
 0x8ee   :  { %v7119_v25 = vpop.f32.mrb[67].mxu1 }
 0x8f0   :  { %v5251_v27 = vpop.f32.mrb[64].mxu0 }
 0x8f1   :  { %v5252_v29 = vadd.f32 %v5251_v27, %v5157_v1  ;;  %v7086_v31 = vpop.f32.mrb[65].mxu0 }
 0x8f3   :  { %v5255_v57 = vadd.f32 %v8478_v34, %v5252_v29 }
 0x8f5   :  { %v5994_v32 = vmul.f32 -1.442695, %v5255_v57  ;;  %v5617_v33 = vpop.f32.mrb[68].mxu1 }
 0x8f6   :  { %v7141_v38 = vpop.f32.mrb[69].mxu1 }
 0x8f7   :  { %7749 = vpow2.f32 %v5994_v32 }
 0x8f8   :  { %v5398_v0 = vpop.f32.mrb[66].mxu0 }
 0x8f9   :  { %v5399_v35 = vadd.f32 %v5398_v0, %v5328_v11  ;;  %v7108_v43 = vpop.f32.mrb[67].mxu0 }
 0x8fb   :  { %v5402_v40 = vadd.f32 %v8563_v26, %v5399_v35 }
 0x8fd   :  { %v5997_v44 = vmul.f32 -1.442695, %v5402_v40 }
 0x8ff   :  { %7751 = vpow2.f32 %v5997_v44 }
 0x900   :  { %v5545_v12 = vpop.f32.mrb[68].mxu0 }
 0x901   :  { %v7750_v36 = vpop.eup %7749  ;;  %v5546_v39 = vadd.f32 %v5545_v12, %v5475_v53  ;;  %v7130_v52 = vpop.f32.mrb[69].mxu0 }
 0x902   :  { %v5259_v5 = vadd.f32 1.0, %v7750_v36 }
 0x903   :  { %v5549_v54 = vadd.f32 %v8569_v37, %v5546_v39 }
 0x904   :  { %7753 = vrcp.f32 %v5259_v5 }
 0x905   :  { %7755 = vtanh.f32 %v5549_v54 }
 0x908   :  { %v5687_v34 = vpop.f32.mrb[70].mxu0 }
 0x909   :  { %v7752_v58 = vpop.eup %7751  ;;  %v5688_v63 = vadd.f32 %v5687_v34, %v5617_v33  ;;  %v7152_v3 = vpop.f32.mrb[71].mxu0 }
 0x90a   :  { %v5406_v4 = vadd.f32 1.0, %v7752_v58 }
 0x90b   :  { %v5691_v28 = vadd.f32 %v8575_v48, %v5688_v63  ;;  %v5793_v48 = vld [vmem:[%s8772_s6 + $0x10] sm:$0xff] }
 0x90c   :  { %7757 = vrcp.f32 %v5406_v4 }
 0x90d   :  { %v6002_v26 = vmul.f32 -1.442695, %v5691_v28 }
 0x90e   :  { %v7754_v46 = vpop.eup %7753 }
 0x90f   :  { %v7756_v2 = vpop.eup %7755  ;;  %7759 = vpow2.f32 %v6002_v26 }
 0x910   :  { %v5699_v8 = vmul.f32 %v7756_v2, %v7754_v46 }
 0x916   :  { %v7758_v10 = vpop.eup %7757 }
 0x917   :  { %v5698_v14 = vmul.f32 %v7758_v10, %v8658_v45  ;;  %v5794_v45 = vld [vmem:[%s8772_s6 + $0x18] sm:$0xff]  ;;  %s5894_s6 = sshll.u32 %s7902_s5, 4  ;;  %s5895_s6 = int_to_ptr.vmem [resolvable:$true] %s5894_s6 }
 0x918   :  { %v7611_v30 = vpack.c.bf16 %v5794_v45, %v5793_v48  ;;  %s7863_s7 = scalar_lea.vmem %s5895_s6, 128  ;;  %p7868_p5 = scmp.lt.s32.totalorder %s5895_s6, %s5895_s6 }
 0x919   :  { %v7760_v59 = vpop.eup %7759  ;;  %v5700_v37 = vadd.f32 %v5699_v8, %v5698_v14  ;;  %p7864_p4 = scmp.ne.s32.totalorder %s5895_s6, %s7863_s7  ;;  %p7869_p6 = scmp.lt.s32.totalorder %s7863_s7, %s7863_s7 }
 0x91a   :  { %v5695_v15 = vadd.f32 1.0, %v7760_v59  ;;  %7612 = vmatpush3.bf16.msra.mxu0 %v7611_v30 }
 0x91b   :  { %7761 = vtanh.f32 %v5700_v37  ;;  %p7870_p7 = por %p7869_p6, %p7868_p5 }
 0x91c   :  { %7763 = vrcp.f32 %v5695_v15 }
 0x91d   :  { %p7871_p8 = pnand %p7870_p7, %p7864_p4 }
 0x925   :  { %v7762_v17 = vpop.eup %7761 }
 0x926   :  { %v7764_v47 = vpop.eup %7763 }
 0x927   :  { %v5702_v18 = vmul.f32 %v7764_v47, %v7762_v17 }
 0x929   :  { %7765 = vtanh.f32 %v5702_v18 }
 0x933   :  { %v7766_v19 = vpop.eup %7765 }
 0x934   :  { %7162 = vmatmul.mubr.msk.f32.vlgmr.msra.gmra.mrb[70].mxu1 %vm138_vm8, %v7766_v19 }
 0xa07   :  { %v5778_v20 = vpop.f32.mrb[70].mxu1 }
 0xa08   :  { %v5782_v42 = vadd.f32 %v5778_v20, %v5079_v23  ;;  %v7163_v13 = vpop.f32.mrb[71].mxu1 }
 0xa0a   :  { %v5790_v50 = vadd.f32 %v6004_v21, %v5782_v42 }
 0xa0c   :  { %7173 = vmatmul.mubr.msk.f32.vlgmr.msra.gmra.mrb[72].mxu0 %vm138_vm8, %v5790_v50 }
 0xadf   :  { %v5871_v9 = vpop.f32.mrb[72].mxu0 }
 0xae0   :  { %v5872_v16 = vadd.f32 %v6005_v51, %v5871_v9  ;;  %v7174_v41 = vpop.f32.mrb[73].mxu0 }
 0xae2   :  { %v5876_v49 = vsel %vm5875_vm9, %v5872_v16, -inf }
 0xae3   :  { %5877 = vmax.xlane.f32.xlu0 %v5876_v49 }
 0xb70   :  { %v5878_v55 = vpop.xlane.xlu0 %5877 }
 0xb71   :  { %v5879_v56 = vsub.f32 %v5872_v16, %v5878_v55 }
 0xb73   :  { %v5880_v61 = vmul.f32 1.442695, %v5879_v56 }
 0xb75   :  { %7767 = vpow2.f32 %v5880_v61 }
 0xb7f   :  { %v7768_v62 = vpop.eup %7767 }
 0xb80   :  { %v5882_v6 = vsel %vm5875_vm9, %v7768_v62, 0.0 }
 0xb81   :  { %5883 = vadd.xlane.f32.xlu0 %v5882_v6 }
 0xc0e   :  { %v5884_v1 = vpop.xlane.xlu0 %5883 }
 0xc0f   :  { %7769 = vrcp.f32 %v5884_v1 }
 0xc19   :  { %v7770_v7 = vpop.eup %7769 }
 0xc1a   :  { %v5886_v11 = vmul.f32 %v7770_v7, %v7768_v62 }
 0xc1c   :  { %5887 = vst.msk [vmem:[#allocation10] sm:$0xff] %vm5875_vm9, %v5886_v11 }
 0xc1d   :  { %7874 = shalt.err (!%p7871_p8)
}
 0xc1e   :  { %s7875_s10 = scalar_lea.hbm %s8774_s8, 128 }
 0xc1f   :  { %p7876_p9 = scmp.ne.s32.totalorder %s8774_s8, %s7875_s10  ;;  %p7879_p10 = scmp.lt.u32.totalorder %s7875_s10, %s8774_s8 }
 0xc21   :  { %p7881_p11 = pnand %p7879_p10, %p7876_p9 }
 0xc23   :  { %7884 = shalt.err (!%p7881_p11)
}
 0xc24   :  { %5897 = dma.vmem_to_hbm [thread:$0]  %s5895_s6, 128, %s8774_s8, [#allocation4]  }
 0xc25   :  { %7891 = dma.done.wait [#allocation4], 128  }
 0xc26   :  { %7892 = vsyncadd [#allocation4], 4294967168 }
 0xc27   :  { %5901 = vsyncpa [#allocation3], 1 }
 0xc28   :  { %5902 = vsyncpa [#allocation6], 1 }
 0xc29   :  { %5903 = vsyncpa [#allocation9], 1 }
 0xc2a   :  { %5904 = vsyncpa [#allocation4], 1 }

</bundles_post_ra>
